<compile_context>
chip_gen: v6e
topology: v6e:2x2x1
jax: 0.10.0
libtpu: 0.0.40
codegen_flags: <defaults>
</compile_context>

<pallas_src>
import jax
import jax.numpy as jnp
from jax import lax
from jax.experimental import pallas as pl
from jax.experimental.pallas import tpu as pltpu


def _round_up(x, m):
    return ((x + m - 1) // m) * m


def _grpo_fused_linear_kernel(
    x_ref, wt_ref, b_ref, rx_ref, rwt_ref, rb_ref,       # inputs
    chosen_ref, ref_chosen_ref, lse_out_ref,              # outputs [TM, 1]
    m_pol, l_pol, ref_at_max, m_refs, l_refs,              # scratch [TM, 1] f32
):
    j = pl.program_id(1)

    @pl.when(j == 0)
    def _():
        m_pol[...] = jnp.full_like(m_pol, -jnp.inf)
        l_pol[...] = jnp.zeros_like(l_pol)
        ref_at_max[...] = jnp.zeros_like(ref_at_max)
        m_refs[...] = jnp.full_like(m_refs, -jnp.inf)
        l_refs[...] = jnp.zeros_like(l_refs)

    # [TM, H] @ [H, TV] on the MXU in the operands' native dtype (bf16 if the
    # caller requested it), f32 accumulation. Weights were pre-transposed to
    # [H, V] once in HBM -> canonical contraction, no per-step tile relayout.
    logits = jnp.dot(x_ref[...], wt_ref[...],
                     preferred_element_type=jnp.float32) + b_ref[...]
    ref_logits = jnp.dot(rx_ref[...], rwt_ref[...],
                         preferred_element_type=jnp.float32) + rb_ref[...]

    # --- policy: online logsumexp + running max + ref-logit-at-argmax -------
    tile_max = jnp.max(logits, axis=-1, keepdims=True)                  # [TM,1]
    # Reference logit at the policy argmax within this tile. On (vanishingly
    # rare) f32 ties this picks the tied column with the largest ref logit
    # instead of torch's first occurrence; the strict '>' below still keeps
    # the earliest vocab tile attaining the running max.
    ref_sel = jnp.max(jnp.where(logits == tile_max, ref_logits, -jnp.inf),
                      axis=-1, keepdims=True)                           # [TM,1]

    m_old = m_pol[...]
    m_new = jnp.maximum(m_old, tile_max)
    l_pol[...] = (l_pol[...] * jnp.exp(m_old - m_new)
                  + jnp.sum(jnp.exp(logits - m_new), axis=-1, keepdims=True))
    ref_at_max[...] = jnp.where(tile_max > m_old, ref_sel, ref_at_max[...])
    m_pol[...] = m_new

    # --- reference model: online logsumexp ----------------------------------
    rm_old = m_refs[...]
    rtile_max = jnp.max(ref_logits, axis=-1, keepdims=True)
    rm_new = jnp.maximum(rm_old, rtile_max)
    l_refs[...] = (l_refs[...] * jnp.exp(rm_old - rm_new)
                   + jnp.sum(jnp.exp(ref_logits - rm_new), axis=-1, keepdims=True))
    m_refs[...] = rm_new

    @pl.when(j == pl.num_programs(1) - 1)
    def _():
        lse_pol = m_pol[...] + jnp.log(l_pol[...])
        lse_r = m_refs[...] + jnp.log(l_refs[...])
        # chosen-token logprob = max(logits) - logsumexp(logits)
        chosen_ref[...] = m_pol[...] - lse_pol
        # reference logprob at the policy's argmax token
        ref_chosen_ref[...] = ref_at_max[...] - lse_r
        lse_out_ref[...] = lse_pol


def _fused_linear_token_stats(x, weight, bias, ref_x, ref_weight, ref_bias,
                              row_tile=None, vocab_tile=None, mxu_dtype=None):
    """Runs the Pallas kernel. Returns (chosen_lp, ref_lp, mean_lp), each [B, T] f32."""
    B, T, H = x.shape
    V, H_w = weight.shape
    assert H_w == H
    N = B * T

    # ---- generation-aware tile / VMEM-limit selection -----------------------
    try:
        vmem_cap = int(pltpu.get_tpu_info().vmem_capacity_bytes)
    except Exception:
        vmem_cap = 64 << 20                         # conservative (v7x per-core)
    big_vmem = vmem_cap >= (96 << 20)               # v5e / v6e: 128 MiB per core
    if row_tile is None:
        row_tile = 512                              # AI ~ row_tile FLOPs/byte (weight re-streaming)
    if vocab_tile is None:
        vocab_tile = 1024 if big_vmem else 512      # 256-aligned for v6e/v7x MXU
    # Leave compiler headroom below physical VMEM (internal scratch, sems, temps).
    vmem_budget = int(0.8 * vmem_cap) if big_vmem else min(56 << 20, int(0.85 * vmem_cap))

    op_dtype = (jnp.dtype(mxu_dtype) if mxu_dtype is not None
                else jnp.promote_types(x.dtype, weight.dtype))
    itm = jnp.dtype(op_dtype).itemsize

    # Clamp tiles to the (padded) problem.
    row_tile = min(row_tile, _round_up(N, 8))
    vocab_tile = min(vocab_tile, _round_up(V, 128))

    def _budget(rt, vt):
        return (2 * 2 * rt * H * itm                # x, rx (double-buffered)
                + 2 * 2 * vt * H * itm              # w, rw (double-buffered)
                + 2 * 2 * vt * 4                    # biases
                + 4 * rt * vt * 4                   # logits/ref_logits + exp/where temps
                + 32 * rt * 4)                      # scratch + outputs

    while _budget(row_tile, vocab_tile) > vmem_budget:
        if vocab_tile > 256:
            vocab_tile = _round_up(vocab_tile // 2, 128)
        elif row_tile > 64:
            row_tile = _round_up(row_tile // 2, 8)
        else:
            break

    # Keep >= 2 row tiles so the "parallel" grid axis feeds both v7x TensorCores.
    while row_tile > 256 and _round_up(N, row_tile) // row_tile < 2:
        row_tile = _round_up(row_tile // 2, 8)

    assert row_tile % 8 == 0
    assert vocab_tile % 128 == 0

    N_pad = _round_up(N, row_tile)
    V_pad = _round_up(V, vocab_tile)
    vmem_limit = max(32 << 20, min(vmem_budget, vmem_cap))

    # ---- operand preparation -------------------------------------------------
    x2 = x.reshape(N, H).astype(op_dtype)
    rx2 = ref_x.reshape(N, H).astype(op_dtype)
    if N_pad != N:                                  # pad rows instead of shrinking row_tile
        x2 = jnp.pad(x2, ((0, N_pad - N), (0, 0)))
        rx2 = jnp.pad(rx2, ((0, N_pad - N), (0, 0)))

    # One-time [V, H] -> [H, V] transpose in HBM: avoids a per-step weight-tile
    # relayout inside the kernel (which would be re-paid N/row_tile times).
    wt = weight.T.astype(op_dtype)
    rwt = ref_weight.T.astype(op_dtype)
    b2 = bias.astype(jnp.float32)
    rb2 = ref_bias.astype(jnp.float32)
    if V_pad != V:
        # Padded vocab columns: zero weights + very negative bias -> they never
        # win the argmax and contribute exp(-1e30 - m) == 0 to the logsumexp.
        wt = jnp.pad(wt, ((0, 0), (0, V_pad - V)))
        rwt = jnp.pad(rwt, ((0, 0), (0, V_pad - V)))
        neg = jnp.full((V_pad - V,), -1e30, jnp.float32)
        b2 = jnp.concatenate([b2, neg])
        rb2 = jnp.concatenate([rb2, neg])
    b2 = b2.reshape(1, V_pad)
    rb2 = rb2.reshape(1, V_pad)

    grid = (N_pad // row_tile, V_pad // vocab_tile)
    cost = pl.CostEstimate(
        flops=4 * N_pad * V_pad * H,                          # two matmuls
        transcendentals=2 * N_pad * V_pad,                    # two exp streams
        bytes_accessed=(2 * grid[0] * V_pad * H * itm         # weights re-streamed per row tile
                        + 2 * N_pad * H * itm + 3 * N_pad * 4))

    chosen, ref_chosen, lse = pl.pallas_call(
        _grpo_fused_linear_kernel,
        out_shape=[jax.ShapeDtypeStruct((N_pad, 1), jnp.float32)] * 3,
        grid_spec=pltpu.PrefetchScalarGridSpec(
            num_scalar_prefetch=0,
            grid=grid,
            in_specs=[
                pl.BlockSpec((row_tile, H), lambda i, j: (i, 0)),
                pl.BlockSpec((H, vocab_tile), lambda i, j: (0, j)),
                pl.BlockSpec((1, vocab_tile), lambda i, j: (0, j)),
                pl.BlockSpec((row_tile, H), lambda i, j: (i, 0)),
                pl.BlockSpec((H, vocab_tile), lambda i, j: (0, j)),
                pl.BlockSpec((1, vocab_tile), lambda i, j: (0, j)),
            ],
            out_specs=[
                pl.BlockSpec((row_tile, 1), lambda i, j: (i, 0)),
                pl.BlockSpec((row_tile, 1), lambda i, j: (i, 0)),
                pl.BlockSpec((row_tile, 1), lambda i, j: (i, 0)),
            ],
            scratch_shapes=[pltpu.VMEM((row_tile, 1), jnp.float32)] * 5,
        ),
        compiler_params=pltpu.CompilerParams(
            dimension_semantics=("parallel", "arbitrary"),
            vmem_limit_bytes=vmem_limit),
        cost_estimate=cost,
    )(x2, wt, b2, rx2, rwt, rb2)

    chosen = chosen[:N, 0].reshape(B, T)
    ref_chosen = ref_chosen[:N, 0].reshape(B, T)
    lse = lse[:N, 0].reshape(B, T)

    # mean over vocab of log_probs, computed analytically (no per-tile XLU
    # reduction in the kernel):  mean_v(log_softmax) = mean_v(logits) - lse
    #                                                = (x @ sum_v W + sum_v b)/V - lse
    w_colsum = jnp.sum(weight.astype(jnp.float32), axis=0)               # [H]
    mean_logit = (jnp.einsum("nh,h->n", x.reshape(N, H).astype(jnp.float32),
                             w_colsum, precision=lax.Precision.HIGHEST)
                  + jnp.sum(bias.astype(jnp.float32))) / V
    mean_lp = mean_logit.reshape(B, T) - lse
    return chosen, ref_chosen, mean_lp


def _grpo_loss_from_token_stats(chosen_lp, ref_lp, mean_lp, attention_mask,
                                rewards, beta, num_generations):
    """GRPO loss + metrics, replicating the chunked accumulation of the base class."""
    B, T = chosen_lp.shape
    # NOTE: num_generations=1 gives per-group std over a single sample (NaN),
    # matching torch.std() semantics; use num_generations >= 2.
    chunks = max(1, B // num_generations)
    assert B % chunks == 0
    G = B // chunks
    mask = attention_mask.astype(jnp.float32)

    chosen_c = chosen_lp.reshape(chunks, G, T)
    ref_c = ref_lp.reshape(chunks, G, T)
    mean_lp_c = mean_lp.reshape(chunks, G, T)
    mask_c = mask.reshape(chunks, G, T)
    rewards_c = rewards.astype(jnp.float32).reshape(chunks, G)

    eps = 1e-4
    mean_r = jnp.mean(rewards_c, axis=1, keepdims=True)
    std_r = jnp.std(rewards_c, axis=1, ddof=1, keepdims=True)    # torch .std() is unbiased
    advantages = (rewards_c - mean_r) / (std_r + eps)             # [chunks, G]

    # ratio = exp(lp - lp.detach()) == 1 in the forward pass
    policy_loss = -advantages[:, :, None]                         # [chunks, G, T]
    delta = ref_c - chosen_c
    kl_div = jnp.exp(delta) - delta - 1.0
    per_token_loss = policy_loss + beta * kl_div
    masked_loss = per_token_loss * mask_c

    seq_lengths = jnp.maximum(jnp.sum(mask_c, axis=(1, 2)), 1.0)
    chunk_loss = jnp.sum(masked_loss, axis=(1, 2)) / seq_lengths
    loss = jnp.sum(chunk_loss)                                    # summed over chunks

    # scalar metrics are accumulated per chunk and averaged over chunks
    chosen_mean = jnp.mean(jnp.mean(chosen_c, axis=(1, 2)))
    chosen_std = jnp.mean(jnp.std(chosen_c.reshape(chunks, -1), axis=1, ddof=1))
    logprob_mean = jnp.mean(jnp.mean(mean_lp_c, axis=(1, 2)))
    kl_metric = jnp.mean(
        jnp.mean(jnp.sum(kl_div * mask_c, axis=2) / jnp.sum(mask_c, axis=2), axis=1))
    metrics = (chosen_mean, chosen_std, logprob_mean, kl_metric)
    return loss, metrics


def liger_fused_linear_grpo_loss(_input, lin_weight, attention_mask, rewards,
                                 bias=None, ref_input=None, ref_weight=None,
                                 ref_bias=None, beta=0.1, num_generations=1,
                                 row_tile=None, vocab_tile=None, mxu_dtype=None):
    """Forward pass of LigerFusedLinearGRPOLoss.

    mxu_dtype: pass jnp.bfloat16 to feed bf16 operands to the MXU (~3x fewer
    vmatmul passes and half the weight HBM traffic on v5e/v6e vs f32).
    """
    V = lin_weight.shape[0]
    if bias is None:
        bias = jnp.zeros((V,), lin_weight.dtype)
    if ref_input is None:
        # use_ref_model=False: ref logprobs == detached policy logprobs
        ref_input, ref_weight, ref_bias = _input, lin_weight, bias
    if ref_bias is None:
        ref_bias = jnp.zeros((ref_weight.shape[0],), ref_weight.dtype)

    chosen_lp, ref_lp, mean_lp = _fused_linear_token_stats(
        _input, lin_weight, bias, ref_input, ref_weight, ref_bias,
        row_tile=row_tile, vocab_tile=vocab_tile, mxu_dtype=mxu_dtype)
    return _grpo_loss_from_token_stats(
        chosen_lp, ref_lp, mean_lp, attention_mask, rewards, beta, num_generations)


def _reference(_input, lin_weight, attention_mask, rewards, bias,
               ref_input, ref_weight, ref_bias, beta, num_generations):
    """Pure-JAX reference for validation."""
    logits = jnp.einsum("bth,vh->btv", _input, lin_weight) + bias
    log_probs = jax.nn.log_softmax(logits.astype(jnp.float32), axis=-1)
    ref_logits = jnp.einsum("bth,vh->btv", ref_input, ref_weight) + ref_bias
    ref_log_probs = jax.nn.log_softmax(ref_logits.astype(jnp.float32), axis=-1)
    chosen = jnp.argmax(log_probs, axis=-1)
    chosen_lp = jnp.take_along_axis(log_probs, chosen[..., None], axis=-1)[..., 0]
    ref_lp = jnp.take_along_axis(ref_log_probs, chosen[..., None], axis=-1)[..., 0]
    mean_lp = jnp.mean(log_probs, axis=-1)
    return _grpo_loss_from_token_stats(
        chosen_lp, ref_lp, mean_lp, attention_mask, rewards, beta, num_generations)


if __name__ == "__main__":
    # Small deterministic shapes; T and V chosen to exercise row / vocab padding.
    B, T, H, V = 4, 33, 64, 500
    beta = 0.1
    num_generations = 2   # group size for GRPO advantage normalization

    key = jax.random.PRNGKey(0)
    ks = jax.random.split(key, 7)
    x = jax.random.normal(ks[0], (B, T, H), jnp.float32) * 0.5
    weight = jax.random.normal(ks[1], (V, H), jnp.float32) / jnp.sqrt(H)
    bias = jax.random.normal(ks[2], (V,), jnp.float32) * 0.01
    ref_x = x + 0.02 * jax.random.normal(ks[3], (B, T, H), jnp.float32)
    ref_weight = weight + 0.02 * jax.random.normal(ks[4], (V, H), jnp.float32)
    ref_bias = bias + 0.02 * jax.random.normal(ks[5], (V,), jnp.float32)
    rewards = jax.random.normal(ks[6], (B,), jnp.float32)
    lengths = jnp.array([T, T - 4, T - 8, T], jnp.int32)
    attention_mask = (jnp.arange(T)[None, :] < lengths[:, None]).astype(jnp.float32)

    loss, metrics = liger_fused_linear_grpo_loss(
        x, weight, attention_mask, rewards, bias,
        ref_x, ref_weight, ref_bias, beta=beta, num_generations=num_generations)
    loss = jax.block_until_ready(loss)

    ref_loss, ref_metrics = _reference(
        x, weight, attention_mask, rewards, bias,
        ref_x, ref_weight, ref_bias, beta, num_generations)

    assert jnp.allclose(loss, ref_loss, rtol=1e-4, atol=1e-4), (loss, ref_loss)
    for m, rm in zip(metrics, ref_metrics):
        assert jnp.allclose(m, rm, rtol=1e-4, atol=1e-4), (m, rm)

    # bf16 MXU-operand path (the recommended production configuration); just
    # verify it compiles, runs and produces a finite loss.
    loss_bf16, _ = liger_fused_linear_grpo_loss(
        x, weight, attention_mask, rewards, bias,
        ref_x, ref_weight, ref_bias, beta=beta, num_generations=num_generations,
        mxu_dtype=jnp.bfloat16)
    loss_bf16 = jax.block_until_ready(loss_bf16)
    assert bool(jnp.isfinite(loss_bf16)), loss_bf16

    print("KERNEL_OK")
</pallas_src>

<mosaic_0001>
module attributes {stable_mosaic.version = 11 : i64} {
  func.func @_grpo_fused_linear_kernel(%arg0: i32, %arg1: i32, %arg2: memref<136x64xf32, #tpu.memory_space<vmem>>, %arg3: memref<64x512xf32, #tpu.memory_space<vmem>>, %arg4: memref<1x512xf32, #tpu.memory_space<vmem>>, %arg5: memref<136x64xf32, #tpu.memory_space<vmem>>, %arg6: memref<64x512xf32, #tpu.memory_space<vmem>>, %arg7: memref<1x512xf32, #tpu.memory_space<vmem>>, %arg8: memref<136x1xf32, #tpu.memory_space<vmem>>, %arg9: memref<136x1xf32, #tpu.memory_space<vmem>>, %arg10: memref<136x1xf32, #tpu.memory_space<vmem>>, %arg11: memref<136x1xf32, #tpu.memory_space<vmem>>, %arg12: memref<136x1xf32, #tpu.memory_space<vmem>>, %arg13: memref<136x1xf32, #tpu.memory_space<vmem>>, %arg14: memref<136x1xf32, #tpu.memory_space<vmem>>, %arg15: memref<136x1xf32, #tpu.memory_space<vmem>>) attributes {dimension_semantics = [#tpu.dimension_semantics<parallel>, #tpu.dimension_semantics<arbitrary>], iteration_bounds = array<i64: 1, 1>, scalar_prefetch = 0 : i64, scratch_operands = 5 : i64, tpu.core_type = #tpu.core_type<tc>, window_params = [{transform_indices = @transform_0, window_bounds = array<i64: 136, 64>}, {transform_indices = @transform_1, window_bounds = array<i64: 64, 512>}, {transform_indices = @transform_2, window_bounds = array<i64: 1, 512>}, {transform_indices = @transform_3, window_bounds = array<i64: 136, 64>}, {transform_indices = @transform_4, window_bounds = array<i64: 64, 512>}, {transform_indices = @transform_5, window_bounds = array<i64: 1, 512>}, {transform_indices = @transform_6, window_bounds = array<i64: 136, 1>}, {transform_indices = @transform_7, window_bounds = array<i64: 136, 1>}, {transform_indices = @transform_8, window_bounds = array<i64: 136, 1>}]} {
    %c0_i32 = arith.constant 0 : i32
    %0 = arith.cmpi eq, %arg1, %c0_i32 : i32
    %1 = arith.extui %0 : i1 to i32
    %c0_i32_0 = arith.constant 0 : i32
    %2 = arith.cmpi ne, %1, %c0_i32_0 : i32
    scf.if %2 {
      %cst_41 = arith.constant 0xFF800000 : f32
      %60 = vector.broadcast %cst_41 : f32 to vector<136x1xf32>
      %c0_42 = arith.constant 0 : index
      %c0_43 = arith.constant 0 : index
      %61 = vector.load %arg11[%c0_42, %c0_43] : memref<136x1xf32, #tpu.memory_space<vmem>>, vector<136x1xf32>
      tpu.vector_store %arg11[%c0_42, %c0_43], %60 {strides = array<i32>} : memref<136x1xf32, #tpu.memory_space<vmem>>, vector<136x1xf32>,
      %cst_44 = arith.constant 0.000000e+00 : f32
      %62 = vector.broadcast %cst_44 : f32 to vector<136x1xf32>
      %c0_45 = arith.constant 0 : index
      %c0_46 = arith.constant 0 : index
      %63 = vector.load %arg12[%c0_45, %c0_46] : memref<136x1xf32, #tpu.memory_space<vmem>>, vector<136x1xf32>
      tpu.vector_store %arg12[%c0_45, %c0_46], %62 {strides = array<i32>} : memref<136x1xf32, #tpu.memory_space<vmem>>, vector<136x1xf32>,
      %cst_47 = arith.constant 0.000000e+00 : f32
      %64 = vector.broadcast %cst_47 : f32 to vector<136x1xf32>
      %c0_48 = arith.constant 0 : index
      %c0_49 = arith.constant 0 : index
      %65 = vector.load %arg13[%c0_48, %c0_49] : memref<136x1xf32, #tpu.memory_space<vmem>>, vector<136x1xf32>
      tpu.vector_store %arg13[%c0_48, %c0_49], %64 {strides = array<i32>} : memref<136x1xf32, #tpu.memory_space<vmem>>, vector<136x1xf32>,
      %cst_50 = arith.constant 0xFF800000 : f32
      %66 = vector.broadcast %cst_50 : f32 to vector<136x1xf32>
      %c0_51 = arith.constant 0 : index
      %c0_52 = arith.constant 0 : index
      %67 = vector.load %arg14[%c0_51, %c0_52] : memref<136x1xf32, #tpu.memory_space<vmem>>, vector<136x1xf32>
      tpu.vector_store %arg14[%c0_51, %c0_52], %66 {strides = array<i32>} : memref<136x1xf32, #tpu.memory_space<vmem>>, vector<136x1xf32>,
      %cst_53 = arith.constant 0.000000e+00 : f32
      %68 = vector.broadcast %cst_53 : f32 to vector<136x1xf32>
      %c0_54 = arith.constant 0 : index
      %c0_55 = arith.constant 0 : index
      %69 = vector.load %arg15[%c0_54, %c0_55] : memref<136x1xf32, #tpu.memory_space<vmem>>, vector<136x1xf32>
      tpu.vector_store %arg15[%c0_54, %c0_55], %68 {strides = array<i32>} : memref<136x1xf32, #tpu.memory_space<vmem>>, vector<136x1xf32>,
    } else {
    }
    %c0 = arith.constant 0 : index
    %c0_1 = arith.constant 0 : index
    %3 = vector.load %arg2[%c0, %c0_1] : memref<136x64xf32, #tpu.memory_space<vmem>>, vector<136x64xf32>
    %c0_2 = arith.constant 0 : index
    %c0_3 = arith.constant 0 : index
    %4 = vector.load %arg3[%c0_2, %c0_3] : memref<64x512xf32, #tpu.memory_space<vmem>>, vector<64x512xf32>
    %cst = arith.constant dense<0.000000e+00> : vector<136x512xf32>
    %5 = tpu.matmul %3, %4, %cst {dimension_numbers = #tpu.dot_dimension_numbers<[1], [0], [0], [1], [0, 0, 1, 1], [], []>} : vector<136x64xf32>, vector<64x512xf32>, vector<136x512xf32> -> vector<136x512xf32>
    %c0_4 = arith.constant 0 : index
    %c0_5 = arith.constant 0 : index
    %6 = vector.load %arg4[%c0_4, %c0_5] : memref<1x512xf32, #tpu.memory_space<vmem>>, vector<1x512xf32>
    %7 = vector.broadcast %6 : vector<1x512xf32> to vector<136x512xf32>
    %8 = arith.addf %5, %7 : vector<136x512xf32>
    %c0_6 = arith.constant 0 : index
    %c0_7 = arith.constant 0 : index
    %9 = vector.load %arg5[%c0_6, %c0_7] : memref<136x64xf32, #tpu.memory_space<vmem>>, vector<136x64xf32>
    %c0_8 = arith.constant 0 : index
    %c0_9 = arith.constant 0 : index
    %10 = vector.load %arg6[%c0_8, %c0_9] : memref<64x512xf32, #tpu.memory_space<vmem>>, vector<64x512xf32>
    %cst_10 = arith.constant dense<0.000000e+00> : vector<136x512xf32>
    %11 = tpu.matmul %9, %10, %cst_10 {dimension_numbers = #tpu.dot_dimension_numbers<[1], [0], [0], [1], [0, 0, 1, 1], [], []>} : vector<136x64xf32>, vector<64x512xf32>, vector<136x512xf32> -> vector<136x512xf32>
    %c0_11 = arith.constant 0 : index
    %c0_12 = arith.constant 0 : index
    %12 = vector.load %arg7[%c0_11, %c0_12] : memref<1x512xf32, #tpu.memory_space<vmem>>, vector<1x512xf32>
    %13 = vector.broadcast %12 : vector<1x512xf32> to vector<136x512xf32>
    %14 = arith.addf %11, %13 : vector<136x512xf32>
    %cst_13 = arith.constant dense<0xFF800000> : vector<136xf32>
    %15 = vector.multi_reduction <maximumf>, %8, %cst_13 [1] : vector<136x512xf32> to vector<136xf32>
    %16 = vector.shape_cast %15 : vector<136xf32> to vector<136x1xf32>
    %17 = vector.broadcast %16 : vector<136x1xf32> to vector<136x512xf32>
    %18 = arith.cmpf oeq, %8, %17 : vector<136x512xf32>
    %cst_14 = arith.constant 0xFF800000 : f32
    %19 = vector.broadcast %cst_14 : f32 to vector<136x512xf32>
    %20 = arith.select %18, %14, %19 : vector<136x512xi1>, vector<136x512xf32>
    %cst_15 = arith.constant dense<0xFF800000> : vector<136xf32>
    %21 = vector.multi_reduction <maximumf>, %20, %cst_15 [1] : vector<136x512xf32> to vector<136xf32>
    %22 = vector.shape_cast %21 : vector<136xf32> to vector<136x1xf32>
    %c0_16 = arith.constant 0 : index
    %c0_17 = arith.constant 0 : index
    %23 = vector.load %arg11[%c0_16, %c0_17] : memref<136x1xf32, #tpu.memory_space<vmem>>, vector<136x1xf32>
    %24 = arith.maximumf %23, %16 : vector<136x1xf32>
    %c0_18 = arith.constant 0 : index
    %c0_19 = arith.constant 0 : index
    %25 = vector.load %arg12[%c0_18, %c0_19] : memref<136x1xf32, #tpu.memory_space<vmem>>, vector<136x1xf32>
    %26 = arith.subf %23, %24 : vector<136x1xf32>
    %27 = math.exp %26 : vector<136x1xf32>
    %28 = arith.mulf %25, %27 : vector<136x1xf32>
    %29 = vector.broadcast %24 : vector<136x1xf32> to vector<136x512xf32>
    %30 = arith.subf %8, %29 : vector<136x512xf32>
    %31 = math.exp %30 : vector<136x512xf32>
    %cst_20 = arith.constant dense<0.000000e+00> : vector<136xf32>
    %32 = vector.multi_reduction <add>, %31, %cst_20 [1] : vector<136x512xf32> to vector<136xf32>
    %33 = vector.shape_cast %32 : vector<136xf32> to vector<136x1xf32>
    %34 = arith.addf %28, %33 : vector<136x1xf32>
    %c0_21 = arith.constant 0 : index
    %c0_22 = arith.constant 0 : index
    %35 = vector.load %arg12[%c0_21, %c0_22] : memref<136x1xf32, #tpu.memory_space<vmem>>, vector<136x1xf32>
    tpu.vector_store %arg12[%c0_21, %c0_22], %34 {strides = array<i32>} : memref<136x1xf32, #tpu.memory_space<vmem>>, vector<136x1xf32>,
    %36 = arith.cmpf ogt, %16, %23 : vector<136x1xf32>
    %c0_23 = arith.constant 0 : index
    %c0_24 = arith.constant 0 : index
    %37 = vector.load %arg13[%c0_23, %c0_24] : memref<136x1xf32, #tpu.memory_space<vmem>>, vector<136x1xf32>
    %38 = arith.select %36, %22, %37 : vector<136x1xi1>, vector<136x1xf32>
    %c0_25 = arith.constant 0 : index
    %c0_26 = arith.constant 0 : index
    %39 = vector.load %arg13[%c0_25, %c0_26] : memref<136x1xf32, #tpu.memory_space<vmem>>, vector<136x1xf32>
    tpu.vector_store %arg13[%c0_25, %c0_26], %38 {strides = array<i32>} : memref<136x1xf32, #tpu.memory_space<vmem>>, vector<136x1xf32>,
    %c0_27 = arith.constant 0 : index
    %c0_28 = arith.constant 0 : index
    %40 = vector.load %arg11[%c0_27, %c0_28] : memref<136x1xf32, #tpu.memory_space<vmem>>, vector<136x1xf32>
    tpu.vector_store %arg11[%c0_27, %c0_28], %24 {strides = array<i32>} : memref<136x1xf32, #tpu.memory_space<vmem>>, vector<136x1xf32>,
    %c0_29 = arith.constant 0 : index
    %c0_30 = arith.constant 0 : index
    %41 = vector.load %arg14[%c0_29, %c0_30] : memref<136x1xf32, #tpu.memory_space<vmem>>, vector<136x1xf32>
    %cst_31 = arith.constant dense<0xFF800000> : vector<136xf32>
    %42 = vector.multi_reduction <maximumf>, %14, %cst_31 [1] : vector<136x512xf32> to vector<136xf32>
    %43 = vector.shape_cast %42 : vector<136xf32> to vector<136x1xf32>
    %44 = arith.maximumf %41, %43 : vector<136x1xf32>
    %c0_32 = arith.constant 0 : index
    %c0_33 = arith.constant 0 : index
    %45 = vector.load %arg15[%c0_32, %c0_33] : memref<136x1xf32, #tpu.memory_space<vmem>>, vector<136x1xf32>
    %46 = arith.subf %41, %44 : vector<136x1xf32>
    %47 = math.exp %46 : vector<136x1xf32>
    %48 = arith.mulf %45, %47 : vector<136x1xf32>
    %49 = vector.broadcast %44 : vector<136x1xf32> to vector<136x512xf32>
    %50 = arith.subf %14, %49 : vector<136x512xf32>
    %51 = math.exp %50 : vector<136x512xf32>
    %cst_34 = arith.constant dense<0.000000e+00> : vector<136xf32>
    %52 = vector.multi_reduction <add>, %51, %cst_34 [1] : vector<136x512xf32> to vector<136xf32>
    %53 = vector.shape_cast %52 : vector<136xf32> to vector<136x1xf32>
    %54 = arith.addf %48, %53 : vector<136x1xf32>
    %c0_35 = arith.constant 0 : index
    %c0_36 = arith.constant 0 : index
    %55 = vector.load %arg15[%c0_35, %c0_36] : memref<136x1xf32, #tpu.memory_space<vmem>>, vector<136x1xf32>
    tpu.vector_store %arg15[%c0_35, %c0_36], %54 {strides = array<i32>} : memref<136x1xf32, #tpu.memory_space<vmem>>, vector<136x1xf32>,
    %c0_37 = arith.constant 0 : index
    %c0_38 = arith.constant 0 : index
    %56 = vector.load %arg14[%c0_37, %c0_38] : memref<136x1xf32, #tpu.memory_space<vmem>>, vector<136x1xf32>
    tpu.vector_store %arg14[%c0_37, %c0_38], %44 {strides = array<i32>} : memref<136x1xf32, #tpu.memory_space<vmem>>, vector<136x1xf32>,
    %c0_i32_39 = arith.constant 0 : i32
    %57 = arith.cmpi eq, %arg1, %c0_i32_39 : i32
    %58 = arith.extui %57 : i1 to i32
    %c0_i32_40 = arith.constant 0 : i32
    %59 = arith.cmpi ne, %58, %c0_i32_40 : i32
    scf.if %59 {
      %c0_41 = arith.constant 0 : index
      %c0_42 = arith.constant 0 : index
      %60 = vector.load %arg11[%c0_41, %c0_42] : memref<136x1xf32, #tpu.memory_space<vmem>>, vector<136x1xf32>
      %c0_43 = arith.constant 0 : index
      %c0_44 = arith.constant 0 : index
      %61 = vector.load %arg12[%c0_43, %c0_44] : memref<136x1xf32, #tpu.memory_space<vmem>>, vector<136x1xf32>
      %62 = math.log %61 : vector<136x1xf32>
      %63 = arith.addf %60, %62 : vector<136x1xf32>
      %c0_45 = arith.constant 0 : index
      %c0_46 = arith.constant 0 : index
      %64 = vector.load %arg14[%c0_45, %c0_46] : memref<136x1xf32, #tpu.memory_space<vmem>>, vector<136x1xf32>
      %c0_47 = arith.constant 0 : index
      %c0_48 = arith.constant 0 : index
      %65 = vector.load %arg15[%c0_47, %c0_48] : memref<136x1xf32, #tpu.memory_space<vmem>>, vector<136x1xf32>
      %66 = math.log %65 : vector<136x1xf32>
      %67 = arith.addf %64, %66 : vector<136x1xf32>
      %c0_49 = arith.constant 0 : index
      %c0_50 = arith.constant 0 : index
      %68 = vector.load %arg11[%c0_49, %c0_50] : memref<136x1xf32, #tpu.memory_space<vmem>>, vector<136x1xf32>
      %69 = arith.subf %68, %63 : vector<136x1xf32>
      %c0_51 = arith.constant 0 : index
      %c0_52 = arith.constant 0 : index
      %70 = vector.load %arg8[%c0_51, %c0_52] : memref<136x1xf32, #tpu.memory_space<vmem>>, vector<136x1xf32>
      tpu.vector_store %arg8[%c0_51, %c0_52], %69 {strides = array<i32>} : memref<136x1xf32, #tpu.memory_space<vmem>>, vector<136x1xf32>,
      %c0_53 = arith.constant 0 : index
      %c0_54 = arith.constant 0 : index
      %71 = vector.load %arg13[%c0_53, %c0_54] : memref<136x1xf32, #tpu.memory_space<vmem>>, vector<136x1xf32>
      %72 = arith.subf %71, %67 : vector<136x1xf32>
      %c0_55 = arith.constant 0 : index
      %c0_56 = arith.constant 0 : index
      %73 = vector.load %arg9[%c0_55, %c0_56] : memref<136x1xf32, #tpu.memory_space<vmem>>, vector<136x1xf32>
      tpu.vector_store %arg9[%c0_55, %c0_56], %72 {strides = array<i32>} : memref<136x1xf32, #tpu.memory_space<vmem>>, vector<136x1xf32>,
      %c0_57 = arith.constant 0 : index
      %c0_58 = arith.constant 0 : index
      %74 = vector.load %arg10[%c0_57, %c0_58] : memref<136x1xf32, #tpu.memory_space<vmem>>, vector<136x1xf32>
      tpu.vector_store %arg10[%c0_57, %c0_58], %63 {strides = array<i32>} : memref<136x1xf32, #tpu.memory_space<vmem>>, vector<136x1xf32>,
    } else {
    }
    return
  }
  func.func @transform_0(%arg0: i32, %arg1: i32) -> (i32, i32) {
    %c0_i32 = arith.constant 0 : i32
    %c0_i32_0 = arith.constant 0 : i32
    return %arg0, %c0_i32 : i32, i32
  }
  func.func @transform_1(%arg0: i32, %arg1: i32) -> (i32, i32) {
    %c0_i32 = arith.constant 0 : i32
    %c0_i32_0 = arith.constant 0 : i32
    return %c0_i32, %arg1 : i32, i32
  }
  func.func @transform_2(%arg0: i32, %arg1: i32) -> (i32, i32) {
    %c0_i32 = arith.constant 0 : i32
    %c0_i32_0 = arith.constant 0 : i32
    return %c0_i32, %arg1 : i32, i32
  }
  func.func @transform_3(%arg0: i32, %arg1: i32) -> (i32, i32) {
    %c0_i32 = arith.constant 0 : i32
    %c0_i32_0 = arith.constant 0 : i32
    return %arg0, %c0_i32 : i32, i32
  }
  func.func @transform_4(%arg0: i32, %arg1: i32) -> (i32, i32) {
    %c0_i32 = arith.constant 0 : i32
    %c0_i32_0 = arith.constant 0 : i32
    return %c0_i32, %arg1 : i32, i32
  }
  func.func @transform_5(%arg0: i32, %arg1: i32) -> (i32, i32) {
    %c0_i32 = arith.constant 0 : i32
    %c0_i32_0 = arith.constant 0 : i32
    return %c0_i32, %arg1 : i32, i32
  }
  func.func @transform_6(%arg0: i32, %arg1: i32) -> (i32, i32) {
    %c0_i32 = arith.constant 0 : i32
    %c0_i32_0 = arith.constant 0 : i32
    return %arg0, %c0_i32 : i32, i32
  }
  func.func @transform_7(%arg0: i32, %arg1: i32) -> (i32, i32) {
    %c0_i32 = arith.constant 0 : i32
    %c0_i32_0 = arith.constant 0 : i32
    return %arg0, %c0_i32 : i32, i32
  }
  func.func @transform_8(%arg0: i32, %arg1: i32) -> (i32, i32) {
    %c0_i32 = arith.constant 0 : i32
    %c0_i32_0 = arith.constant 0 : i32
    return %arg0, %c0_i32 : i32, i32
  }
}

</mosaic_0001>

<bundles_post_ra>
// kernel: tpu_custom_call.1
= control target key start
LH: loop header
LB: loop body
LE: loop exit
PB: predicated region body
PF: predicated region fallthrough
CT: control target
= control target key end

     0   :  { %v3345_v3 = vmov 0.0   ;;  %vm187_vm0 = vcmask 523264   ;;  %vm30_vm1 = vcmask 7168   ;;  %s5820_s1 = inlined_call_operand.vmem [shape: f32[64,512], index: 1, kind: input, shape index: {}]   ;;  %s5821_s0 = inlined_call_operand.vmem [shape: f32[136,64], index: 0, kind: input, shape index: {}]   ;;  %s5822_s4 = inlined_call_operand.vmem [shape: f32[64,512], index: 4, kind: input, shape index: {}]   ;;  %s5823_s3 = inlined_call_operand.vmem [shape: f32[136,64], index: 3, kind: input, shape index: {}]   ;;  %s5824_s2 = inlined_call_operand.vmem [shape: f32[1,512], index: 2, kind: input, shape index: {}]   ;;  %s5825_s5 = inlined_call_operand.vmem [shape: f32[1,512], index: 5, kind: input, shape index: {}]   ;;  %s5826_s8 = inlined_call_operand.vmem [shape: f32[136,1], index: 8, kind: output, shape index: {2}]   ;;  %s5827_s6 = inlined_call_operand.vmem [shape: f32[136,1], index: 6, kind: output, shape index: {0}]   ;;  %s5828_s7 = inlined_call_operand.vmem [shape: f32[136,1], index: 7, kind: output, shape index: {1}]  }
   0x1   :  { %v162_v0 = vld [vmem:[%s5820_s1 + $0xe8] sm:$0xff]  ;;  %v161_v1 = vld [vmem:[%s5820_s1 + $0xe0] sm:$0xff]  ;;  %303 = vmatprep.mubr.f32.mxu0 %v3345_v3  ;;  %470 = vmatprep.mubr.f32.mxu1 %v3345_v3  ;;  %v164_v5 = vld [vmem:[%s5820_s1 + $0xf8] sm:$0xff]  ;;  %48 = vst.msk [vmem:[#allocation3] sm:$0xff] %vm30_vm1, %v3345_v3 }
   0x2   :  { %v158_v2 = vld [vmem:[%s5820_s1 + $0xc8] sm:$0xff]  ;;  %255 = vmatprep.subr.mxu0 %v162_v0  ;;  %v157_v4 = vld [vmem:[%s5820_s1 + $0xc0] sm:$0xff]  ;;  %422 = vmatprep.subr.mxu1 %v164_v5  ;;  %v163_v7 = vld [vmem:[%s5820_s1 + $0xf0] sm:$0xff]  ;;  %49 = vst.msk [vmem:[#allocation3 + $0x8] sm:$0xff] %vm30_vm1, %v3345_v3 }
   0x3   :  { %256 = vmatpush1.msra.mxu0 %v161_v1  ;;  %v154_v6 = vld [vmem:[%s5820_s1 + $0xa8] sm:$0xff]  ;;  %v160_v8 = vld [vmem:[%s5820_s1 + $0xd8] sm:$0xff]  ;;  %423 = vmatpush1.msra.mxu1 %v163_v7  ;;  %v153_v9 = vld [vmem:[%s5820_s1 + $0xa0] sm:$0xff]  ;;  %50 = vst.msk [vmem:[#allocation3 + $0x10] sm:$0xff] %vm30_vm1, %v3345_v3 }
   0x4   :  { %257 = vmatprep.subr.mxu0 %v158_v2  ;;  %v159_v10 = vld [vmem:[%s5820_s1 + $0xd0] sm:$0xff]  ;;  %424 = vmatprep.subr.mxu1 %v160_v8  ;;  %v150_v11 = vld [vmem:[%s5820_s1 + $0x88] sm:$0xff]  ;;  %v156_v12 = vld [vmem:[%s5820_s1 + $0xb8] sm:$0xff]  ;;  %51 = vst.msk [vmem:[#allocation3 + $0x18] sm:$0xff] %vm30_vm1, %v3345_v3 }
   0x5   :  { %258 = vmatpush1.msra.mxu0 %v157_v4  ;;  %v155_v13 = vld [vmem:[%s5820_s1 + $0xb0] sm:$0xff]  ;;  %425 = vmatpush1.msra.mxu1 %v159_v10  ;;  %v149_v14 = vld [vmem:[%s5820_s1 + $0x80] sm:$0xff]  ;;  %v152_v15 = vld [vmem:[%s5820_s1 + $0x98] sm:$0xff]  ;;  %52 = vst.msk [vmem:[#allocation3 + $0x20] sm:$0xff] %vm30_vm1, %v3345_v3 }
   0x6   :  { %259 = vmatprep.subr.mxu0 %v154_v6  ;;  %426 = vmatprep.subr.mxu1 %v156_v12  ;;  %v146_v16 = vld [vmem:[%s5820_s1 + $0x68] sm:$0xff]  ;;  %v151_v17 = vld [vmem:[%s5820_s1 + $0x90] sm:$0xff]  ;;  %v145_v18 = vld [vmem:[%s5820_s1 + $0x60] sm:$0xff]  ;;  %53 = vst.msk [vmem:[#allocation3 + $0x28] sm:$0xff] %vm30_vm1, %v3345_v3 }
   0x7   :  { %260 = vmatpush1.msra.mxu0 %v153_v9  ;;  %427 = vmatpush1.msra.mxu1 %v155_v13  ;;  %v148_v19 = vld [vmem:[%s5820_s1 + $0x78] sm:$0xff]  ;;  %v142_v20 = vld [vmem:[%s5820_s1 + $0x48] sm:$0xff]  ;;  %v147_v21 = vld [vmem:[%s5820_s1 + $0x70] sm:$0xff]  ;;  %54 = vst.msk [vmem:[#allocation3 + $0x30] sm:$0xff] %vm30_vm1, %v3345_v3 }
   0x8   :  { %261 = vmatprep.subr.mxu0 %v150_v11  ;;  %428 = vmatprep.subr.mxu1 %v152_v15  ;;  %v141_v22 = vld [vmem:[%s5820_s1 + $0x40] sm:$0xff]  ;;  %v144_v23 = vld [vmem:[%s5820_s1 + $0x58] sm:$0xff]  ;;  %v138_v24 = vld [vmem:[%s5820_s1 + $0x28] sm:$0xff]  ;;  %55 = vst.msk [vmem:[#allocation3 + $0x38] sm:$0xff] %vm30_vm1, %v3345_v3 }
   0x9   :  { %262 = vmatpush1.msra.mxu0 %v149_v14  ;;  %429 = vmatpush1.msra.mxu1 %v151_v17  ;;  %v143_v25 = vld [vmem:[%s5820_s1 + $0x50] sm:$0xff]  ;;  %v137_v26 = vld [vmem:[%s5820_s1 + $0x20] sm:$0xff]  ;;  %v140_v27 = vld [vmem:[%s5820_s1 + $0x38] sm:$0xff]  ;;  %56 = vst.msk [vmem:[#allocation3 + $0x40] sm:$0xff] %vm30_vm1, %v3345_v3 }
   0xa   :  { %263 = vmatprep.subr.mxu0 %v146_v16  ;;  %430 = vmatprep.subr.mxu1 %v148_v19  ;;  %v134_v28 = vld [vmem:[%s5820_s1 + $0x8] sm:$0xff]  ;;  %v139_v29 = vld [vmem:[%s5820_s1 + $0x30] sm:$0xff]  ;;  %v133_v30 = vld [vmem:[%s5820_s1] sm:$0xff]  ;;  %57 = vst.msk [vmem:[#allocation3 + $0x48] sm:$0xff] %vm30_vm1, %v3345_v3 }
   0xb   :  { %264 = vmatpush1.msra.mxu0 %v145_v18  ;;  %431 = vmatpush1.msra.mxu1 %v147_v21  ;;  %v136_v31 = vld [vmem:[%s5820_s1 + $0x18] sm:$0xff]  ;;  %v116_v32 = vld [vmem:[%s5821_s0] sm:$0xff]  ;;  %v619_v33 = vld [vmem:[%s5822_s4 + $0xe8] sm:$0xff]  ;;  %58 = vst.msk [vmem:[#allocation3 + $0x50] sm:$0xff] %vm30_vm1, %v3345_v3 }
   0xc   :  { %265 = vmatprep.subr.mxu0 %v142_v20  ;;  %432 = vmatprep.subr.mxu1 %v144_v23  ;;  %v618_v34 = vld [vmem:[%s5822_s4 + $0xe0] sm:$0xff]  ;;  %v135_v35 = vld [vmem:[%s5820_s1 + $0x10] sm:$0xff]  ;;  %v621_v36 = vld [vmem:[%s5822_s4 + $0xf8] sm:$0xff]  ;;  %59 = vst.msk [vmem:[#allocation3 + $0x58] sm:$0xff] %vm30_vm1, %v3345_v3 }
   0xd   :  { %266 = vmatpush1.msra.mxu0 %v141_v22  ;;  %433 = vmatpush1.msra.mxu1 %v143_v25  ;;  %v117_v37 = vld [vmem:[%s5821_s0 + $0x8] sm:$0xff]  ;;  %v620_v38 = vld [vmem:[%s5822_s4 + $0xf0] sm:$0xff]  ;;  %v614_v40 = vld [vmem:[%s5822_s4 + $0xc0] sm:$0xff]  ;;  %60 = vst.msk [vmem:[#allocation3 + $0x60] sm:$0xff] %vm30_vm1, %v3345_v3 }
   0xe   :  { %267 = vmatprep.subr.mxu0 %v138_v24  ;;  %434 = vmatprep.subr.mxu1 %v140_v27  ;;  %v615_v39 = vld [vmem:[%s5822_s4 + $0xc8] sm:$0xff]  ;;  %v617_v41 = vld [vmem:[%s5822_s4 + $0xd8] sm:$0xff]  ;;  %v118_v42 = vld [vmem:[%s5821_s0 + $0x10] sm:$0xff]  ;;  %61 = vst.msk [vmem:[#allocation3 + $0x68] sm:$0xff] %vm30_vm1, %v3345_v3 }
   0xf   :  { %268 = vmatpush1.msra.mxu0 %v137_v26  ;;  %435 = vmatpush1.msra.mxu1 %v139_v29  ;;  %v616_v43 = vld [vmem:[%s5822_s4 + $0xd0] sm:$0xff]  ;;  %v611_v44 = vld [vmem:[%s5822_s4 + $0xa8] sm:$0xff]  ;;  %v610_v45 = vld [vmem:[%s5822_s4 + $0xa0] sm:$0xff]  ;;  %62 = vst.msk [vmem:[#allocation3 + $0x70] sm:$0xff] %vm30_vm1, %v3345_v3 }
  0x10   :  { %269 = vmatprep.subr.mxu0 %v134_v28  ;;  %436 = vmatprep.subr.mxu1 %v136_v31  ;;  %v613_v46 = vld [vmem:[%s5822_s4 + $0xb8] sm:$0xff]  ;;  %v612_v48 = vld [vmem:[%s5822_s4 + $0xb0] sm:$0xff]  ;;  %v607_v49 = vld [vmem:[%s5822_s4 + $0x88] sm:$0xff]  ;;  %63 = vst.msk [vmem:[#allocation3 + $0x78] sm:$0xff] %vm30_vm1, %v3345_v3 }
  0x11   :  { %270 = vmatpush1.msra.mxu0 %v133_v30  ;;  %437 = vmatpush1.msra.mxu1 %v135_v35  ;;  %v119_v47 = vld [vmem:[%s5821_s0 + $0x18] sm:$0xff]  ;;  %v606_v50 = vld [vmem:[%s5822_s4 + $0x80] sm:$0xff]  ;;  %v608_v53 = vld [vmem:[%s5822_s4 + $0x90] sm:$0xff]  ;;  %64 = vst.msk [vmem:[#allocation3 + $0x80] sm:$0xff] %vm30_vm1, %v3345_v3 }
  0x12   :  { %2864 = vmatmul.mubr.msk.f32.vlgmr.msra.gmra.mxu0 %vm187_vm0, %v116_v32  ;;  %711 = vmatprep.subr.mxu0 %v619_v33  ;;  %v609_v51 = vld [vmem:[%s5822_s4 + $0x98] sm:$0xff]  ;;  %v120_v52 = vld [vmem:[%s5821_s0 + $0x20] sm:$0xff]  ;;  %v603_v54 = vld [vmem:[%s5822_s4 + $0x68] sm:$0xff]  ;;  %65 = vst.msk [vmem:[#allocation4] sm:$0xff] %vm30_vm1, %v3345_v3 }
  0x13   :  { %712 = vmatpush1.msra.mxu0 %v618_v34  ;;  %309 = vmatprep.mubr.f32.mxu0 %v3345_v3  ;;  %v602_v55 = vld [vmem:[%s5822_s4 + $0x60] sm:$0xff]  ;;  %v605_v56 = vld [vmem:[%s5822_s4 + $0x78] sm:$0xff]  ;;  %v121_v57 = vld [vmem:[%s5821_s0 + $0x28] sm:$0xff]  ;;  %66 = vst.msk [vmem:[#allocation4 + $0x8] sm:$0xff] %vm30_vm1, %v3345_v3 }
  0x14   :  { %2881 = vmatmul.mubr.msk.f32.vlgmr.msra.gmra.mxu1 %vm187_vm0, %v116_v32  ;;  %878 = vmatprep.subr.mxu1 %v621_v36  ;;  %v604_v58 = vld [vmem:[%s5822_s4 + $0x70] sm:$0xff]  ;;  %v599_v59 = vld [vmem:[%s5822_s4 + $0x48] sm:$0xff]  ;;  %v598_v60 = vld [vmem:[%s5822_s4 + $0x40] sm:$0xff]  ;;  %v167_v36 = vlaneseq  ;;  %67 = vst.msk [vmem:[#allocation4 + $0x10] sm:$0xff] %vm30_vm1, %v3345_v3 }
  0x15   :  { %476 = vmatprep.mubr.f32.mxu1 %v3345_v3  ;;  %879 = vmatpush1.msra.mxu1 %v620_v38  ;;  %v601_v61 = vld [vmem:[%s5822_s4 + $0x58] sm:$0xff]  ;;  %v122_v62 = vld [vmem:[%s5821_s0 + $0x30] sm:$0xff]  ;;  %v595_v0 = vld [vmem:[%s5822_s4 + $0x28] sm:$0xff]  ;;  %68 = vst.msk [vmem:[#allocation4 + $0x18] sm:$0xff] %vm30_vm1, %v3345_v3 }
  0x16   :  { %2865 = vmatmul.mubr.msk.f32.gmra.mxu0 %vm187_vm0, %v117_v37  ;;  %713 = vmatprep.subr.mxu0 %v615_v39  ;;  %v600_v63 = vld [vmem:[%s5822_s4 + $0x50] sm:$0xff]  ;;  %v594_v1 = vld [vmem:[%s5822_s4 + $0x20] sm:$0xff]  ;;  %v597_v2 = vld [vmem:[%s5822_s4 + $0x38] sm:$0xff]  ;;  %69 = vst.msk [vmem:[#allocation4 + $0x20] sm:$0xff] %vm30_vm1, %v3345_v3 }
  0x17   :  { %315 = vmatprep.mubr.f32.mxu0 %v3345_v3  ;;  %714 = vmatpush1.msra.mxu0 %v614_v40  ;;  %v123_v4 = vld [vmem:[%s5821_s0 + $0x38] sm:$0xff]  ;;  %v596_v5 = vld [vmem:[%s5822_s4 + $0x30] sm:$0xff]  ;;  %v591_v6 = vld [vmem:[%s5822_s4 + $0x8] sm:$0xff]  ;;  %70 = vst.msk [vmem:[#allocation4 + $0x28] sm:$0xff] %vm30_vm1, %v3345_v3 }
  0x18   :  { %2882 = vmatmul.mubr.msk.f32.gmra.mxu1 %vm187_vm0, %v117_v37  ;;  %880 = vmatprep.subr.mxu1 %v617_v41  ;;  %v590_v7 = vld [vmem:[%s5822_s4] sm:$0xff]  ;;  %v593_v8 = vld [vmem:[%s5822_s4 + $0x18] sm:$0xff]  ;;  %v592_v10 = vld [vmem:[%s5822_s4 + $0x10] sm:$0xff]  ;;  %v3823_v37 = vshrl.u32 %v167_v36, 7  ;;  %71 = vst.msk [vmem:[#allocation4 + $0x30] sm:$0xff] %vm30_vm1, %v3345_v3 }
  0x19   :  { %482 = vmatprep.mubr.f32.mxu1 %v3345_v3  ;;  %881 = vmatpush1.msra.mxu1 %v616_v43  ;;  %v124_v9 = vld [vmem:[%s5821_s0 + $0x40] sm:$0xff]  ;;  %v125_v11 = vld [vmem:[%s5821_s0 + $0x48] sm:$0xff]  ;;  %v126_v12 = vld [vmem:[%s5821_s0 + $0x50] sm:$0xff]  ;;  %72 = vst.msk [vmem:[#allocation4 + $0x38] sm:$0xff] %vm30_vm1, %v3345_v3 }
  0x1a   :  { %2866 = vmatmul.mubr.msk.f32.gmra.mxu0 %vm187_vm0, %v118_v42  ;;  %715 = vmatprep.subr.mxu0 %v611_v44  ;;  %v127_v13 = vld [vmem:[%s5821_s0 + $0x58] sm:$0xff]  ;;  %v128_v14 = vld [vmem:[%s5821_s0 + $0x60] sm:$0xff]  ;;  %v129_v15 = vld [vmem:[%s5821_s0 + $0x68] sm:$0xff]  ;;  %v5832_v38 = vsub.s32 0, %v3823_v37  ;;  %v5831_v39 = vsub.s32 1, %v3823_v37  ;;  %v5830_v40 = vsub.s32 2, %v3823_v37 }
  0x1b   :  { %321 = vmatprep.mubr.f32.mxu0 %v3345_v3  ;;  %716 = vmatpush1.msra.mxu0 %v610_v45  ;;  %v130_v16 = vld [vmem:[%s5821_s0 + $0x70] sm:$0xff]  ;;  %v131_v17 = vld [vmem:[%s5821_s0 + $0x78] sm:$0xff]  ;;  %v132_v18 = vld [vmem:[%s5821_s0 + $0x80] sm:$0xff]  ;;  %v5829_v45 = vsub.s32 3, %v3823_v37  ;;  %73 = vst.msk [vmem:[#allocation4 + $0x40] sm:$0xff] %vm30_vm1, %v3345_v3 }
  0x1c   :  { %2883 = vmatmul.mubr.msk.f32.gmra.mxu1 %vm187_vm0, %v118_v42  ;;  %882 = vmatprep.subr.mxu1 %v613_v46  ;;  %v573_v19 = vld [vmem:[%s5823_s3] sm:$0xff]  ;;  %v574_v20 = vld [vmem:[%s5823_s3 + $0x8] sm:$0xff]  ;;  %v575_v21 = vld [vmem:[%s5823_s3 + $0x10] sm:$0xff]  ;;  %74 = vst.msk [vmem:[#allocation4 + $0x48] sm:$0xff] %vm30_vm1, %v3345_v3 }
  0x1d   :  { %488 = vmatprep.mubr.f32.mxu1 %v3345_v3  ;;  %883 = vmatpush1.msra.mxu1 %v612_v48  ;;  %v576_v22 = vld [vmem:[%s5823_s3 + $0x18] sm:$0xff]  ;;  %v577_v23 = vld [vmem:[%s5823_s3 + $0x20] sm:$0xff]  ;;  %v578_v24 = vld [vmem:[%s5823_s3 + $0x28] sm:$0xff]  ;;  %75 = vst.msk [vmem:[#allocation4 + $0x50] sm:$0xff] %vm30_vm1, %v3345_v3 }
  0x1e   :  { %2867 = vmatmul.mubr.msk.f32.gmra.mxu0 %vm187_vm0, %v119_v47  ;;  %717 = vmatprep.subr.mxu0 %v607_v49  ;;  %v579_v25 = vld [vmem:[%s5823_s3 + $0x30] sm:$0xff]  ;;  %v580_v26 = vld [vmem:[%s5823_s3 + $0x38] sm:$0xff]  ;;  %v581_v27 = vld [vmem:[%s5823_s3 + $0x40] sm:$0xff]  ;;  %76 = vst.msk [vmem:[#allocation4 + $0x58] sm:$0xff] %vm30_vm1, %v3345_v3 }
  0x1f   :  { %327 = vmatprep.mubr.f32.mxu0 %v3345_v3  ;;  %718 = vmatpush1.msra.mxu0 %v606_v50  ;;  %v582_v28 = vld [vmem:[%s5823_s3 + $0x48] sm:$0xff]  ;;  %v583_v29 = vld [vmem:[%s5823_s3 + $0x50] sm:$0xff]  ;;  %v584_v30 = vld [vmem:[%s5823_s3 + $0x58] sm:$0xff]  ;;  %77 = vst.msk [vmem:[#allocation4 + $0x60] sm:$0xff] %vm30_vm1, %v3345_v3 }
  0x20   :  { %2884 = vmatmul.mubr.msk.f32.gmra.mxu1 %vm187_vm0, %v119_v47  ;;  %884 = vmatprep.subr.mxu1 %v609_v51  ;;  %v585_v31 = vld [vmem:[%s5823_s3 + $0x60] sm:$0xff]  ;;  %v586_v32 = vld [vmem:[%s5823_s3 + $0x68] sm:$0xff]  ;;  %v587_v33 = vld [vmem:[%s5823_s3 + $0x70] sm:$0xff]  ;;  %78 = vst.msk [vmem:[#allocation4 + $0x68] sm:$0xff] %vm30_vm1, %v3345_v3 }
  0x21   :  { %494 = vmatprep.mubr.f32.mxu1 %v3345_v3  ;;  %885 = vmatpush1.msra.mxu1 %v608_v53  ;;  %v588_v34 = vld [vmem:[%s5823_s3 + $0x78] sm:$0xff]  ;;  %v589_v35 = vld [vmem:[%s5823_s3 + $0x80] sm:$0xff]  ;;  %79 = vst.msk [vmem:[#allocation4 + $0x70] sm:$0xff] %vm30_vm1, %v3345_v3  ;;  %80 = vst.msk [vmem:[#allocation4 + $0x78] sm:$0xff] %vm30_vm1, %v3345_v3 }
  0x22   :  { %2868 = vmatmul.mubr.msk.f32.gmra.mxu0 %vm187_vm0, %v120_v52  ;;  %719 = vmatprep.subr.mxu0 %v603_v54  ;;  %v165_v41 = vld [vmem:[%s5824_s2] sm:$0xf]  ;;  %81 = vst.msk [vmem:[#allocation4 + $0x80] sm:$0xff] %vm30_vm1, %v3345_v3  ;;  %99 = vst.msk [vmem:[#allocation6] sm:$0xff] %vm30_vm1, %v3345_v3 }
  0x23   :  { %333 = vmatprep.mubr.f32.mxu0 %v3345_v3  ;;  %720 = vmatpush1.msra.mxu0 %v602_v55  ;;  %v3833_v42 = vrot.slane %v165_v41, %v5832_v38  ;;  %v3837_v43 = vrot.slane %v165_v41, %v5831_v39  ;;  %v3841_v44 = vrot.slane %v165_v41, %v5830_v40 }
  0x24   :  { %2885 = vmatmul.mubr.msk.f32.gmra.mxu1 %vm187_vm0, %v120_v52  ;;  %886 = vmatprep.subr.mxu1 %v605_v56  ;;  %v3855_v52 = vrot.slane %v165_v41, %v5829_v45  ;;  %100 = vst.msk [vmem:[#allocation6 + $0x8] sm:$0xff] %vm30_vm1, %v3345_v3  ;;  %101 = vst.msk [vmem:[#allocation6 + $0x10] sm:$0xff] %vm30_vm1, %v3345_v3 }
  0x25   :  { %500 = vmatprep.mubr.f32.mxu1 %v3345_v3  ;;  %887 = vmatpush1.msra.mxu1 %v604_v58  ;;  %102 = vst.msk [vmem:[#allocation6 + $0x18] sm:$0xff] %vm30_vm1, %v3345_v3  ;;  %103 = vst.msk [vmem:[#allocation6 + $0x20] sm:$0xff] %vm30_vm1, %v3345_v3 }
  0x26   :  { %2869 = vmatmul.mubr.msk.f32.gmra.mxu0 %vm187_vm0, %v121_v57  ;;  %721 = vmatprep.subr.mxu0 %v599_v59  ;;  %104 = vst.msk [vmem:[#allocation6 + $0x28] sm:$0xff] %vm30_vm1, %v3345_v3  ;;  %105 = vst.msk [vmem:[#allocation6 + $0x30] sm:$0xff] %vm30_vm1, %v3345_v3 }
  0x27   :  { %339 = vmatprep.mubr.f32.mxu0 %v3345_v3  ;;  %722 = vmatpush1.msra.mxu0 %v598_v60  ;;  %106 = vst.msk [vmem:[#allocation6 + $0x38] sm:$0xff] %vm30_vm1, %v3345_v3  ;;  %107 = vst.msk [vmem:[#allocation6 + $0x40] sm:$0xff] %vm30_vm1, %v3345_v3 }
  0x28   :  { %2886 = vmatmul.mubr.msk.f32.gmra.mxu1 %vm187_vm0, %v121_v57  ;;  %888 = vmatprep.subr.mxu1 %v601_v61  ;;  %108 = vst.msk [vmem:[#allocation6 + $0x48] sm:$0xff] %vm30_vm1, %v3345_v3  ;;  %109 = vst.msk [vmem:[#allocation6 + $0x50] sm:$0xff] %vm30_vm1, %v3345_v3 }
  0x29   :  { %506 = vmatprep.mubr.f32.mxu1 %v3345_v3  ;;  %889 = vmatpush1.msra.mxu1 %v600_v63  ;;  %110 = vst.msk [vmem:[#allocation6 + $0x58] sm:$0xff] %vm30_vm1, %v3345_v3  ;;  %111 = vst.msk [vmem:[#allocation6 + $0x60] sm:$0xff] %vm30_vm1, %v3345_v3 }
  0x2a   :  { %2870 = vmatmul.mubr.msk.f32.gmra.mxu0 %vm187_vm0, %v122_v62  ;;  %723 = vmatprep.subr.mxu0 %v595_v0  ;;  %112 = vst.msk [vmem:[#allocation6 + $0x68] sm:$0xff] %vm30_vm1, %v3345_v3  ;;  %113 = vst.msk [vmem:[#allocation6 + $0x70] sm:$0xff] %vm30_vm1, %v3345_v3 }
  0x2b   :  { %345 = vmatprep.mubr.f32.mxu0 %v3345_v3  ;;  %724 = vmatpush1.msra.mxu0 %v594_v1  ;;  %114 = vst.msk [vmem:[#allocation6 + $0x78] sm:$0xff] %vm30_vm1, %v3345_v3  ;;  %115 = vst.msk [vmem:[#allocation6 + $0x80] sm:$0xff] %vm30_vm1, %v3345_v3 }
  0x2c   :  { %2887 = vmatmul.mubr.msk.f32.gmra.mxu1 %vm187_vm0, %v122_v62  ;;  %890 = vmatprep.subr.mxu1 %v597_v2 }
  0x2d   :  { %512 = vmatprep.mubr.f32.mxu1 %v3345_v3  ;;  %891 = vmatpush1.msra.mxu1 %v596_v5 }
  0x2e   :  { %2871 = vmatmul.mubr.msk.f32.gmra.mxu0 %vm187_vm0, %v123_v4  ;;  %725 = vmatprep.subr.mxu0 %v591_v6 }
  0x2f   :  { %351 = vmatprep.mubr.f32.mxu0 %v3345_v3  ;;  %726 = vmatpush1.msra.mxu0 %v590_v7 }
  0x30   :  { %2888 = vmatmul.mubr.msk.f32.gmra.mxu1 %vm187_vm0, %v123_v4  ;;  %892 = vmatprep.subr.mxu1 %v593_v8 }
  0x31   :  { %518 = vmatprep.mubr.f32.mxu1 %v3345_v3  ;;  %893 = vmatpush1.msra.mxu1 %v592_v10 }
  0x32   :  { %2872 = vmatmul.mubr.msk.f32.gmra.mxu0 %vm187_vm0, %v124_v9 }
  0x33   :  { %357 = vmatprep.mubr.f32.mxu0 %v3345_v3 }
  0x34   :  { %2889 = vmatmul.mubr.msk.f32.gmra.mxu1 %vm187_vm0, %v124_v9 }
  0x35   :  { %524 = vmatprep.mubr.f32.mxu1 %v3345_v3 }
  0x36   :  { %2873 = vmatmul.mubr.msk.f32.gmra.mxu0 %vm187_vm0, %v125_v11 }
  0x37   :  { %363 = vmatprep.mubr.f32.mxu0 %v3345_v3 }
  0x38   :  { %2890 = vmatmul.mubr.msk.f32.gmra.mxu1 %vm187_vm0, %v125_v11 }
  0x39   :  { %530 = vmatprep.mubr.f32.mxu1 %v3345_v3 }
  0x3a   :  { %2874 = vmatmul.mubr.msk.f32.gmra.mxu0 %vm187_vm0, %v126_v12 }
  0x3b   :  { %369 = vmatprep.mubr.f32.mxu0 %v3345_v3 }
  0x3c   :  { %2891 = vmatmul.mubr.msk.f32.gmra.mxu1 %vm187_vm0, %v126_v12 }
  0x3d   :  { %536 = vmatprep.mubr.f32.mxu1 %v3345_v3 }
  0x3e   :  { %2875 = vmatmul.mubr.msk.f32.gmra.mxu0 %vm187_vm0, %v127_v13 }
  0x3f   :  { %375 = vmatprep.mubr.f32.mxu0 %v3345_v3 }
  0x40   :  { %2892 = vmatmul.mubr.msk.f32.gmra.mxu1 %vm187_vm0, %v127_v13 }
  0x41   :  { %542 = vmatprep.mubr.f32.mxu1 %v3345_v3 }
  0x42   :  { %2876 = vmatmul.mubr.msk.f32.gmra.mxu0 %vm187_vm0, %v128_v14 }
  0x43   :  { %381 = vmatprep.mubr.f32.mxu0 %v3345_v3 }
  0x44   :  { %2893 = vmatmul.mubr.msk.f32.gmra.mxu1 %vm187_vm0, %v128_v14 }
  0x45   :  { %548 = vmatprep.mubr.f32.mxu1 %v3345_v3 }
  0x46   :  { %2877 = vmatmul.mubr.msk.f32.gmra.mxu0 %vm187_vm0, %v129_v15 }
  0x47   :  { %387 = vmatprep.mubr.f32.mxu0 %v3345_v3 }
  0x48   :  { %2894 = vmatmul.mubr.msk.f32.gmra.mxu1 %vm187_vm0, %v129_v15  ;;  %v3346_v15 = vmov -inf  }
  0x49   :  { %554 = vmatprep.mubr.f32.mxu1 %v3345_v3  ;;  %32 = vst.msk [vmem:[#allocation2 + $0x8] sm:$0xff] %vm30_vm1, %v3346_v15  ;;  %31 = vst.msk [vmem:[#allocation2] sm:$0xff] %vm30_vm1, %v3346_v15 }
  0x4a   :  { %2878 = vmatmul.mubr.msk.f32.gmra.mxu0 %vm187_vm0, %v130_v16  ;;  %33 = vst.msk [vmem:[#allocation2 + $0x10] sm:$0xff] %vm30_vm1, %v3346_v15  ;;  %34 = vst.msk [vmem:[#allocation2 + $0x18] sm:$0xff] %vm30_vm1, %v3346_v15 }
  0x4b   :  { %393 = vmatprep.mubr.f32.mxu0 %v3345_v3  ;;  %35 = vst.msk [vmem:[#allocation2 + $0x20] sm:$0xff] %vm30_vm1, %v3346_v15  ;;  %36 = vst.msk [vmem:[#allocation2 + $0x28] sm:$0xff] %vm30_vm1, %v3346_v15 }
  0x4c   :  { %2895 = vmatmul.mubr.msk.f32.gmra.mxu1 %vm187_vm0, %v130_v16  ;;  %37 = vst.msk [vmem:[#allocation2 + $0x30] sm:$0xff] %vm30_vm1, %v3346_v15  ;;  %38 = vst.msk [vmem:[#allocation2 + $0x38] sm:$0xff] %vm30_vm1, %v3346_v15 }
  0x4d   :  { %560 = vmatprep.mubr.f32.mxu1 %v3345_v3  ;;  %39 = vst.msk [vmem:[#allocation2 + $0x40] sm:$0xff] %vm30_vm1, %v3346_v15  ;;  %40 = vst.msk [vmem:[#allocation2 + $0x48] sm:$0xff] %vm30_vm1, %v3346_v15 }
  0x4e   :  { %2879 = vmatmul.mubr.msk.f32.gmra.mxu0 %vm187_vm0, %v131_v17  ;;  %41 = vst.msk [vmem:[#allocation2 + $0x50] sm:$0xff] %vm30_vm1, %v3346_v15  ;;  %42 = vst.msk [vmem:[#allocation2 + $0x58] sm:$0xff] %vm30_vm1, %v3346_v15 }
  0x4f   :  { %399 = vmatprep.mubr.f32.mxu0 %v3345_v3  ;;  %43 = vst.msk [vmem:[#allocation2 + $0x60] sm:$0xff] %vm30_vm1, %v3346_v15  ;;  %44 = vst.msk [vmem:[#allocation2 + $0x68] sm:$0xff] %vm30_vm1, %v3346_v15 }
  0x50   :  { %2896 = vmatmul.mubr.msk.f32.gmra.mxu1 %vm187_vm0, %v131_v17  ;;  %45 = vst.msk [vmem:[#allocation2 + $0x70] sm:$0xff] %vm30_vm1, %v3346_v15  ;;  %46 = vst.msk [vmem:[#allocation2 + $0x78] sm:$0xff] %vm30_vm1, %v3346_v15 }
  0x51   :  { %566 = vmatprep.mubr.f32.mxu1 %v3345_v3  ;;  %47 = vst.msk [vmem:[#allocation2 + $0x80] sm:$0xff] %vm30_vm1, %v3346_v15  ;;  %82 = vst.msk [vmem:[#allocation5] sm:$0xff] %vm30_vm1, %v3346_v15 }
  0x52   :  { %2880 = vmatmul.mubr.msk.f32.gmra.mxu0 %vm187_vm0, %v132_v18  ;;  %83 = vst.msk [vmem:[#allocation5 + $0x8] sm:$0xff] %vm30_vm1, %v3346_v15  ;;  %84 = vst.msk [vmem:[#allocation5 + $0x10] sm:$0xff] %vm30_vm1, %v3346_v15 }
  0x53   :  { %759 = vmatprep.mubr.f32.mxu0 %v3345_v3  ;;  %85 = vst.msk [vmem:[#allocation5 + $0x18] sm:$0xff] %vm30_vm1, %v3346_v15  ;;  %86 = vst.msk [vmem:[#allocation5 + $0x20] sm:$0xff] %vm30_vm1, %v3346_v15 }
  0x54   :  { %2897 = vmatmul.mubr.msk.f32.gmra.mxu1 %vm187_vm0, %v132_v18  ;;  %87 = vst.msk [vmem:[#allocation5 + $0x28] sm:$0xff] %vm30_vm1, %v3346_v15  ;;  %88 = vst.msk [vmem:[#allocation5 + $0x30] sm:$0xff] %vm30_vm1, %v3346_v15 }
  0x55   :  { %926 = vmatprep.mubr.f32.mxu1 %v3345_v3  ;;  %89 = vst.msk [vmem:[#allocation5 + $0x38] sm:$0xff] %vm30_vm1, %v3346_v15  ;;  %90 = vst.msk [vmem:[#allocation5 + $0x40] sm:$0xff] %vm30_vm1, %v3346_v15 }
  0x56   :  { %2898 = vmatmul.mubr.msk.f32.vlgmr.msra.gmra.mxu0 %vm187_vm0, %v573_v19  ;;  %91 = vst.msk [vmem:[#allocation5 + $0x48] sm:$0xff] %vm30_vm1, %v3346_v15  ;;  %92 = vst.msk [vmem:[#allocation5 + $0x50] sm:$0xff] %vm30_vm1, %v3346_v15 }
  0x57   :  { %765 = vmatprep.mubr.f32.mxu0 %v3345_v3  ;;  %93 = vst.msk [vmem:[#allocation5 + $0x58] sm:$0xff] %vm30_vm1, %v3346_v15  ;;  %94 = vst.msk [vmem:[#allocation5 + $0x60] sm:$0xff] %vm30_vm1, %v3346_v15 }
  0x58   :  { %2915 = vmatmul.mubr.msk.f32.vlgmr.msra.gmra.mxu1 %vm187_vm0, %v573_v19  ;;  %95 = vst.msk [vmem:[#allocation5 + $0x68] sm:$0xff] %vm30_vm1, %v3346_v15  ;;  %96 = vst.msk [vmem:[#allocation5 + $0x70] sm:$0xff] %vm30_vm1, %v3346_v15 }
  0x59   :  { %932 = vmatprep.mubr.f32.mxu1 %v3345_v3  ;;  %97 = vst.msk [vmem:[#allocation5 + $0x78] sm:$0xff] %vm30_vm1, %v3346_v15  ;;  %98 = vst.msk [vmem:[#allocation5 + $0x80] sm:$0xff] %vm30_vm1, %v3346_v15 }
  0x5a   :  { %2899 = vmatmul.mubr.msk.f32.gmra.mxu0 %vm187_vm0, %v574_v20 }
  0x5b   :  { %771 = vmatprep.mubr.f32.mxu0 %v3345_v3 }
  0x5c   :  { %2916 = vmatmul.mubr.msk.f32.gmra.mxu1 %vm187_vm0, %v574_v20 }
  0x5d   :  { %938 = vmatprep.mubr.f32.mxu1 %v3345_v3 }
  0x5e   :  { %2900 = vmatmul.mubr.msk.f32.gmra.mxu0 %vm187_vm0, %v575_v21 }
  0x5f   :  { %777 = vmatprep.mubr.f32.mxu0 %v3345_v3 }
  0x60   :  { %2917 = vmatmul.mubr.msk.f32.gmra.mxu1 %vm187_vm0, %v575_v21 }
  0x61   :  { %944 = vmatprep.mubr.f32.mxu1 %v3345_v3 }
  0x62   :  { %2901 = vmatmul.mubr.msk.f32.gmra.mxu0 %vm187_vm0, %v576_v22 }
  0x63   :  { %783 = vmatprep.mubr.f32.mxu0 %v3345_v3 }
  0x64   :  { %2918 = vmatmul.mubr.msk.f32.gmra.mxu1 %vm187_vm0, %v576_v22 }
  0x65   :  { %950 = vmatprep.mubr.f32.mxu1 %v3345_v3 }
  0x66   :  { %2902 = vmatmul.mubr.msk.f32.gmra.mxu0 %vm187_vm0, %v577_v23 }
  0x67   :  { %789 = vmatprep.mubr.f32.mxu0 %v3345_v3 }
  0x68   :  { %2919 = vmatmul.mubr.msk.f32.gmra.mxu1 %vm187_vm0, %v577_v23 }
  0x69   :  { %956 = vmatprep.mubr.f32.mxu1 %v3345_v3 }
  0x6a   :  { %2903 = vmatmul.mubr.msk.f32.gmra.mxu0 %vm187_vm0, %v578_v24 }
  0x6b   :  { %795 = vmatprep.mubr.f32.mxu0 %v3345_v3 }
  0x6c   :  { %2920 = vmatmul.mubr.msk.f32.gmra.mxu1 %vm187_vm0, %v578_v24 }
  0x6d   :  { %962 = vmatprep.mubr.f32.mxu1 %v3345_v3 }
  0x6e   :  { %2904 = vmatmul.mubr.msk.f32.gmra.mxu0 %vm187_vm0, %v579_v25 }
  0x6f   :  { %801 = vmatprep.mubr.f32.mxu0 %v3345_v3 }
  0x70   :  { %2921 = vmatmul.mubr.msk.f32.gmra.mxu1 %vm187_vm0, %v579_v25 }
  0x71   :  { %968 = vmatprep.mubr.f32.mxu1 %v3345_v3 }
  0x72   :  { %2905 = vmatmul.mubr.msk.f32.gmra.mxu0 %vm187_vm0, %v580_v26 }
  0x73   :  { %807 = vmatprep.mubr.f32.mxu0 %v3345_v3 }
  0x74   :  { %2922 = vmatmul.mubr.msk.f32.gmra.mxu1 %vm187_vm0, %v580_v26 }
  0x75   :  { %974 = vmatprep.mubr.f32.mxu1 %v3345_v3 }
  0x76   :  { %2906 = vmatmul.mubr.msk.f32.gmra.mxu0 %vm187_vm0, %v581_v27 }
  0x77   :  { %813 = vmatprep.mubr.f32.mxu0 %v3345_v3 }
  0x78   :  { %2923 = vmatmul.mubr.msk.f32.gmra.mxu1 %vm187_vm0, %v581_v27 }
  0x79   :  { %980 = vmatprep.mubr.f32.mxu1 %v3345_v3 }
  0x7a   :  { %2907 = vmatmul.mubr.msk.f32.gmra.mxu0 %vm187_vm0, %v582_v28 }
  0x7b   :  { %819 = vmatprep.mubr.f32.mxu0 %v3345_v3 }
  0x7c   :  { %2924 = vmatmul.mubr.msk.f32.gmra.mxu1 %vm187_vm0, %v582_v28 }
  0x7d   :  { %986 = vmatprep.mubr.f32.mxu1 %v3345_v3 }
  0x7e   :  { %2908 = vmatmul.mubr.msk.f32.gmra.mxu0 %vm187_vm0, %v583_v29 }
  0x7f   :  { %825 = vmatprep.mubr.f32.mxu0 %v3345_v3 }
  0x80   :  { %2925 = vmatmul.mubr.msk.f32.gmra.mxu1 %vm187_vm0, %v583_v29 }
  0x81   :  { %992 = vmatprep.mubr.f32.mxu1 %v3345_v3 }
  0x82   :  { %2909 = vmatmul.mubr.msk.f32.gmra.mxu0 %vm187_vm0, %v584_v30 }
  0x83   :  { %831 = vmatprep.mubr.f32.mxu0 %v3345_v3 }
  0x84   :  { %2926 = vmatmul.mubr.msk.f32.gmra.mxu1 %vm187_vm0, %v584_v30 }
  0x85   :  { %998 = vmatprep.mubr.f32.mxu1 %v3345_v3 }
  0x86   :  { %2910 = vmatmul.mubr.msk.f32.gmra.mxu0 %vm187_vm0, %v585_v31 }
  0x87   :  { %837 = vmatprep.mubr.f32.mxu0 %v3345_v3 }
  0x88   :  { %2927 = vmatmul.mubr.msk.f32.gmra.mxu1 %vm187_vm0, %v585_v31 }
  0x89   :  { %1004 = vmatprep.mubr.f32.mxu1 %v3345_v3 }
  0x8a   :  { %2911 = vmatmul.mubr.msk.f32.gmra.mxu0 %vm187_vm0, %v586_v32 }
  0x8b   :  { %843 = vmatprep.mubr.f32.mxu0 %v3345_v3 }
  0x8c   :  { %2928 = vmatmul.mubr.msk.f32.gmra.mxu1 %vm187_vm0, %v586_v32 }
  0x8d   :  { %1010 = vmatprep.mubr.f32.mxu1 %v3345_v3 }
  0x8e   :  { %2912 = vmatmul.mubr.msk.f32.gmra.mxu0 %vm187_vm0, %v587_v33 }
  0x8f   :  { %849 = vmatprep.mubr.f32.mxu0 %v3345_v3 }
  0x90   :  { %2929 = vmatmul.mubr.msk.f32.gmra.mxu1 %vm187_vm0, %v587_v33 }
  0x91   :  { %1016 = vmatprep.mubr.f32.mxu1 %v3345_v3 }
  0x92   :  { %2913 = vmatmul.mubr.msk.f32.gmra.mxu0 %vm187_vm0, %v588_v34 }
  0x93   :  { %855 = vmatprep.mubr.f32.mxu0 %v3345_v3 }
  0x94   :  { %2930 = vmatmul.mubr.msk.f32.gmra.mxu1 %vm187_vm0, %v588_v34 }
  0x95   :  { %1022 = vmatprep.mubr.f32.mxu1 %v3345_v3 }
  0x96   :  { %2914 = vmatmul.mubr.msk.f32.gmra.mxu0 %vm187_vm0, %v589_v35 }
  0x98   :  { %2931 = vmatmul.mubr.msk.f32.gmra.mxu1 %vm187_vm0, %v589_v35 }
  0xd2   :  { %v305_v46 = vpop.f32.mrf.mxu0 }
  0xd3   :  { %v3845_v49 = vadd.f32 %v305_v46, %v3833_v42 }
  0xd4   :  { %v307_v47 = vpop.f32.mrf.mxu0  ;;  %v472_v48 = vpop.f32.mrf.mxu1 }
  0xd5   :  { %6145 = vst [vmem:[#allocation7_spill] sm:$0xff] %v3845_v49  ;;  %v3848_v50 = vadd.f32 %v307_v47, %v3837_v43  ;;  %v3851_v51 = vadd.f32 %v472_v48, %v3841_v44 }
  0xd6   :  { %v311_v53 = vpop.f32.mrf.mxu0  ;;  %v474_v54 = vpop.f32.mrf.mxu1 }
  0xd7   :  { %6146 = vst [vmem:[#allocation8_spill] sm:$0xff] %v3848_v50  ;;  %v1029_v55 = vmax.f32 %v3845_v49, %v3848_v50  ;;  %v3860_v56 = vadd.f32 %v311_v53, %v3833_v42  ;;  %v3863_v59 = vadd.f32 %v474_v54, %v3855_v52 }
  0xd8   :  { %v313_v57 = vpop.f32.mrf.mxu0  ;;  %v478_v58 = vpop.f32.mrf.mxu1 }
  0xd9   :  { %6147 = vst [vmem:[#allocation9_spill] sm:$0xff] %v3860_v56  ;;  %v3866_v60 = vadd.f32 %v313_v57, %v3837_v43  ;;  %v3869_v61 = vadd.f32 %v478_v58, %v3841_v44  ;;  %v1030_v62 = vmax.f32 %v1029_v55, %v3851_v51 }
  0xda   :  { %v317_v63 = vpop.f32.mrf.mxu0  ;;  %v480_v0 = vpop.f32.mrf.mxu1 }
  0xdb   :  { %6148 = vst [vmem:[#allocation10_spill] sm:$0xff] %v3866_v60  ;;  %6149 = vst [vmem:[#allocation11_spill] sm:$0xff] %v3869_v61  ;;  %v1034_v1 = vmax.f32 %v3860_v56, %v3866_v60  ;;  %v1031_v2 = vmax.f32 %v1030_v62, %v3863_v59  ;;  %v3876_v4 = vadd.f32 %v317_v63, %v3833_v42 }
  0xdc   :  { %v319_v5 = vpop.f32.mrf.mxu0  ;;  %v484_v6 = vpop.f32.mrf.mxu1  ;;  %v3879_v7 = vadd.f32 %v480_v0, %v3855_v52 }
  0xdd   :  { %v3882_v8 = vadd.f32 %v319_v5, %v3837_v43  ;;  %v3885_v9 = vadd.f32 %v484_v6, %v3841_v44  ;;  %1032 = vmax.xlane.f32.xlu0 %v1031_v2  ;;  %v3888_v10 = vmax.f32 %v1034_v1, %v3869_v61 }
  0xde   :  { %6150 = vst [vmem:[#allocation12_spill] sm:$0xff] %v3879_v7  ;;  %v3890_v11 = vpop.f32.mrf.mxu0  ;;  %v3892_v12 = vpop.f32.mrf.mxu1 }
  0xdf   :  { %v1036_v13 = vmax.f32 %v3888_v10, %v3879_v7  ;;  %v1039_v14 = vmax.f32 %v3876_v4, %v3882_v8  ;;  %v4070_v16 = vadd.f32 %v3890_v11, %v3833_v42  ;;  %v4074_v19 = vadd.f32 %v3892_v12, %v3855_v52 }
  0xe0   :  { %v325_v17 = vpop.f32.mrf.mxu0  ;;  %v490_v18 = vpop.f32.mrf.mxu1 }
  0xe1   :  { %6151 = vst [vmem:[#allocation13_spill] sm:$0xff] %v4074_v19  ;;  %v4077_v20 = vadd.f32 %v325_v17, %v3837_v43  ;;  %v4080_v21 = vadd.f32 %v490_v18, %v3841_v44  ;;  %1037 = vmax.xlane.f32.xlu0 %v1036_v13  ;;  %v1040_v3 = vmax.f32 %v1039_v14, %v3885_v9  ;;  %v3347_v17 = vmov 0  }
  0xe2   :  { %v329_v22 = vpop.f32.mrf.mxu0  ;;  %v492_v23 = vpop.f32.mrf.mxu1  ;;  %2936 = vset.pattern.permute.xlu1 %v3347_v17  ;;  %2935 = vset.pattern.permute.xlu0 %v3347_v17 }
  0xe3   :  { %6152 = vst [vmem:[#allocation14_spill] sm:$0xff] %v4077_v20  ;;  %v1044_v24 = vmax.f32 %v4070_v16, %v4077_v20  ;;  %v1041_v25 = vmax.f32 %v1040_v3, %v4074_v19  ;;  %v4093_v26 = vadd.f32 %v329_v22, %v3833_v42  ;;  %v4096_v29 = vadd.f32 %v492_v23, %v3855_v52 }
  0xe4   :  { %v331_v27 = vpop.f32.mrf.mxu0  ;;  %v496_v28 = vpop.f32.mrf.mxu1 }
  0xe5   :  { %6153 = vst [vmem:[#allocation15_spill] sm:$0xff] %v4093_v26  ;;  %6154 = vst [vmem:[#allocation16_spill] sm:$0xff] %v4096_v29  ;;  %v4099_v30 = vadd.f32 %v331_v27, %v3837_v43  ;;  %v4102_v31 = vadd.f32 %v496_v28, %v3841_v44  ;;  %1042 = vmax.xlane.f32.xlu1 %v1041_v25  ;;  %v1045_v32 = vmax.f32 %v1044_v24, %v4080_v21 }
  0xe6   :  { %v335_v33 = vpop.f32.mrf.mxu0  ;;  %v498_v34 = vpop.f32.mrf.mxu1 }
  0xe7   :  { %6155 = vst [vmem:[#allocation17_spill] sm:$0xff] %v4099_v30  ;;  %6156 = vst [vmem:[#allocation18_spill] sm:$0xff] %v4102_v31  ;;  %v1049_v35 = vmax.f32 %v4093_v26, %v4099_v30  ;;  %v1046_v36 = vmax.f32 %v1045_v32, %v4096_v29  ;;  %v4109_v41 = vadd.f32 %v335_v33, %v3833_v42 }
  0xe8   :  { %v337_v46 = vpop.f32.mrf.mxu0  ;;  %v502_v47 = vpop.f32.mrf.mxu1  ;;  %v4112_v48 = vadd.f32 %v498_v34, %v3855_v52 }
  0xe9   :  { %v4115_v53 = vadd.f32 %v337_v46, %v3837_v43  ;;  %v4118_v54 = vadd.f32 %v502_v47, %v3841_v44  ;;  %1047 = vmax.xlane.f32.xlu1 %v1046_v36  ;;  %v1050_v55 = vmax.f32 %v1049_v35, %v4102_v31 }
  0xea   :  { %6157 = vst [vmem:[#allocation19_spill] sm:$0xff] %v4112_v48  ;;  %v341_v57 = vpop.f32.mrf.mxu0  ;;  %v504_v58 = vpop.f32.mrf.mxu1 }
  0xeb   :  { %6158 = vst [vmem:[#allocation20_spill] sm:$0xff] %v4118_v54  ;;  %v1054_v62 = vmax.f32 %v4109_v41, %v4115_v53  ;;  %v1051_v63 = vmax.f32 %v1050_v55, %v4112_v48  ;;  %v4125_v0 = vadd.f32 %v341_v57, %v3833_v42  ;;  %v4128_v5 = vadd.f32 %v504_v58, %v3855_v52 }
  0xec   :  { %v343_v1 = vpop.f32.mrf.mxu0  ;;  %v508_v2 = vpop.f32.mrf.mxu1 }
  0xed   :  { %6159 = vst [vmem:[#allocation21_spill] sm:$0xff] %v4125_v0  ;;  %6160 = vst [vmem:[#allocation22_spill] sm:$0xff] %v4128_v5  ;;  %v4131_v6 = vadd.f32 %v343_v1, %v3837_v43  ;;  %v4134_v10 = vadd.f32 %v508_v2, %v3841_v44  ;;  %1052 = vmax.xlane.f32.xlu0 %v1051_v63  ;;  %v1055_v11 = vmax.f32 %v1054_v62, %v4118_v54 }
  0xee   :  { %v347_v12 = vpop.f32.mrf.mxu0  ;;  %v510_v13 = vpop.f32.mrf.mxu1 }
  0xef   :  { %6161 = vst [vmem:[#allocation23_spill] sm:$0xff] %v4131_v6  ;;  %6162 = vst [vmem:[#allocation24_spill] sm:$0xff] %v4134_v10  ;;  %v1059_v14 = vmax.f32 %v4125_v0, %v4131_v6  ;;  %v1056_v15 = vmax.f32 %v1055_v11, %v4128_v5  ;;  %v4141_v18 = vadd.f32 %v347_v12, %v3833_v42 }
  0xf0   :  { %v349_v3 = vpop.f32.mrf.mxu0  ;;  %v514_v22 = vpop.f32.mrf.mxu1  ;;  %v4144_v23 = vadd.f32 %v510_v13, %v3855_v52 }
  0xf1   :  { %6163 = vst [vmem:[#allocation25_spill] sm:$0xff] %v4141_v18  ;;  %v4147_v24 = vadd.f32 %v349_v3, %v3837_v43  ;;  %v4150_v25 = vadd.f32 %v514_v22, %v3841_v44  ;;  %1057 = vmax.xlane.f32.xlu1 %v1056_v15  ;;  %v1060_v27 = vmax.f32 %v1059_v14, %v4134_v10 }
  0xf2   :  { %6164 = vst [vmem:[#allocation26_spill] sm:$0xff] %v4144_v23  ;;  %v353_v28 = vpop.f32.mrf.mxu0  ;;  %v516_v32 = vpop.f32.mrf.mxu1 }
  0xf3   :  { %6165 = vst [vmem:[#allocation27_spill] sm:$0xff] %v4147_v24  ;;  %6166 = vst [vmem:[#allocation28_spill] sm:$0xff] %v4150_v25  ;;  %v1064_v33 = vmax.f32 %v4141_v18, %v4147_v24  ;;  %v1061_v34 = vmax.f32 %v1060_v27, %v4144_v23  ;;  %v4157_v35 = vadd.f32 %v353_v28, %v3833_v42 }
  0xf4   :  { %v355_v36 = vpop.f32.mrf.mxu0  ;;  %v520_v46 = vpop.f32.mrf.mxu1  ;;  %v4160_v47 = vadd.f32 %v516_v32, %v3855_v52 }
  0xf5   :  { %6167 = vst [vmem:[#allocation29_spill] sm:$0xff] %v4157_v35  ;;  %v4163_v55 = vadd.f32 %v355_v36, %v3837_v43  ;;  %v4166_v57 = vadd.f32 %v520_v46, %v3841_v44  ;;  %1062 = vmax.xlane.f32.xlu0 %v1061_v34  ;;  %v1065_v58 = vmax.f32 %v1064_v33, %v4150_v25 }
  0xf6   :  { %6168 = vst [vmem:[#allocation30_spill] sm:$0xff] %v4160_v47  ;;  %v359_v62 = vpop.f32.mrf.mxu0  ;;  %v522_v63 = vpop.f32.mrf.mxu1 }
  0xf7   :  { %6169 = vst [vmem:[#allocation31_spill] sm:$0xff] %v4163_v55  ;;  %6170 = vst [vmem:[#allocation32_spill] sm:$0xff] %v4166_v57  ;;  %v1069_v1 = vmax.f32 %v4157_v35, %v4163_v55  ;;  %v1066_v2 = vmax.f32 %v1065_v58, %v4160_v47  ;;  %v4173_v11 = vadd.f32 %v359_v62, %v3833_v42 }
  0xf8   :  { %v361_v12 = vpop.f32.mrf.mxu0  ;;  %v526_v13 = vpop.f32.mrf.mxu1  ;;  %v4176_v14 = vadd.f32 %v522_v63, %v3855_v52 }
  0xf9   :  { %6171 = vst [vmem:[#allocation33_spill] sm:$0xff] %v4173_v11  ;;  %v4179_v15 = vadd.f32 %v361_v12, %v3837_v43  ;;  %v4182_v17 = vadd.f32 %v526_v13, %v3841_v44  ;;  %1067 = vmax.xlane.f32.xlu1 %v1066_v2  ;;  %v1070_v3 = vmax.f32 %v1069_v1, %v4166_v57 }
  0xfa   :  { %6172 = vst [vmem:[#allocation34_spill] sm:$0xff] %v4176_v14  ;;  %v365_v22 = vpop.f32.mrf.mxu0  ;;  %v528_v27 = vpop.f32.mrf.mxu1 }
  0xfb   :  { %6173 = vst [vmem:[#allocation35_spill] sm:$0xff] %v4179_v15  ;;  %6174 = vst [vmem:[#allocation36_spill] sm:$0xff] %v4182_v17  ;;  %v1074_v28 = vmax.f32 %v4173_v11, %v4179_v15  ;;  %v1071_v32 = vmax.f32 %v1070_v3, %v4176_v14  ;;  %v4189_v33 = vadd.f32 %v365_v22, %v3833_v42 }
  0xfc   :  { %v367_v34 = vpop.f32.mrf.mxu0  ;;  %v532_v36 = vpop.f32.mrf.mxu1  ;;  %v4192_v46 = vadd.f32 %v528_v27, %v3855_v52 }
  0xfd   :  { %6175 = vst [vmem:[#allocation37_spill] sm:$0xff] %v4189_v33  ;;  %v4195_v58 = vadd.f32 %v367_v34, %v3837_v43  ;;  %v4198_v62 = vadd.f32 %v532_v36, %v3841_v44  ;;  %1072 = vmax.xlane.f32.xlu0 %v1071_v32  ;;  %v1075_v63 = vmax.f32 %v1074_v28, %v4182_v17 }
  0xfe   :  { %6176 = vst [vmem:[#allocation38_spill] sm:$0xff] %v4192_v46  ;;  %v371_v1 = vpop.f32.mrf.mxu0  ;;  %v534_v2 = vpop.f32.mrf.mxu1 }
  0xff   :  { %6177 = vst [vmem:[#allocation39_spill] sm:$0xff] %v4195_v58  ;;  %6178 = vst [vmem:[#allocation40_spill] sm:$0xff] %v4198_v62  ;;  %v1079_v12 = vmax.f32 %v4189_v33, %v4195_v58  ;;  %v1076_v13 = vmax.f32 %v1075_v63, %v4192_v46  ;;  %v4205_v3 = vadd.f32 %v371_v1, %v3833_v42 }
 0x100   :  { %v373_v22 = vpop.f32.mrf.mxu0  ;;  %v538_v27 = vpop.f32.mrf.mxu1  ;;  %v4208_v34 = vadd.f32 %v534_v2, %v3855_v52 }
 0x101   :  { %6179 = vst [vmem:[#allocation41_spill] sm:$0xff] %v4205_v3  ;;  %v4211_v36 = vadd.f32 %v373_v22, %v3837_v43  ;;  %v4214_v28 = vadd.f32 %v538_v27, %v3841_v44  ;;  %1077 = vmax.xlane.f32.xlu1 %v1076_v13  ;;  %v1080_v32 = vmax.f32 %v1079_v12, %v4198_v62 }
 0x102   :  { %6180 = vst [vmem:[#allocation42_spill] sm:$0xff] %v4208_v34  ;;  %v377_v45 = vpop.f32.mrf.mxu0  ;;  %v540_v40 = vpop.f32.mrf.mxu1 }
 0x103   :  { %6181 = vst [vmem:[#allocation43_spill] sm:$0xff] %v4211_v36  ;;  %6182 = vst [vmem:[#allocation44_spill] sm:$0xff] %v4214_v28  ;;  %v1084_v63 = vmax.f32 %v4205_v3, %v4211_v36  ;;  %v1081_v1 = vmax.f32 %v1080_v32, %v4208_v34  ;;  %v4221_v39 = vadd.f32 %v377_v45, %v3833_v42 }
 0x104   :  { %v379_v2 = vpop.f32.mrf.mxu0  ;;  %v544_v38 = vpop.f32.mrf.mxu1  ;;  %v4224_v22 = vadd.f32 %v540_v40, %v3855_v52 }
 0x105   :  { %6183 = vst [vmem:[#allocation45_spill] sm:$0xff] %v4221_v39  ;;  %v4227_v27 = vadd.f32 %v379_v2, %v3837_v43  ;;  %v4230_v12 = vadd.f32 %v544_v38, %v3841_v44  ;;  %1082 = vmax.xlane.f32.xlu0 %v1081_v1  ;;  %v1085_v13 = vmax.f32 %v1084_v63, %v4214_v28 }
 0x106   :  { %6184 = vst [vmem:[#allocation46_spill] sm:$0xff] %v4224_v22  ;;  %v383_v62 = vpop.f32.mrf.mxu0  ;;  %v546_v58 = vpop.f32.mrf.mxu1 }
 0x107   :  { %6185 = vst [vmem:[#allocation47_spill] sm:$0xff] %v4227_v27  ;;  %6186 = vst [vmem:[#allocation48_spill] sm:$0xff] %v4230_v12  ;;  %v1089_v45 = vmax.f32 %v4221_v39, %v4227_v27  ;;  %v1086_v32 = vmax.f32 %v1085_v13, %v4224_v22  ;;  %v4237_v34 = vadd.f32 %v383_v62, %v3833_v42 }
 0x108   :  { %v385_v40 = vpop.f32.mrf.mxu0  ;;  %v550_v33 = vpop.f32.mrf.mxu1  ;;  %v4240_v2 = vadd.f32 %v546_v58, %v3855_v52 }
 0x109   :  { %6187 = vst [vmem:[#allocation49_spill] sm:$0xff] %v4237_v34  ;;  %v4243_v38 = vadd.f32 %v385_v40, %v3837_v43  ;;  %v4246_v63 = vadd.f32 %v550_v33, %v3841_v44  ;;  %1087 = vmax.xlane.f32.xlu1 %v1086_v32  ;;  %v1090_v1 = vmax.f32 %v1089_v45, %v4230_v12 }
 0x10a   :  { %6188 = vst [vmem:[#allocation50_spill] sm:$0xff] %v4240_v2  ;;  %v389_v27 = vpop.f32.mrf.mxu0  ;;  %v552_v39 = vpop.f32.mrf.mxu1 }
 0x10b   :  { %6189 = vst [vmem:[#allocation51_spill] sm:$0xff] %v4243_v38  ;;  %6190 = vst [vmem:[#allocation52_spill] sm:$0xff] %v4246_v63  ;;  %v1094_v62 = vmax.f32 %v4237_v34, %v4243_v38  ;;  %v1091_v13 = vmax.f32 %v1090_v1, %v4240_v2  ;;  %v4253_v14 = vadd.f32 %v389_v27, %v3833_v42  ;;  %v6202_v38 = vsub.s32 2, %v3823_v37 }
 0x10c   :  { %v391_v58 = vpop.f32.mrf.mxu0  ;;  %v556_v57 = vpop.f32.mrf.mxu1  ;;  %v4256_v40 = vadd.f32 %v552_v39, %v3855_v52 }
 0x10d   :  { %6191 = vst [vmem:[#allocation53_spill] sm:$0xff] %v4253_v14  ;;  %v4259_v33 = vadd.f32 %v391_v58, %v3837_v43  ;;  %v4262_v45 = vadd.f32 %v556_v57, %v3841_v44  ;;  %1092 = vmax.xlane.f32.xlu0 %v1091_v13  ;;  %v1095_v32 = vmax.f32 %v1094_v62, %v4246_v63 }
 0x10e   :  { %6192 = vst [vmem:[#allocation54_spill] sm:$0xff] %v4256_v40  ;;  %v395_v12 = vpop.f32.mrf.mxu0  ;;  %v558_v55 = vpop.f32.mrf.mxu1 }
 0x10f   :  { %6193 = vst [vmem:[#allocation55_spill] sm:$0xff] %v4259_v33  ;;  %6194 = vst [vmem:[#allocation56_spill] sm:$0xff] %v4262_v45  ;;  %v1099_v27 = vmax.f32 %v4253_v14, %v4259_v33  ;;  %v1096_v1 = vmax.f32 %v1095_v32, %v4256_v40  ;;  %v4269_v2 = vadd.f32 %v395_v12, %v3833_v42  ;;  %v622_v32 = vld [vmem:[%s5825_s5] sm:$0xf] }
 0x110   :  { %v397_v39 = vpop.f32.mrf.mxu0  ;;  %v562_v35 = vpop.f32.mrf.mxu1  ;;  %v4272_v58 = vadd.f32 %v558_v55, %v3855_v52  ;;  %v4300_v34 = vrot.slane %v622_v32, %v6202_v38 }
 0x111   :  { %6195 = vst [vmem:[#allocation57_spill] sm:$0xff] %v4269_v2  ;;  %v4275_v57 = vadd.f32 %v397_v39, %v3837_v43  ;;  %v4278_v62 = vadd.f32 %v562_v35, %v3841_v44  ;;  %1097 = vmax.xlane.f32.xlu1 %v1096_v1  ;;  %v1100_v13 = vmax.f32 %v1099_v27, %v4262_v45  ;;  %v6200_v1 = vsub.s32 0, %v3823_v37 }
 0x112   :  { %6196 = vst [vmem:[#allocation58_spill] sm:$0xff] %v4272_v58  ;;  %v401_v12 = vpop.f32.mrf.mxu0  ;;  %v564_v33 = vpop.f32.mrf.mxu1  ;;  %v6201_v27 = vsub.s32 1, %v3823_v37 }
 0x113   :  { %6197 = vst [vmem:[#allocation59_spill] sm:$0xff] %v4275_v57  ;;  %6198 = vst [vmem:[#allocation60_spill] sm:$0xff] %v4278_v62  ;;  %v1104_v14 = vmax.f32 %v4269_v2, %v4275_v57  ;;  %v1101_v55 = vmax.f32 %v1100_v13, %v4272_v58  ;;  %v4288_v39 = vadd.f32 %v401_v12, %v3833_v42 }
 0x114   :  { %v403_v40 = vpop.f32.mrf.mxu0  ;;  %v568_v35 = vpop.f32.mrf.mxu1  ;;  %v4292_v63 = vrot.slane %v622_v32, %v6200_v1  ;;  %v4296_v45 = vrot.slane %v622_v32, %v6201_v27  ;;  %v4303_v57 = vadd.f32 %v564_v33, %v3855_v52 }
 0x115   :  { %6199 = vst [vmem:[#allocation61_spill] sm:$0xff] %v4288_v39  ;;  %v4306_v42 = vadd.f32 %v403_v40, %v3837_v43  ;;  %v4309_v13 = vadd.f32 %v568_v35, %v3841_v44  ;;  %1102 = vmax.xlane.f32.xlu0 %v1101_v55  ;;  %v1105_v12 = vmax.f32 %v1104_v14, %v4278_v62  ;;  %v6207_v43 = vsub.s32 3, %v3823_v37 }
 0x116   :  { %6203 = vst [vmem:[#allocation62_spill] sm:$0xff] %v4303_v57  ;;  %v761_v1 = vpop.f32.mrf.mxu0  ;;  %v570_v58 = vpop.f32.mrf.mxu1 }
 0x117   :  { %6204 = vst [vmem:[#allocation63_spill] sm:$0xff] %v4306_v42  ;;  %6205 = vst [vmem:[#allocation64_spill] sm:$0xff] %v4309_v13  ;;  %v1109_v27 = vmax.f32 %v4288_v39, %v4306_v42  ;;  %v1106_v38 = vmax.f32 %v1105_v12, %v4303_v57  ;;  %v4316_v2 = vadd.f32 %v761_v1, %v4292_v63 }
 0x118   :  { %v763_v33 = vpop.f32.mrf.mxu0  ;;  %v928_v23 = vpop.f32.mrf.mxu1  ;;  %v4320_v40 = vrot.slane %v622_v32, %v6207_v43  ;;  %v4323_v44 = vadd.f32 %v570_v58, %v3855_v52 }
 0x119   :  { %6206 = vst [vmem:[#allocation65_spill] sm:$0xff] %v4316_v2  ;;  %v4326_v14 = vadd.f32 %v763_v33, %v4296_v45  ;;  %v4329_v55 = vadd.f32 %v928_v23, %v4300_v34  ;;  %1107 = vmax.xlane.f32.xlu1 %v1106_v38  ;;  %v1110_v35 = vmax.f32 %v1109_v27, %v4309_v13 }
 0x11a   :  { %6208 = vst [vmem:[#allocation66_spill] sm:$0xff] %v4323_v44  ;;  %v767_v12 = vpop.f32.mrf.mxu0  ;;  %v930_v1 = vpop.f32.mrf.mxu1 }
 0x11b   :  { %6209 = vst [vmem:[#allocation67_spill] sm:$0xff] %v4326_v14  ;;  %6210 = vst [vmem:[#allocation68_spill] sm:$0xff] %v4329_v55  ;;  %v1965_v42 = vmax.f32 %v4316_v2, %v4326_v14  ;;  %v1111_v37 = vmax.f32 %v1110_v35, %v4323_v44  ;;  %v4336_v32 = vadd.f32 %v767_v12, %v4292_v63 }
 0x11c   :  { %v769_v52 = vpop.f32.mrf.mxu0  ;;  %v934_v58 = vpop.f32.mrf.mxu1  ;;  %v4339_v33 = vadd.f32 %v930_v1, %v4320_v40 }
 0x11d   :  { %6211 = vst [vmem:[#allocation69_spill] sm:$0xff] %v4336_v32  ;;  %v4342_v23 = vadd.f32 %v769_v52, %v4296_v45  ;;  %v4345_v27 = vadd.f32 %v934_v58, %v4300_v34  ;;  %1112 = vmax.xlane.f32.xlu0 %v1111_v37  ;;  %v1966_v38 = vmax.f32 %v1965_v42, %v4329_v55 }
 0x11e   :  { %6212 = vst [vmem:[#allocation70_spill] sm:$0xff] %v4339_v33  ;;  %v773_v43 = vpop.f32.mrf.mxu0  ;;  %v936_v13 = vpop.f32.mrf.mxu1 }
 0x11f   :  { %6213 = vst [vmem:[#allocation71_spill] sm:$0xff] %v4342_v23  ;;  %6214 = vst [vmem:[#allocation72_spill] sm:$0xff] %v4345_v27  ;;  %v1970_v35 = vmax.f32 %v4336_v32, %v4342_v23  ;;  %v1967_v12 = vmax.f32 %v1966_v38, %v4339_v33  ;;  %v4352_v44 = vadd.f32 %v773_v43, %v4292_v63 }
 0x120   :  { %v775_v1 = vpop.f32.mrf.mxu0  ;;  %v940_v39 = vpop.f32.mrf.mxu1  ;;  %v4355_v52 = vadd.f32 %v936_v13, %v4320_v40 }
 0x121   :  { %6215 = vst [vmem:[#allocation73_spill] sm:$0xff] %v4352_v44  ;;  %v4358_v58 = vadd.f32 %v775_v1, %v4296_v45  ;;  %v4361_v42 = vadd.f32 %v940_v39, %v4300_v34  ;;  %1968 = vmax.xlane.f32.xlu1 %v1967_v12  ;;  %v1971_v37 = vmax.f32 %v1970_v35, %v4345_v27 }
 0x122   :  { %6216 = vst [vmem:[#allocation74_spill] sm:$0xff] %v4355_v52  ;;  %v779_v57 = vpop.f32.mrf.mxu0  ;;  %v942_v62 = vpop.f32.mrf.mxu1 }
 0x123   :  { %6217 = vst [vmem:[#allocation75_spill] sm:$0xff] %v4358_v58  ;;  %6218 = vst [vmem:[#allocation76_spill] sm:$0xff] %v4361_v42  ;;  %v1975_v38 = vmax.f32 %v4352_v44, %v4358_v58  ;;  %v1972_v43 = vmax.f32 %v1971_v37, %v4355_v52  ;;  %v4368_v10 = vadd.f32 %v779_v57, %v4292_v63 }
 0x124   :  { %v781_v13 = vpop.f32.mrf.mxu0  ;;  %v946_v22 = vpop.f32.mrf.mxu1  ;;  %v4371_v1 = vadd.f32 %v942_v62, %v4320_v40 }
 0x125   :  { %6219 = vst [vmem:[#allocation77_spill] sm:$0xff] %v4368_v10  ;;  %v4374_v39 = vadd.f32 %v781_v13, %v4296_v45  ;;  %v4377_v35 = vadd.f32 %v946_v22, %v4300_v34  ;;  %1973 = vmax.xlane.f32.xlu0 %v1972_v43  ;;  %v1976_v12 = vmax.f32 %v1975_v38, %v4361_v42 }
 0x126   :  { %6220 = vst [vmem:[#allocation78_spill] sm:$0xff] %v4371_v1  ;;  %v785_v28 = vpop.f32.mrf.mxu0  ;;  %v948_v6 = vpop.f32.mrf.mxu1 }
 0x127   :  { %6221 = vst [vmem:[#allocation79_spill] sm:$0xff] %v4374_v39  ;;  %6222 = vst [vmem:[#allocation80_spill] sm:$0xff] %v4377_v35  ;;  %v1980_v57 = vmax.f32 %v4368_v10, %v4374_v39  ;;  %v1977_v37 = vmax.f32 %v1976_v12, %v4371_v1  ;;  %v4384_v0 = vadd.f32 %v785_v28, %v4292_v63 }
 0x128   :  { %v787_v62 = vpop.f32.mrf.mxu0  ;;  %v952_v36 = vpop.f32.mrf.mxu1  ;;  %v4387_v13 = vadd.f32 %v948_v6, %v4320_v40 }
 0x129   :  { %6223 = vst [vmem:[#allocation81_spill] sm:$0xff] %v4384_v0  ;;  %v4390_v22 = vadd.f32 %v787_v62, %v4296_v45  ;;  %v4393_v38 = vadd.f32 %v952_v36, %v4300_v34  ;;  %1978 = vmax.xlane.f32.xlu1 %v1977_v37  ;;  %v1981_v43 = vmax.f32 %v1980_v57, %v4377_v35 }
 0x12a   :  { %6224 = vst [vmem:[#allocation82_spill] sm:$0xff] %v4387_v13  ;;  %v791_v3 = vpop.f32.mrf.mxu0  ;;  %v954_v48 = vpop.f32.mrf.mxu1 }
 0x12b   :  { %6225 = vst [vmem:[#allocation83_spill] sm:$0xff] %v4390_v22  ;;  %6226 = vst [vmem:[#allocation84_spill] sm:$0xff] %v4393_v38  ;;  %v1985_v28 = vmax.f32 %v4384_v0, %v4390_v22  ;;  %v1982_v12 = vmax.f32 %v1981_v43, %v4387_v13  ;;  %v4400_v31 = vadd.f32 %v791_v3, %v4292_v63 }
 0x12c   :  { %v793_v6 = vpop.f32.mrf.mxu0  ;;  %v958_v46 = vpop.f32.mrf.mxu1  ;;  %v4403_v62 = vadd.f32 %v954_v48, %v4320_v40 }
 0x12d   :  { %6227 = vst [vmem:[#allocation85_spill] sm:$0xff] %v4400_v31  ;;  %v4406_v36 = vadd.f32 %v793_v6, %v4296_v45  ;;  %v4409_v57 = vadd.f32 %v958_v46, %v4300_v34  ;;  %1983 = vmax.xlane.f32.xlu0 %v1982_v12  ;;  %v1986_v37 = vmax.f32 %v1985_v28, %v4393_v38 }
 0x12e   :  { %6228 = vst [vmem:[#allocation86_spill] sm:$0xff] %v4403_v62  ;;  %v797_v22 = vpop.f32.mrf.mxu0  ;;  %v960_v0 = vpop.f32.mrf.mxu1 }
 0x12f   :  { %6229 = vst [vmem:[#allocation87_spill] sm:$0xff] %v4406_v36  ;;  %6230 = vst [vmem:[#allocation88_spill] sm:$0xff] %v4409_v57  ;;  %v1990_v3 = vmax.f32 %v4400_v31, %v4406_v36  ;;  %v1987_v43 = vmax.f32 %v1986_v37, %v4403_v62  ;;  %v4416_v17 = vadd.f32 %v797_v22, %v4292_v63 }
 0x130   :  { %v799_v48 = vpop.f32.mrf.mxu0  ;;  %v964_v30 = vpop.f32.mrf.mxu1  ;;  %v4419_v6 = vadd.f32 %v960_v0, %v4320_v40 }
 0x131   :  { %6231 = vst [vmem:[#allocation89_spill] sm:$0xff] %v4416_v17  ;;  %v4422_v46 = vadd.f32 %v799_v48, %v4296_v45  ;;  %v4425_v28 = vadd.f32 %v964_v30, %v4300_v34  ;;  %1988 = vmax.xlane.f32.xlu1 %v1987_v43  ;;  %v1991_v12 = vmax.f32 %v1990_v3, %v4409_v57 }
 0x132   :  { %6232 = vst [vmem:[#allocation90_spill] sm:$0xff] %v4419_v6  ;;  %v803_v38 = vpop.f32.mrf.mxu0  ;;  %v966_v26 = vpop.f32.mrf.mxu1 }
 0x133   :  { %6233 = vst [vmem:[#allocation91_spill] sm:$0xff] %v4422_v46  ;;  %6234 = vst [vmem:[#allocation92_spill] sm:$0xff] %v4425_v28  ;;  %v1995_v22 = vmax.f32 %v4416_v17, %v4422_v46  ;;  %v1992_v37 = vmax.f32 %v1991_v12, %v4419_v6  ;;  %v4432_v62 = vadd.f32 %v803_v38, %v4292_v63 }
 0x134   :  { %v805_v0 = vpop.f32.mrf.mxu0  ;;  %v970_v15 = vpop.f32.mrf.mxu1  ;;  %v4435_v48 = vadd.f32 %v966_v26, %v4320_v40 }
 0x135   :  { %6235 = vst [vmem:[#allocation93_spill] sm:$0xff] %v4432_v62  ;;  %v4438_v30 = vadd.f32 %v805_v0, %v4296_v45  ;;  %v4441_v3 = vadd.f32 %v970_v15, %v4300_v34  ;;  %1993 = vmax.xlane.f32.xlu0 %v1992_v37  ;;  %v1996_v43 = vmax.f32 %v1995_v22, %v4425_v28 }
 0x136   :  { %6236 = vst [vmem:[#allocation94_spill] sm:$0xff] %v4435_v48  ;;  %v809_v46 = vpop.f32.mrf.mxu0  ;;  %v972_v17 = vpop.f32.mrf.mxu1 }
 0x137   :  { %6237 = vst [vmem:[#allocation95_spill] sm:$0xff] %v4438_v30  ;;  %6238 = vst [vmem:[#allocation96_spill] sm:$0xff] %v4441_v3  ;;  %v2000_v38 = vmax.f32 %v4432_v62, %v4438_v30  ;;  %v1997_v12 = vmax.f32 %v1996_v43, %v4435_v48  ;;  %v4448_v11 = vadd.f32 %v809_v46, %v4292_v63 }
 0x138   :  { %v811_v26 = vpop.f32.mrf.mxu0  ;;  %v976_v1 = vpop.f32.mrf.mxu1  ;;  %v4451_v0 = vadd.f32 %v972_v17, %v4320_v40 }
 0x139   :  { %6239 = vst [vmem:[#allocation97_spill] sm:$0xff] %v4448_v11  ;;  %v4454_v15 = vadd.f32 %v811_v26, %v4296_v45  ;;  %v4457_v22 = vadd.f32 %v976_v1, %v4300_v34  ;;  %1998 = vmax.xlane.f32.xlu1 %v1997_v12  ;;  %v2001_v37 = vmax.f32 %v2000_v38, %v4441_v3 }
 0x13a   :  { %6240 = vst [vmem:[#allocation98_spill] sm:$0xff] %v4451_v0  ;;  %v815_v28 = vpop.f32.mrf.mxu0  ;;  %v978_v47 = vpop.f32.mrf.mxu1 }
 0x13b   :  { %6241 = vst [vmem:[#allocation99_spill] sm:$0xff] %v4454_v15  ;;  %6242 = vst [vmem:[#allocation100_spill] sm:$0xff] %v4457_v22  ;;  %v2005_v46 = vmax.f32 %v4448_v11, %v4454_v15  ;;  %v2002_v43 = vmax.f32 %v2001_v37, %v4451_v0  ;;  %v4464_v48 = vadd.f32 %v815_v28, %v4292_v63 }
 0x13c   :  { %v817_v17 = vpop.f32.mrf.mxu0  ;;  %v982_v19 = vpop.f32.mrf.mxu1  ;;  %v4467_v26 = vadd.f32 %v978_v47, %v4320_v40 }
 0x13d   :  { %6243 = vst [vmem:[#allocation101_spill] sm:$0xff] %v4464_v48  ;;  %v4470_v1 = vadd.f32 %v817_v17, %v4296_v45  ;;  %v4473_v38 = vadd.f32 %v982_v19, %v4300_v34  ;;  %2003 = vmax.xlane.f32.xlu0 %v2002_v43  ;;  %v2006_v12 = vmax.f32 %v2005_v46, %v4457_v22 }
 0x13e   :  { %6244 = vst [vmem:[#allocation102_spill] sm:$0xff] %v4467_v26  ;;  %v821_v15 = vpop.f32.mrf.mxu0  ;;  %v984_v11 = vpop.f32.mrf.mxu1 }
 0x13f   :  { %6245 = vst [vmem:[#allocation103_spill] sm:$0xff] %v4470_v1  ;;  %6246 = vst [vmem:[#allocation104_spill] sm:$0xff] %v4473_v38  ;;  %v2010_v28 = vmax.f32 %v4464_v48, %v4470_v1  ;;  %v2007_v37 = vmax.f32 %v2006_v12, %v4467_v26  ;;  %v4480_v0 = vadd.f32 %v821_v15, %v4292_v63 }
 0x140   :  { %v823_v47 = vpop.f32.mrf.mxu0  ;;  %v988_v3 = vpop.f32.mrf.mxu1  ;;  %v4483_v17 = vadd.f32 %v984_v11, %v4320_v40 }
 0x141   :  { %6247 = vst [vmem:[#allocation105_spill] sm:$0xff] %v4480_v0  ;;  %v4486_v19 = vadd.f32 %v823_v47, %v4296_v45  ;;  %v4489_v46 = vadd.f32 %v988_v3, %v4300_v34  ;;  %2008 = vmax.xlane.f32.xlu1 %v2007_v37  ;;  %v2011_v43 = vmax.f32 %v2010_v28, %v4473_v38 }
 0x142   :  { %6248 = vst [vmem:[#allocation106_spill] sm:$0xff] %v4483_v17  ;;  %v827_v22 = vpop.f32.mrf.mxu0  ;;  %v990_v1 = vpop.f32.mrf.mxu1 }
 0x143   :  { %6249 = vst [vmem:[#allocation107_spill] sm:$0xff] %v4486_v19  ;;  %6250 = vst [vmem:[#allocation108_spill] sm:$0xff] %v4489_v46  ;;  %v2015_v15 = vmax.f32 %v4480_v0, %v4486_v19  ;;  %v2012_v12 = vmax.f32 %v2011_v43, %v4483_v17  ;;  %v4496_v26 = vadd.f32 %v827_v22, %v4292_v63 }
 0x144   :  { %v829_v11 = vpop.f32.mrf.mxu0  ;;  %v994_v48 = vpop.f32.mrf.mxu1  ;;  %v4499_v47 = vadd.f32 %v990_v1, %v4320_v40 }
 0x145   :  { %6251 = vst [vmem:[#allocation109_spill] sm:$0xff] %v4496_v26  ;;  %v4502_v3 = vadd.f32 %v829_v11, %v4296_v45  ;;  %v4505_v28 = vadd.f32 %v994_v48, %v4300_v34  ;;  %2013 = vmax.xlane.f32.xlu0 %v2012_v12  ;;  %v2016_v37 = vmax.f32 %v2015_v15, %v4489_v46 }
 0x146   :  { %6252 = vst [vmem:[#allocation110_spill] sm:$0xff] %v4499_v47  ;;  %v833_v19 = vpop.f32.mrf.mxu0  ;;  %v996_v0 = vpop.f32.mrf.mxu1 }
 0x147   :  { %6253 = vst [vmem:[#allocation111_spill] sm:$0xff] %v4502_v3  ;;  %6254 = vst [vmem:[#allocation112_spill] sm:$0xff] %v4505_v28  ;;  %v2020_v22 = vmax.f32 %v4496_v26, %v4502_v3  ;;  %v2017_v43 = vmax.f32 %v2016_v37, %v4499_v47  ;;  %v4512_v17 = vadd.f32 %v833_v19, %v4292_v63 }
 0x148   :  { %v835_v1 = vpop.f32.mrf.mxu0  ;;  %v1000_v38 = vpop.f32.mrf.mxu1  ;;  %v4515_v11 = vadd.f32 %v996_v0, %v4320_v40 }
 0x149   :  { %6255 = vst [vmem:[#allocation113_spill] sm:$0xff] %v4512_v17  ;;  %v4518_v48 = vadd.f32 %v835_v1, %v4296_v45  ;;  %v4521_v15 = vadd.f32 %v1000_v38, %v4300_v34  ;;  %2018 = vmax.xlane.f32.xlu1 %v2017_v43  ;;  %v2021_v12 = vmax.f32 %v2020_v22, %v4505_v28 }
 0x14a   :  { %6256 = vst [vmem:[#allocation114_spill] sm:$0xff] %v4515_v11  ;;  %v839_v46 = vpop.f32.mrf.mxu0  ;;  %v1002_v3 = vpop.f32.mrf.mxu1 }
 0x14b   :  { %6257 = vst [vmem:[#allocation115_spill] sm:$0xff] %v4518_v48  ;;  %6258 = vst [vmem:[#allocation116_spill] sm:$0xff] %v4521_v15  ;;  %v2025_v19 = vmax.f32 %v4512_v17, %v4518_v48  ;;  %v2022_v37 = vmax.f32 %v2021_v12, %v4515_v11  ;;  %v4528_v47 = vadd.f32 %v839_v46, %v4292_v63 }
 0x14c   :  { %v841_v0 = vpop.f32.mrf.mxu0  ;;  %v1006_v26 = vpop.f32.mrf.mxu1  ;;  %v4531_v1 = vadd.f32 %v1002_v3, %v4320_v40 }
 0x14d   :  { %6259 = vst [vmem:[#allocation117_spill] sm:$0xff] %v4528_v47  ;;  %v4534_v38 = vadd.f32 %v841_v0, %v4296_v45  ;;  %v4537_v22 = vadd.f32 %v1006_v26, %v4300_v34  ;;  %2023 = vmax.xlane.f32.xlu0 %v2022_v37  ;;  %v2026_v43 = vmax.f32 %v2025_v19, %v4521_v15 }
 0x14e   :  { %6260 = vst [vmem:[#allocation118_spill] sm:$0xff] %v4531_v1  ;;  %v845_v48 = vpop.f32.mrf.mxu0  ;;  %v1008_v17 = vpop.f32.mrf.mxu1 }
 0x14f   :  { %6261 = vst [vmem:[#allocation119_spill] sm:$0xff] %v4534_v38  ;;  %6262 = vst [vmem:[#allocation120_spill] sm:$0xff] %v4537_v22  ;;  %v2030_v46 = vmax.f32 %v4528_v47, %v4534_v38  ;;  %v2027_v12 = vmax.f32 %v2026_v43, %v4531_v1  ;;  %v4544_v11 = vadd.f32 %v845_v48, %v4292_v63 }
 0x150   :  { %v847_v3 = vpop.f32.mrf.mxu0  ;;  %v1012_v28 = vpop.f32.mrf.mxu1  ;;  %v4547_v0 = vadd.f32 %v1008_v17, %v4320_v40 }
 0x151   :  { %6263 = vst [vmem:[#allocation121_spill] sm:$0xff] %v4544_v11  ;;  %v4550_v26 = vadd.f32 %v847_v3, %v4296_v45  ;;  %v4553_v19 = vadd.f32 %v1012_v28, %v4300_v34  ;;  %2028 = vmax.xlane.f32.xlu1 %v2027_v12  ;;  %v2031_v37 = vmax.f32 %v2030_v46, %v4537_v22 }
 0x152   :  { %6264 = vst [vmem:[#allocation122_spill] sm:$0xff] %v4547_v0  ;;  %v851_v15 = vpop.f32.mrf.mxu0  ;;  %v1014_v38 = vpop.f32.mrf.mxu1 }
 0x153   :  { %6265 = vst [vmem:[#allocation123_spill] sm:$0xff] %v4550_v26  ;;  %6266 = vst [vmem:[#allocation124_spill] sm:$0xff] %v4553_v19  ;;  %v2035_v48 = vmax.f32 %v4544_v11, %v4550_v26  ;;  %v2032_v43 = vmax.f32 %v2031_v37, %v4547_v0  ;;  %v4560_v1 = vadd.f32 %v851_v15, %v4292_v63 }
 0x154   :  { %v853_v17 = vpop.f32.mrf.mxu0  ;;  %v1018_v47 = vpop.f32.mrf.mxu1  ;;  %v4563_v3 = vadd.f32 %v1014_v38, %v4320_v40 }
 0x155   :  { %6267 = vst [vmem:[#allocation125_spill] sm:$0xff] %v4560_v1  ;;  %v4566_v28 = vadd.f32 %v853_v17, %v4296_v45  ;;  %v4569_v46 = vadd.f32 %v1018_v47, %v4300_v34  ;;  %2033 = vmax.xlane.f32.xlu0 %v2032_v43  ;;  %v2036_v12 = vmax.f32 %v2035_v48, %v4553_v19 }
 0x156   :  { %6268 = vst [vmem:[#allocation126_spill] sm:$0xff] %v4563_v3  ;;  %v857_v26 = vpop.f32.mrf.mxu0  ;;  %v1020_v11 = vpop.f32.mrf.mxu1 }
 0x157   :  { %6269 = vst [vmem:[#allocation127_spill] sm:$0xff] %v4566_v28  ;;  %6270 = vst [vmem:[#allocation128_spill] sm:$0xff] %v4569_v46  ;;  %v2040_v15 = vmax.f32 %v4560_v1, %v4566_v28  ;;  %v2037_v37 = vmax.f32 %v2036_v12, %v4563_v3  ;;  %v4576_v0 = vadd.f32 %v857_v26, %v4292_v63  ;;  %v4660_v3 = vld [vmem:[#allocation2 + $0x30] sm:$0xff]  ;;  %v4674_v28 = vld [vmem:[#allocation2 + $0x38] sm:$0xff] }
 0x158   :  { %v859_v38 = vpop.f32.mrf.mxu0  ;;  %v1024_v22 = vpop.f32.mrf.mxu1  ;;  %v4579_v17 = vadd.f32 %v1020_v11, %v4320_v40  ;;  %6285 = vst [vmem:[#allocation143_spill] sm:$0xff] %v4660_v3  ;;  %6289 = vst [vmem:[#allocation147_spill] sm:$0xff] %v4674_v28 }
 0x159   :  { %6271 = vst [vmem:[#allocation129_spill] sm:$0xff] %v4576_v0  ;;  %v4582_v47 = vadd.f32 %v859_v38, %v4296_v45  ;;  %v4585_v48 = vadd.f32 %v1024_v22, %v4300_v34  ;;  %2038 = vmax.xlane.f32.xlu1 %v2037_v37  ;;  %v2041_v43 = vmax.f32 %v2040_v15, %v4569_v46  ;;  %v4596_v34 = vld [vmem:[#allocation2] sm:$0xff]  ;;  %v4604_v37 = vld [vmem:[#allocation2 + $0x8] sm:$0xff] }
 0x15a   :  { %6272 = vst [vmem:[#allocation130_spill] sm:$0xff] %v4579_v17  ;;  %v1026_v19 = vpop.f32.mrf.mxu1  ;;  %6277 = vst [vmem:[#allocation135_spill] sm:$0xff] %v4604_v37 }
 0x15b   :  { %6273 = vst [vmem:[#allocation131_spill] sm:$0xff] %v4582_v47  ;;  %6274 = vst [vmem:[#allocation132_spill] sm:$0xff] %v4585_v48  ;;  %v2045_v12 = vmax.f32 %v4576_v0, %v4582_v47  ;;  %v2042_v63 = vmax.f32 %v2041_v43, %v4579_v17  ;;  %v4592_v26 = vadd.f32 %v1026_v19, %v4320_v40  ;;  %v4616_v43 = vld [vmem:[#allocation2 + $0x10] sm:$0xff] }
 0x15c   :  { %6279 = vst [vmem:[#allocation137_spill] sm:$0xff] %v4616_v43 }
 0x15d   :  { %6275 = vst [vmem:[#allocation133_spill] sm:$0xff] %v4592_v26  ;;  %2043 = vmax.xlane.f32.xlu0 %v2042_v63  ;;  %v2046_v11 = vmax.f32 %v2045_v12, %v4585_v48  ;;  %v4635_v12 = vld [vmem:[#allocation2 + $0x18] sm:$0xff]  ;;  %v4642_v48 = vld [vmem:[#allocation2 + $0x20] sm:$0xff] }
 0x15e   :  { %6281 = vst [vmem:[#allocation139_spill] sm:$0xff] %v4635_v12  ;;  %6283 = vst [vmem:[#allocation141_spill] sm:$0xff] %v4642_v48 }
 0x15f   :  { %v2047_v45 = vmax.f32 %v2046_v11, %v4592_v26 }
 0x161   :  { %2048 = vmax.xlane.f32.xlu1 %v2047_v45 }
 0x166   :  { %v4598_v22 = vpop.xlane.xlu0 %1032 }
 0x167   :  { %v4602_v15 = vmax.f32 %v4596_v34, %v4598_v22  ;;  %vm1114_vm4 = vcmp.eq.f32.partialorder %v3845_v49, %v4598_v22  ;;  %vm1115_vm5 = vcmp.eq.f32.partialorder %v3848_v50, %v4598_v22  ;;  %vm1116_vm12 = vcmp.eq.f32.partialorder %v3851_v51, %v4598_v22 }
 0x168   :  { %v1183_v50 = vsel %vm1115_vm5, %v4326_v14, -inf  ;;  %vm1117_vm14 = vcmp.eq.f32.partialorder %v3863_v59, %v4598_v22 }
 0x169   :  { %6276 = vst [vmem:[#allocation134_spill] sm:$0xff] %v4602_v15  ;;  %1931 = vst.msk [vmem:[#allocation2] sm:$0xff] %vm30_vm1, %v4602_v15 }
 0x16a   :  { %v4610_v19 = vpop.xlane.xlu0 %1037 }
 0x16b   :  { %v4614_v38 = vmax.f32 %v4604_v37, %v4610_v19  ;;  %vm1118_vm2 = vcmp.eq.f32.partialorder %v3860_v56, %v4610_v19  ;;  %vm1119_vm3 = vcmp.eq.f32.partialorder %v3866_v60, %v4610_v19  ;;  %vm1120_vm8 = vcmp.eq.f32.partialorder %v3869_v61, %v4610_v19 }
 0x16c   :  { %v1182_v60 = vsel %vm1114_vm4, %v4316_v2, -inf  ;;  %v1188_v61 = vsel %vm1120_vm8, %v4345_v27, -inf  ;;  %vm1121_vm11 = vcmp.eq.f32.partialorder %v3879_v7, %v4610_v19 }
 0x16d   :  { %6278 = vst [vmem:[#allocation136_spill] sm:$0xff] %v4614_v38  ;;  %1932 = vst.msk [vmem:[#allocation2 + $0x8] sm:$0xff] %vm30_vm1, %v4614_v38  ;;  %v1250_v14 = vmax.f32 %v1182_v60, %v1183_v50  ;;  %v1184_v50 = vsel %vm1116_vm12, %v4329_v55, -inf }
 0x16e   :  { %v4622_v63 = vpop.xlane.xlu1 %1042 }
 0x16f   :  { %v4626_v11 = vmax.f32 %v4616_v43, %v4622_v63  ;;  %v1187_v43 = vsel %vm1119_vm3, %v4342_v23, -inf  ;;  %v1251_v60 = vmax.f32 %v1250_v14, %v1184_v50  ;;  %vm1122_vm4 = vcmp.eq.f32.partialorder %v3876_v4, %v4622_v63 }
 0x170   :  { %vm1123_vm5 = vcmp.eq.f32.partialorder %v3882_v8, %v4622_v63  ;;  %vm1124_vm8 = vcmp.eq.f32.partialorder %v3885_v9, %v4622_v63 }
 0x171   :  { %6280 = vst [vmem:[#allocation138_spill] sm:$0xff] %v4626_v11  ;;  %1933 = vst.msk [vmem:[#allocation2 + $0x10] sm:$0xff] %vm30_vm1, %v4626_v11 }
 0x172   :  { %v4632_v40 = vpop.xlane.xlu1 %1047  ;;  %1461 = vperm.xlu1 %2936, %v4614_v38  }
 0x173   :  { %1456 = vperm.xlu0 %2935, %v4602_v15   ;;  %v4640_v26 = vmax.f32 %v4635_v12, %v4632_v40  ;;  %v4658_v15 = vld [vmem:[#allocation2 + $0x28] sm:$0xff]  ;;  %vm1126_vm6 = vcmp.eq.f32.partialorder %v4070_v16, %v4632_v40  ;;  %vm1127_vm7 = vcmp.eq.f32.partialorder %v4077_v20, %v4632_v40  ;;  %vm1128_vm13 = vcmp.eq.f32.partialorder %v4080_v21, %v4632_v40 }
 0x174   :  { %v1194_v49 = vsel %vm1126_vm6, %v4368_v10, -inf  ;;  %vm1129_vm15 = vcmp.eq.f32.partialorder %v4096_v29, %v4632_v40 }
 0x175   :  { %6282 = vst [vmem:[#allocation140_spill] sm:$0xff] %v4640_v26  ;;  %1934 = vst.msk [vmem:[#allocation2 + $0x18] sm:$0xff] %vm30_vm1, %v4640_v26  ;;  %v1197_v50 = vsel %vm1129_vm15, %v4387_v13, -inf }
 0x176   :  { %v4644_v47 = vpop.xlane.xlu0 %1052 }
 0x177   :  { %v4652_v38 = vmax.f32 %v4642_v48, %v4644_v47 }
 0x179   :  { %6284 = vst [vmem:[#allocation142_spill] sm:$0xff] %v4652_v38  ;;  %1935 = vst.msk [vmem:[#allocation2 + $0x20] sm:$0xff] %vm30_vm1, %v4652_v38 }
 0x17a   :  { %v4654_v0 = vpop.xlane.xlu1 %1057 }
 0x17b   :  { %v4664_v17 = vmax.f32 %v4658_v15, %v4654_v0  ;;  %vm1134_vm9 = vcmp.eq.f32.partialorder %v4109_v41, %v4654_v0  ;;  %vm1135_vm10 = vcmp.eq.f32.partialorder %v4115_v53, %v4654_v0  ;;  %vm1136_vm0 = vcmp.eq.f32.partialorder %v4118_v54, %v4654_v0 }
 0x17c   :  { %v1202_v10 = vsel %vm1134_vm9, %v4400_v31, -inf  ;;  %v1203_v27 = vsel %vm1135_vm10, %v4406_v36, -inf  ;;  %v1204_v55 = vsel %vm1136_vm0, %v4409_v57, -inf }
 0x17d   :  { %6286 = vst [vmem:[#allocation144_spill] sm:$0xff] %v4664_v17  ;;  %1936 = vst.msk [vmem:[#allocation2 + $0x28] sm:$0xff] %vm30_vm1, %v4664_v17  ;;  %v1275_v31 = vmax.f32 %v1202_v10, %v1203_v27  ;;  %v4769_v27 = vld [vmem:[#allocation2 + $0x60] sm:$0xff] }
 0x17e   :  { %v4666_v45 = vpop.xlane.xlu0 %1062  ;;  %6296 = vst [vmem:[#allocation154_spill] sm:$0xff] %v4769_v27 }
 0x17f   :  { %6287 = vst [vmem:[#allocation145_spill] sm:$0xff] %v4666_v45  ;;  %v4672_v46 = vmax.f32 %v4660_v3, %v4666_v45  ;;  %v1186_v3 = vsel %vm1118_vm2, %v4336_v32, -inf  ;;  %v4690_v45 = vld [vmem:[#allocation2 + $0x40] sm:$0xff]  ;;  %vm1137_vm2 = vcmp.eq.f32.partialorder %v4128_v5, %v4654_v0  ;;  %v1276_v10 = vmax.f32 %v1275_v31, %v1204_v55 }
 0x180   :  { %6291 = vst [vmem:[#allocation149_spill] sm:$0xff] %v4690_v45  ;;  %v1255_v23 = vmax.f32 %v1186_v3, %v1187_v43  ;;  %v4725_v3 = vld [vmem:[#allocation2 + $0x48] sm:$0xff] }
 0x181   :  { %6288 = vst [vmem:[#allocation146_spill] sm:$0xff] %v4672_v46  ;;  %1937 = vst.msk [vmem:[#allocation2 + $0x30] sm:$0xff] %vm30_vm1, %v4672_v46 }
 0x182   :  { %v4682_v1 = vpop.xlane.xlu1 %1067  ;;  %v1256_v43 = vmax.f32 %v1255_v23, %v1188_v61  ;;  %v1189_v61 = vsel %vm1121_vm11, %v4355_v52, -inf  ;;  %v1196_v23 = vsel %vm1128_vm13, %v4377_v35, -inf  ;;  %v4825_v52 = vld [vmem:[#allocation5] sm:$0xff] }
 0x183   :  { %v4686_v48 = vmax.f32 %v4674_v28, %v4682_v1  ;;  %v1195_v28 = vsel %vm1127_vm7, %v4374_v39, -inf  ;;  %v4733_v39 = vld [vmem:[#allocation2 + $0x50] sm:$0xff]  ;;  %6307 = vst [vmem:[#allocation165_spill] sm:$0xff] %v4825_v52  ;;  %vm1142_vm6 = vcmp.eq.f32.partialorder %v4141_v18, %v4682_v1  ;;  %vm1143_vm7 = vcmp.eq.f32.partialorder %v4147_v24, %v4682_v1 }
 0x184   :  { %v1265_v2 = vmax.f32 %v1194_v49, %v1195_v28  ;;  %6293 = vst [vmem:[#allocation151_spill] sm:$0xff] %v4733_v39  ;;  %v1257_v49 = vmax.f32 %v1256_v43, %v1189_v61  ;;  %v4762_v43 = vld [vmem:[#allocation2 + $0x58] sm:$0xff]  ;;  %v1185_v61 = vsel %vm1117_vm14, %v4339_v33, -inf  ;;  %v1205_v33 = vsel %vm1137_vm2, %v4419_v6, -inf  ;;  %v6359_v24 = vld [vmem:[#allocation84_spill] sm:$0xff] }
 0x185   :  { %6290 = vst [vmem:[#allocation148_spill] sm:$0xff] %v4686_v48  ;;  %1938 = vst.msk [vmem:[#allocation2 + $0x38] sm:$0xff] %vm30_vm1, %v4686_v48  ;;  %v1252_v35 = vmax.f32 %v1251_v60, %v1185_v61  ;;  %v1277_v31 = vmax.f32 %v1276_v10, %v1205_v33  ;;  %v4808_v10 = vld [vmem:[#allocation2 + $0x78] sm:$0xff]  ;;  %vm1144_vm9 = vcmp.eq.f32.partialorder %v4150_v25, %v4682_v1 }
 0x186   :  { %v4700_v56 = vpop.xlane.xlu0 %1072  ;;  %v1266_v36 = vmax.f32 %v1265_v2, %v1196_v23  ;;  %6302 = vst [vmem:[#allocation160_spill] sm:$0xff] %v4808_v10 }
 0x187   :  { %v4710_v32 = vmax.f32 %v4690_v45, %v4700_v56 }
 0x188   :  { %v1267_v2 = vmax.f32 %v1266_v36, %v1197_v50  ;;  %v4790_v36 = vld [vmem:[#allocation2 + $0x70] sm:$0xff] }
 0x189   :  { %6292 = vst [vmem:[#allocation150_spill] sm:$0xff] %v4710_v32  ;;  %1939 = vst.msk [vmem:[#allocation2 + $0x40] sm:$0xff] %vm30_vm1, %v4710_v32 }
 0x18a   :  { %v4718_v20 = vpop.xlane.xlu1 %1077  ;;  %6299 = vst [vmem:[#allocation157_spill] sm:$0xff] %v4790_v36 }
 0x18b   :  { %v4739_v45 = vmax.f32 %v4725_v3, %v4718_v20 }
 0x18d   :  { %6294 = vst [vmem:[#allocation152_spill] sm:$0xff] %v4739_v45  ;;  %1940 = vst.msk [vmem:[#allocation2 + $0x48] sm:$0xff] %vm30_vm1, %v4739_v45 }
 0x18e   :  { %v4741_v7 = vpop.xlane.xlu0 %1082 }
 0x18f   :  { %v4750_v28 = vmax.f32 %v4733_v39, %v4741_v7  ;;  %v4833_v39 = vld [vmem:[#allocation5 + $0x8] sm:$0xff] }
 0x190   :  { %6309 = vst [vmem:[#allocation167_spill] sm:$0xff] %v4833_v39 }
 0x191   :  { %6295 = vst [vmem:[#allocation153_spill] sm:$0xff] %v4750_v28  ;;  %1941 = vst.msk [vmem:[#allocation2 + $0x50] sm:$0xff] %vm30_vm1, %v4750_v28 }
 0x192   :  { %v4760_v14 = vpop.xlane.xlu1 %1087  ;;  %1258 = vmax.xlane.f32.xlu0 %v1257_v49 }
 0x193   :  { %v4773_v23 = vmax.f32 %v4762_v43, %v4760_v14 }
 0x195   :  { %1942 = vst.msk [vmem:[#allocation2 + $0x58] sm:$0xff] %vm30_vm1, %v4773_v23 }
 0x196   :  { %1253 = vmax.xlane.f32.xlu1 %v1252_v35  ;;  %1268 = vmax.xlane.f32.xlu0 %v1267_v2  ;;  %v4775_v49 = vpop.xlane.xlu0 %1092  ;;  %v4788_v35 = vld [vmem:[#allocation2 + $0x68] sm:$0xff] }
 0x197   :  { %v4780_v60 = vmax.f32 %v4769_v27, %v4775_v49  ;;  %6298 = vst [vmem:[#allocation156_spill] sm:$0xff] %v4788_v35 }
 0x199   :  { %6297 = vst [vmem:[#allocation155_spill] sm:$0xff] %v4780_v60  ;;  %1943 = vst.msk [vmem:[#allocation2 + $0x60] sm:$0xff] %vm30_vm1, %v4780_v60 }
 0x19a   :  { %v4786_v55 = vpop.xlane.xlu1 %1097  ;;  %1278 = vmax.xlane.f32.xlu0 %v1277_v31  ;;  %v4810_v31 = vld [vmem:[#allocation2 + $0x80] sm:$0xff] }
 0x19b   :  { %v4794_v61 = vmax.f32 %v4788_v35, %v4786_v55  ;;  %6303 = vst [vmem:[#allocation161_spill] sm:$0xff] %v4810_v31 }
 0x19d   :  { %1944 = vst.msk [vmem:[#allocation2 + $0x68] sm:$0xff] %vm30_vm1, %v4794_v61 }
 0x19e   :  { %v4796_v50 = vpop.xlane.xlu0 %1102 }
 0x19f   :  { %6300 = vst [vmem:[#allocation158_spill] sm:$0xff] %v4796_v50  ;;  %v4800_v2 = vmax.f32 %v4790_v36, %v4796_v50  ;;  %v4843_v50 = vld [vmem:[#allocation5 + $0x10] sm:$0xff] }
 0x1a0   :  { %6311 = vst [vmem:[#allocation169_spill] sm:$0xff] %v4843_v50 }
 0x1a1   :  { %6301 = vst [vmem:[#allocation159_spill] sm:$0xff] %v4800_v2  ;;  %1945 = vst.msk [vmem:[#allocation2 + $0x70] sm:$0xff] %vm30_vm1, %v4800_v2 }
 0x1a2   :  { %v4806_v33 = vpop.xlane.xlu1 %1107 }
 0x1a3   :  { %v4814_v6 = vmax.f32 %v4808_v10, %v4806_v33 }
 0x1a5   :  { %6304 = vst [vmem:[#allocation162_spill] sm:$0xff] %v4814_v6  ;;  %1946 = vst.msk [vmem:[#allocation2 + $0x78] sm:$0xff] %vm30_vm1, %v4814_v6 }
 0x1a6   :  { %v4816_v57 = vpop.xlane.xlu0 %1112 }
 0x1a7   :  { %6305 = vst [vmem:[#allocation163_spill] sm:$0xff] %v4816_v57  ;;  %1466 = vperm.xlu1 %2936, %v4626_v11   ;;  %v4821_v13 = vmax.f32 %v4810_v31, %v4816_v57  ;;  %vm1879_vm3 = vcmp.gt.f32.partialorder %v4816_v57, %v4810_v31 }
 0x1a9   :  { %6306 = vst [vmem:[#allocation164_spill] sm:$0xff] %v4821_v13  ;;  %1947 = vst.msk [vmem:[#allocation2 + $0x80] sm:$0xff] %vm30_vm1, %v4821_v13 }
 0x1aa   :  { %v1969_v36 = vpop.xlane.xlu1 %1968 }
 0x1ab   :  { %v4830_v27 = vmax.f32 %v4825_v52, %v1969_v36  ;;  %1471 = vperm.xlu1 %2936, %v4640_v26   ;;  %v4850_v26 = vld [vmem:[#allocation5 + $0x18] sm:$0xff] }
 0x1ac   :  { %6313 = vst [vmem:[#allocation171_spill] sm:$0xff] %v4850_v26 }
 0x1ad   :  { %6308 = vst [vmem:[#allocation166_spill] sm:$0xff] %v4830_v27  ;;  %2560 = vst.msk [vmem:[#allocation5] sm:$0xff] %vm30_vm1, %v4830_v27  ;;  %v4890_v27 = vld [vmem:[#allocation5 + $0x38] sm:$0xff] }
 0x1ae   :  { %v1974_v11 = vpop.xlane.xlu0 %1973  ;;  %6321 = vst [vmem:[#allocation179_spill] sm:$0xff] %v4890_v27 }
 0x1af   :  { %v4840_v10 = vmax.f32 %v4833_v39, %v1974_v11  ;;  %v4857_v39 = vld [vmem:[#allocation5 + $0x20] sm:$0xff] }
 0x1b0   :  { %1491 = vperm.xlu0 %2935, %v4686_v48   ;;  %6315 = vst [vmem:[#allocation173_spill] sm:$0xff] %v4857_v39 }
 0x1b1   :  { %6310 = vst [vmem:[#allocation168_spill] sm:$0xff] %v4840_v10  ;;  %2561 = vst.msk [vmem:[#allocation5 + $0x8] sm:$0xff] %vm30_vm1, %v4840_v10 }
 0x1b2   :  { %v1979_v36 = vpop.xlane.xlu1 %1978 }
 0x1b3   :  { %v4848_v52 = vmax.f32 %v4843_v50, %v1979_v36  ;;  %v4864_v36 = vld [vmem:[#allocation5 + $0x28] sm:$0xff] }
 0x1b4   :  { %6317 = vst [vmem:[#allocation175_spill] sm:$0xff] %v4864_v36 }
 0x1b5   :  { %6312 = vst [vmem:[#allocation170_spill] sm:$0xff] %v4848_v52  ;;  %2562 = vst.msk [vmem:[#allocation5 + $0x10] sm:$0xff] %vm30_vm1, %v4848_v52 }
 0x1b6   :  { %v1984_v31 = vpop.xlane.xlu0 %1983 }
 0x1b7   :  { %v4855_v11 = vmax.f32 %v4850_v26, %v1984_v31  ;;  %v1190_v26 = vsel %vm1122_vm4, %v4352_v44, -inf }
 0x1b9   :  { %6314 = vst [vmem:[#allocation172_spill] sm:$0xff] %v4855_v11  ;;  %2563 = vst.msk [vmem:[#allocation5 + $0x18] sm:$0xff] %vm30_vm1, %v4855_v11 }
 0x1ba   :  { %v1989_v48 = vpop.xlane.xlu1 %1988 }
 0x1bb   :  { %v4862_v57 = vmax.f32 %v4857_v39, %v1989_v48  ;;  %v4879_v48 = vld [vmem:[#allocation5 + $0x30] sm:$0xff] }
 0x1bc   :  { %6319 = vst [vmem:[#allocation177_spill] sm:$0xff] %v4879_v48 }
 0x1bd   :  { %6316 = vst [vmem:[#allocation174_spill] sm:$0xff] %v4862_v57  ;;  %2564 = vst.msk [vmem:[#allocation5 + $0x20] sm:$0xff] %vm30_vm1, %v4862_v57  ;;  %v1211_v57 = vsel %vm1143_vm7, %v4438_v30, -inf  ;;  %v4901_v30 = vld [vmem:[#allocation5 + $0x40] sm:$0xff]  ;;  %vm1863_vm7 = vcmp.gt.f32.partialorder %v4598_v22, %v4596_v34 }
 0x1be   :  { %v1994_v50 = vpop.xlane.xlu0 %1993  ;;  %6323 = vst [vmem:[#allocation181_spill] sm:$0xff] %v4901_v30  ;;  %v6363_v22 = vld [vmem:[#allocation41_spill] sm:$0xff] }
 0x1bf   :  { %v4871_v31 = vmax.f32 %v4864_v36, %v1994_v50  ;;  %v1191_v50 = vsel %vm1123_vm5, %v4358_v58, -inf  ;;  %v1210_v36 = vsel %vm1142_vm6, %v4432_v62, -inf  ;;  %vm1864_vm6 = vcmp.gt.f32.partialorder %v4610_v19, %v4604_v37  ;;  %v1885_v19 = vld [vmem:[#allocation4 + $0x28] sm:$0xff]  ;;  %v6374_v37 = vld [vmem:[#allocation46_spill] sm:$0xff] }
 0x1c0   :  { %v1260_v35 = vmax.f32 %v1190_v26, %v1191_v50  ;;  %v1285_v58 = vmax.f32 %v1210_v36, %v1211_v57  ;;  %v6326_v50 = vld [vmem:[#allocation30_spill] sm:$0xff] }
 0x1c1   :  { %6318 = vst [vmem:[#allocation176_spill] sm:$0xff] %v4871_v31  ;;  %2565 = vst.msk [vmem:[#allocation5 + $0x28] sm:$0xff] %vm30_vm1, %v4871_v31  ;;  %vm1145_vm11 = vcmp.eq.f32.partialorder %v6326_v50, %v4682_v1 }
 0x1c2   :  { %v1999_v39 = vpop.xlane.xlu1 %1998 }
 0x1c3   :  { %v4888_v52 = vmax.f32 %v4879_v48, %v1999_v39  ;;  %v1192_v39 = vsel %vm1124_vm8, %v4361_v42, -inf  ;;  %v6324_v48 = vld [vmem:[#allocation96_spill] sm:$0xff]  ;;  %v6329_v42 = vld [vmem:[#allocation78_spill] sm:$0xff]  ;;  %vm1866_vm8 = vcmp.gt.f32.partialorder %v4632_v40, %v4635_v12  ;;  %v6364_v40 = vld [vmem:[#allocation43_spill] sm:$0xff] }
 0x1c4   :  { %v1212_v6 = vsel %vm1144_vm9, %v6324_v48, -inf  ;;  %v1261_v26 = vmax.f32 %v1260_v35, %v1192_v39  ;;  %v6330_v48 = vld [vmem:[#allocation98_spill] sm:$0xff]  ;;  %vm1868_vm9 = vcmp.gt.f32.partialorder %v4654_v0, %v4658_v15  ;;  %v6370_v0 = vld [vmem:[#allocation44_spill] sm:$0xff] }
 0x1c5   :  { %6320 = vst [vmem:[#allocation178_spill] sm:$0xff] %v4888_v52  ;;  %2566 = vst.msk [vmem:[#allocation5 + $0x30] sm:$0xff] %vm30_vm1, %v4888_v52  ;;  %v6325_v52 = vld [vmem:[#allocation13_spill] sm:$0xff]  ;;  %v1286_v57 = vmax.f32 %v1285_v58, %v1212_v6  ;;  %v1213_v25 = vsel %vm1145_vm11, %v6330_v48, -inf  ;;  %v4923_v58 = vld [vmem:[#allocation5 + $0x50] sm:$0xff]  ;;  %vm1159_vm11 = vcmp.eq.f32.partialorder %v6364_v40, %v4760_v14 }
 0x1c6   :  { %v2004_v44 = vpop.xlane.xlu0 %2003  ;;  %vm1125_vm10 = vcmp.eq.f32.partialorder %v6325_v52, %v4622_v63  ;;  %6332 = vst [vmem:[#allocation184_spill] sm:$0xff] %v4923_v58  ;;  %v6350_v48 = vld [vmem:[#allocation15_spill] sm:$0xff] }
 0x1c7   :  { %v4899_v62 = vmax.f32 %v4890_v27, %v2004_v44  ;;  %v4914_v27 = vld [vmem:[#allocation5 + $0x48] sm:$0xff]  ;;  %v1193_v5 = vsel %vm1125_vm10, %v6329_v42, -inf  ;;  %v1287_v29 = vmax.f32 %v1286_v57, %v1213_v25  ;;  %vm1130_vm14 = vcmp.eq.f32.partialorder %v6350_v48, %v4644_v47 }
 0x1c8   :  { %6328 = vst [vmem:[#allocation182_spill] sm:$0xff] %v4914_v27  ;;  %v1262_v54 = vmax.f32 %v1261_v26, %v1193_v5  ;;  %v4944_v57 = vld [vmem:[#allocation5 + $0x68] sm:$0xff]  ;;  %vm1158_vm10 = vcmp.eq.f32.partialorder %v6363_v22, %v4760_v14 }
 0x1c9   :  { %6322 = vst [vmem:[#allocation180_spill] sm:$0xff] %v4899_v62  ;;  %2567 = vst.msk [vmem:[#allocation5 + $0x38] sm:$0xff] %vm30_vm1, %v4899_v62 }
 0x1ca   :  { %v2009_v36 = vpop.xlane.xlu1 %2008  ;;  %6338 = vst [vmem:[#allocation190_spill] sm:$0xff] %v4944_v57 }
 0x1cb   :  { %v4912_v44 = vmax.f32 %v4901_v30, %v2009_v36  ;;  %v4930_v30 = vld [vmem:[#allocation5 + $0x58] sm:$0xff] }
 0x1cc   :  { %6334 = vst [vmem:[#allocation186_spill] sm:$0xff] %v4930_v30 }
 0x1cd   :  { %6327 = vst [vmem:[#allocation13_spill] sm:$0xff] %v4912_v44  ;;  %2568 = vst.msk [vmem:[#allocation5 + $0x40] sm:$0xff] %vm30_vm1, %v4912_v44 }
 0x1ce   :  { %v2014_v35 = vpop.xlane.xlu0 %2013 }
 0x1cf   :  { %v4921_v39 = vmax.f32 %v4914_v27, %v2014_v35  ;;  %1263 = vmax.xlane.f32.xlu1 %v1262_v54  ;;  %1288 = vmax.xlane.f32.xlu0 %v1287_v29  ;;  %v4937_v54 = vld [vmem:[#allocation5 + $0x60] sm:$0xff] }
 0x1d0   :  { %6336 = vst [vmem:[#allocation188_spill] sm:$0xff] %v4937_v54  ;;  %v6346_v27 = vld [vmem:[#allocation33_spill] sm:$0xff] }
 0x1d1   :  { %6331 = vst [vmem:[#allocation183_spill] sm:$0xff] %v4921_v39  ;;  %2569 = vst.msk [vmem:[#allocation5 + $0x48] sm:$0xff] %vm30_vm1, %v4921_v39  ;;  %vm1150_vm12 = vcmp.eq.f32.partialorder %v6346_v27, %v4718_v20  ;;  %v6358_v27 = vld [vmem:[#allocation106_spill] sm:$0xff] }
 0x1d2   :  { %v2019_v6 = vpop.xlane.xlu1 %2018 }
 0x1d3   :  { %v4928_v36 = vmax.f32 %v4923_v58, %v2019_v6 }
 0x1d5   :  { %6333 = vst [vmem:[#allocation185_spill] sm:$0xff] %v4928_v36  ;;  %2570 = vst.msk [vmem:[#allocation5 + $0x50] sm:$0xff] %vm30_vm1, %v4928_v36  ;;  %v6354_v36 = vld [vmem:[#allocation83_spill] sm:$0xff] }
 0x1d6   :  { %v2024_v5 = vpop.xlane.xlu0 %2023 }
 0x1d7   :  { %v4935_v25 = vmax.f32 %v4930_v30, %v2024_v5  ;;  %v4952_v5 = vld [vmem:[#allocation5 + $0x70] sm:$0xff]  ;;  %v4968_v30 = vld [vmem:[#allocation5 + $0x80] sm:$0xff] }
 0x1d8   :  { %6340 = vst [vmem:[#allocation192_spill] sm:$0xff] %v4952_v5  ;;  %6344 = vst [vmem:[#allocation196_spill] sm:$0xff] %v4968_v30 }
 0x1d9   :  { %6335 = vst [vmem:[#allocation187_spill] sm:$0xff] %v4935_v25  ;;  %2571 = vst.msk [vmem:[#allocation5 + $0x58] sm:$0xff] %vm30_vm1, %v4935_v25 }
 0x1da   :  { %v2029_v29 = vpop.xlane.xlu1 %2028 }
 0x1db   :  { %v4942_v26 = vmax.f32 %v4937_v54, %v2029_v29  ;;  %v4960_v54 = vld [vmem:[#allocation5 + $0x78] sm:$0xff] }
 0x1dc   :  { %6342 = vst [vmem:[#allocation194_spill] sm:$0xff] %v4960_v54 }
 0x1dd   :  { %6337 = vst [vmem:[#allocation189_spill] sm:$0xff] %v4942_v26  ;;  %2572 = vst.msk [vmem:[#allocation5 + $0x60] sm:$0xff] %vm30_vm1, %v4942_v26 }
 0x1de   :  { %v2034_v35 = vpop.xlane.xlu0 %2033 }
 0x1df   :  { %v4949_v6 = vmax.f32 %v4944_v57, %v2034_v35 }
 0x1e0   :  { %1476 = vperm.xlu1 %2936, %v4652_v38   ;;  %v6349_v38 = vld [vmem:[#allocation103_spill] sm:$0xff] }
 0x1e1   :  { %6339 = vst [vmem:[#allocation191_spill] sm:$0xff] %v4949_v6  ;;  %2573 = vst.msk [vmem:[#allocation5 + $0x68] sm:$0xff] %vm30_vm1, %v4949_v6 }
 0x1e2   :  { %v2039_v58 = vpop.xlane.xlu1 %2038 }
 0x1e3   :  { %v4957_v29 = vmax.f32 %v4952_v5, %v2039_v58 }
 0x1e4   :  { %1481 = vperm.xlu1 %2936, %v4664_v17   ;;  %v6355_v17 = vld [vmem:[#allocation104_spill] sm:$0xff] }
 0x1e5   :  { %6341 = vst [vmem:[#allocation193_spill] sm:$0xff] %v4957_v29  ;;  %2574 = vst.msk [vmem:[#allocation5 + $0x70] sm:$0xff] %vm30_vm1, %v4957_v29  ;;  %1506 = vperm.xlu0 %2935, %v4750_v28   ;;  %v6347_v28 = vld [vmem:[#allocation35_spill] sm:$0xff]  ;;  %v6351_v29 = vld [vmem:[#allocation17_spill] sm:$0xff] }
 0x1e6   :  { %v2044_v35 = vpop.xlane.xlu0 %2043  ;;  %vm1151_vm13 = vcmp.eq.f32.partialorder %v6347_v28, %v4718_v20  ;;  %vm1131_vm15 = vcmp.eq.f32.partialorder %v6351_v29, %v4644_v47  ;;  %v6357_v28 = vld [vmem:[#allocation18_spill] sm:$0xff] }
 0x1e7   :  { %v4966_v57 = vmax.f32 %v4960_v54, %v2044_v35  ;;  %v6348_v35 = vld [vmem:[#allocation101_spill] sm:$0xff]  ;;  %v1219_v42 = vsel %vm1151_vm13, %v6349_v38, -inf  ;;  %v1199_v44 = vsel %vm1131_vm15, %v6354_v36, -inf  ;;  %vm1132_vm4 = vcmp.eq.f32.partialorder %v6357_v28, %v4644_v47  ;;  %v6361_v36 = vld [vmem:[#allocation86_spill] sm:$0xff] }
 0x1e8   :  { %v1218_v54 = vsel %vm1150_vm12, %v6348_v35, -inf  ;;  %v6356_v35 = vld [vmem:[#allocation38_spill] sm:$0xff]  ;;  %v1200_v18 = vsel %vm1132_vm4, %v6359_v24, -inf  ;;  %vm1161_vm15 = vcmp.eq.f32.partialorder %v6374_v37, %v4760_v14  ;;  %v6375_v24 = vld [vmem:[#allocation24_spill] sm:$0xff] }
 0x1e9   :  { %6343 = vst [vmem:[#allocation195_spill] sm:$0xff] %v4966_v57  ;;  %2575 = vst.msk [vmem:[#allocation5 + $0x78] sm:$0xff] %vm30_vm1, %v4966_v57  ;;  %vm1153_vm2 = vcmp.eq.f32.partialorder %v6356_v35, %v4718_v20 }
 0x1ea   :  { %v2049_v58 = vpop.xlane.xlu1 %2048  ;;  %v1221_v29 = vsel %vm1153_vm2, %v6358_v27, -inf }
 0x1eb   :  { %v4973_v5 = vmax.f32 %v4968_v30, %v2049_v58  ;;  %v6352_v58 = vld [vmem:[#allocation36_spill] sm:$0xff]  ;;  %v1295_v30 = vmax.f32 %v1218_v54, %v1219_v42  ;;  %v6360_v42 = vld [vmem:[#allocation19_spill] sm:$0xff] }
 0x1ec   :  { %vm1152_vm0 = vcmp.eq.f32.partialorder %v6352_v58, %v4718_v20  ;;  %vm1133_vm5 = vcmp.eq.f32.partialorder %v6360_v42, %v4644_v47 }
 0x1ed   :  { %6345 = vst [vmem:[#allocation197_spill] sm:$0xff] %v4973_v5  ;;  %2576 = vst.msk [vmem:[#allocation5 + $0x80] sm:$0xff] %vm30_vm1, %v4973_v5  ;;  %v6353_v5 = vld [vmem:[#allocation81_spill] sm:$0xff]  ;;  %v1220_v50 = vsel %vm1152_vm0, %v6355_v17, -inf }
 0x1ee   :  { %v1198_v26 = vsel %vm1130_vm14, %v6353_v5, -inf  ;;  %v1296_v38 = vmax.f32 %v1295_v30, %v1220_v50  ;;  %v1201_v5 = vsel %vm1133_vm5, %v6361_v36, -inf  ;;  %v5001_v35 = vpop.permute.xlu0 %1456  ;;  %v1881_v30 = vld [vmem:[#allocation4 + $0x8] sm:$0xff]  ;;  %v5005_v50 = vpop.permute.xlu1 %1461  ;;  %vm1160_vm14 = vcmp.eq.f32.partialorder %v6370_v0, %v4760_v14 }
 0x1ef   :  { %v1270_v48 = vmax.f32 %v1198_v26, %v1199_v44  ;;  %6362 = vst [vmem:[#allocation198_spill] sm:$0xff] %v5005_v50 }
 0x1f0   :  { %v1297_v58 = vmax.f32 %v1296_v38, %v1221_v29 }
 0x1f1   :  { %v1271_v54 = vmax.f32 %v1270_v48, %v1200_v18  ;;  %v1880_v18 = vld [vmem:[#allocation4] sm:$0xff]  ;;  %v1883_v48 = vld [vmem:[#allocation4 + $0x18] sm:$0xff] }
 0x1f3   :  { %v1272_v17 = vmax.f32 %v1271_v54, %v1201_v5 }
 0x204   :  { %1298 = vmax.xlane.f32.xlu0 %v1297_v58 }
 0x208   :  { %1273 = vmax.xlane.f32.xlu1 %v1272_v17 }
 0x219   :  { %1486 = vperm.xlu1 %2936, %v4672_v46  }
 0x21a   :  { %1516 = vperm.xlu0 %2935, %v4780_v60   ;;  %v6373_v60 = vld [vmem:[#allocation112_spill] sm:$0xff] }
 0x21b   :  { %v1259_v38 = vpop.xlane.xlu0 %1258  ;;  %v1228_v46 = vsel %vm1160_vm14, %v6373_v60, -inf  ;;  %vm1872_vm14 = vcmp.gt.f32.partialorder %v4718_v20, %v4725_v3 }
 0x21c   :  { %v1898_v44 = vsel %vm1864_vm6, %v1259_v38, %v1881_v30  ;;  %v6365_v30 = vld [vmem:[#allocation109_spill] sm:$0xff] }
 0x21d   :  { %1915 = vst.msk [vmem:[#allocation4 + $0x8] sm:$0xff] %vm30_vm1, %v1898_v44  ;;  %v1226_v38 = vsel %vm1158_vm10, %v6365_v30, -inf  ;;  %v6366_v44 = vld [vmem:[#allocation111_spill] sm:$0xff] }
 0x21f   :  { %v1254_v17 = vpop.xlane.xlu1 %1253  ;;  %v1269_v26 = vpop.xlane.xlu0 %1268 }
 0x220   :  { %v1897_v5 = vsel %vm1863_vm7, %v1254_v17, %v1880_v18  ;;  %v1900_v29 = vsel %vm1866_vm8, %v1269_v26, %v1883_v48  ;;  %v1227_v18 = vsel %vm1159_vm11, %v6366_v44, -inf  ;;  %v6367_v48 = vld [vmem:[#allocation145_spill] sm:$0xff]  ;;  %v6369_v26 = vld [vmem:[#allocation23_spill] sm:$0xff]  ;;  %v6376_v44 = vld [vmem:[#allocation114_spill] sm:$0xff] }
 0x221   :  { %1914 = vst.msk [vmem:[#allocation4] sm:$0xff] %vm30_vm1, %v1897_v5  ;;  %1917 = vst.msk [vmem:[#allocation4 + $0x18] sm:$0xff] %vm30_vm1, %v1900_v29  ;;  %v6368_v17 = vld [vmem:[#allocation21_spill] sm:$0xff]  ;;  %vm1139_vm13 = vcmp.eq.f32.partialorder %v6369_v26, %v6367_v48  ;;  %v1305_v5 = vmax.f32 %v1226_v38, %v1227_v18  ;;  %vm1140_vm0 = vcmp.eq.f32.partialorder %v6375_v24, %v6367_v48  ;;  %v1229_v30 = vsel %vm1161_vm15, %v6376_v44, -inf  ;;  %v6377_v26 = vld [vmem:[#allocation92_spill] sm:$0xff] }
 0x222   :  { %vm1138_vm12 = vcmp.eq.f32.partialorder %v6368_v17, %v6367_v48  ;;  %v6371_v29 = vld [vmem:[#allocation89_spill] sm:$0xff]  ;;  %v1208_v17 = vsel %vm1140_vm0, %v6377_v26, -inf  ;;  %v6378_v38 = vld [vmem:[#allocation26_spill] sm:$0xff]  ;;  %v6386_v26 = vld [vmem:[#allocation52_spill] sm:$0xff] }
 0x223   :  { %v1279_v58 = vpop.xlane.xlu0 %1278  ;;  %v1306_v36 = vmax.f32 %v1305_v5, %v1228_v46  ;;  %vm1141_vm2 = vcmp.eq.f32.partialorder %v6378_v38, %v6367_v48  ;;  %v5043_v28 = vpop.permute.xlu1 %1466  ;;  %v1887_v5 = vld [vmem:[#allocation4 + $0x38] sm:$0xff]  ;;  %vm1168_vm8 = vcmp.eq.f32.partialorder %v6386_v26, %v4786_v55  ;;  %v6391_v44 = vld [vmem:[#allocation97_spill] sm:$0xff]  ;;  %v6393_v24 = vld [vmem:[#allocation122_spill] sm:$0xff] }
 0x224   :  { %v1902_v54 = vsel %vm1868_vm9, %v1279_v58, %v1885_v19  ;;  %v1206_v19 = vsel %vm1138_vm12, %v6371_v29, -inf  ;;  %v6372_v58 = vld [vmem:[#allocation91_spill] sm:$0xff] }
 0x225   :  { %1919 = vst.msk [vmem:[#allocation4 + $0x28] sm:$0xff] %vm30_vm1, %v1902_v54  ;;  %v1207_v54 = vsel %vm1139_vm13, %v6372_v58, -inf  ;;  %v1307_v42 = vmax.f32 %v1306_v36, %v1229_v30  ;;  %v6379_v58 = vld [vmem:[#allocation94_spill] sm:$0xff]  ;;  %v6392_v38 = vld [vmem:[#allocation99_spill] sm:$0xff] }
 0x226   :  { %v1280_v27 = vmax.f32 %v1206_v19, %v1207_v54  ;;  %v1209_v29 = vsel %vm1141_vm2, %v6379_v58, -inf  ;;  %v1882_v30 = vld [vmem:[#allocation4 + $0x10] sm:$0xff]  ;;  %v6382_v54 = vld [vmem:[#allocation49_spill] sm:$0xff] }
 0x227   :  { %v5048_v46 = vpop.permute.xlu1 %1471  ;;  %vm1166_vm6 = vcmp.eq.f32.partialorder %v6382_v54, %v4786_v55 }
 0x228   :  { %v1281_v18 = vmax.f32 %v1280_v27, %v1208_v17  ;;  %v6380_v27 = vld [vmem:[#allocation137_spill] sm:$0xff]  ;;  %v6381_v17 = vld [vmem:[#allocation147_spill] sm:$0xff] }
 0x229   :  { %vm1865_vm4 = vcmp.gt.f32.partialorder %v4622_v63, %v6380_v27  ;;  %vm1870_vm5 = vcmp.gt.f32.partialorder %v4682_v1, %v6381_v17  ;;  %v6385_v63 = vld [vmem:[#allocation119_spill] sm:$0xff] }
 0x22a   :  { %v1282_v60 = vmax.f32 %v1281_v18, %v1209_v29  ;;  %v6383_v18 = vld [vmem:[#allocation51_spill] sm:$0xff] }
 0x22b   :  { %v5050_v36 = vpop.permute.xlu0 %1491  ;;  %vm1167_vm7 = vcmp.eq.f32.partialorder %v6383_v18, %v4786_v55 }
 0x22c   :  { %v1235_v58 = vsel %vm1167_vm7, %v6385_v63, -inf }
 0x239   :  { %1308 = vmax.xlane.f32.xlu0 %v1307_v42 }
 0x23d   :  { %1283 = vmax.xlane.f32.xlu1 %v1282_v60 }
 0x24e   :  { %1496 = vperm.xlu1 %2936, %v4710_v32  }
 0x24f   :  { %1526 = vperm.xlu0 %2935, %v4800_v2   ;;  %v6384_v2 = vld [vmem:[#allocation117_spill] sm:$0xff] }
 0x250   :  { %v1234_v32 = vsel %vm1166_vm6, %v6384_v2, -inf }
 0x251   :  { %v1315_v1 = vmax.f32 %v1234_v32, %v1235_v58  ;;  %v6394_v32 = vld [vmem:[#allocation32_spill] sm:$0xff] }
 0x252   :  { %1501 = vperm.xlu1 %2936, %v4739_v45   ;;  %vm1148_vm12 = vcmp.eq.f32.partialorder %v6394_v32, %v4700_v56  ;;  %v6397_v45 = vld [vmem:[#allocation102_spill] sm:$0xff] }
 0x253   :  { %v6412_v32 = vld [vmem:[#allocation130_spill] sm:$0xff] }
 0x258   :  { %v1264_v42 = vpop.xlane.xlu1 %1263  ;;  %v1289_v60 = vpop.xlane.xlu0 %1288 }
 0x259   :  { %v1899_v29 = vsel %vm1865_vm4, %v1264_v42, %v1882_v30  ;;  %v1904_v19 = vsel %vm1870_vm5, %v1289_v60, %v1887_v5  ;;  %v6387_v30 = vld [vmem:[#allocation29_spill] sm:$0xff]  ;;  %v6388_v5 = vld [vmem:[#allocation31_spill] sm:$0xff]  ;;  %v6389_v42 = vld [vmem:[#allocation120_spill] sm:$0xff] }
 0x25a   :  { %1916 = vst.msk [vmem:[#allocation4 + $0x10] sm:$0xff] %vm30_vm1, %v1899_v29  ;;  %1921 = vst.msk [vmem:[#allocation4 + $0x38] sm:$0xff] %vm30_vm1, %v1904_v19  ;;  %vm1146_vm9 = vcmp.eq.f32.partialorder %v6387_v30, %v4700_v56  ;;  %vm1147_vm10 = vcmp.eq.f32.partialorder %v6388_v5, %v4700_v56  ;;  %v1236_v60 = vsel %vm1168_vm8, %v6389_v42, -inf  ;;  %v6390_v29 = vld [vmem:[#allocation54_spill] sm:$0xff]  ;;  %v6395_v30 = vld [vmem:[#allocation100_spill] sm:$0xff] }
 0x25b   :  { %vm1169_vm11 = vcmp.eq.f32.partialorder %v6390_v29, %v4786_v55  ;;  %v1316_v19 = vmax.f32 %v1315_v1, %v1236_v60  ;;  %v1214_v2 = vsel %vm1146_vm9, %v6391_v44, -inf  ;;  %v1215_v63 = vsel %vm1147_vm10, %v6392_v38, -inf  ;;  %v6396_v42 = vld [vmem:[#allocation34_spill] sm:$0xff] }
 0x25c   :  { %v1237_v50 = vsel %vm1169_vm11, %v6393_v24, -inf  ;;  %v1290_v58 = vmax.f32 %v1214_v2, %v1215_v63  ;;  %v1216_v5 = vsel %vm1148_vm12, %v6395_v30, -inf  ;;  %vm1149_vm13 = vcmp.eq.f32.partialorder %v6396_v42, %v4700_v56  ;;  %v5083_v38 = vpop.permute.xlu1 %1476  ;;  %v1889_v2 = vld [vmem:[#allocation4 + $0x48] sm:$0xff]  ;;  %v6404_v30 = vld [vmem:[#allocation127_spill] sm:$0xff] }
 0x25d   :  { %v1317_v17 = vmax.f32 %v1316_v19, %v1237_v50  ;;  %v1217_v1 = vsel %vm1149_vm13, %v6397_v45, -inf  ;;  %6398 = vst [vmem:[#allocation41_spill] sm:$0xff] %v5083_v38  ;;  %v6400_v19 = vld [vmem:[#allocation141_spill] sm:$0xff]  ;;  %v6411_v42 = vld [vmem:[#allocation107_spill] sm:$0xff]  ;;  %vm1874_vm10 = vcmp.gt.f32.partialorder %v4760_v14, %v4762_v43 }
 0x25e   :  { %v1291_v12 = vmax.f32 %v1290_v58, %v1216_v5  ;;  %vm1867_vm15 = vcmp.gt.f32.partialorder %v4644_v47, %v6400_v19  ;;  %v6403_v45 = vld [vmem:[#allocation125_spill] sm:$0xff]  ;;  %v6409_v19 = vld [vmem:[#allocation62_spill] sm:$0xff] }
 0x25f   :  { %v6406_v47 = vld [vmem:[#allocation37_spill] sm:$0xff]  ;;  %vm1177_vm7 = vcmp.eq.f32.partialorder %v6409_v19, %v4806_v33  ;;  %v6416_v19 = vld [vmem:[#allocation110_spill] sm:$0xff] }
 0x260   :  { %v1292_v60 = vmax.f32 %v1291_v12, %v1217_v1  ;;  %v5086_v50 = vpop.permute.xlu0 %1506  ;;  %v1884_v12 = vld [vmem:[#allocation4 + $0x20] sm:$0xff]  ;;  %vm1154_vm5 = vcmp.eq.f32.partialorder %v6406_v47, %v4741_v7  ;;  %v6410_v24 = vld [vmem:[#allocation105_spill] sm:$0xff] }
 0x261   :  { %6399 = vst [vmem:[#allocation43_spill] sm:$0xff] %v5086_v50  ;;  %v1245_v50 = vsel %vm1177_vm7, %v6412_v32, -inf  ;;  %v6414_v47 = vld [vmem:[#allocation108_spill] sm:$0xff]  ;;  %v6418_v14 = vld [vmem:[#allocation45_spill] sm:$0xff] }
 0x262   :  { %vm1162_vm12 = vcmp.eq.f32.partialorder %v6418_v14, %v4775_v49 }
 0x26e   :  { %1318 = vmax.xlane.f32.xlu0 %v1317_v17  ;;  %v5088_v17 = vpop.permute.xlu1 %1481 }
 0x276   :  { %1293 = vmax.xlane.f32.xlu1 %v1292_v60  ;;  %v6401_v60 = vld [vmem:[#allocation57_spill] sm:$0xff] }
 0x277   :  { %vm1174_vm0 = vcmp.eq.f32.partialorder %v6401_v60, %v4806_v33 }
 0x278   :  { %v1242_v20 = vsel %vm1174_vm0, %v6403_v45, -inf  ;;  %v1222_v45 = vsel %vm1154_vm5, %v6410_v24, -inf }
 0x284   :  { %1536 = vperm.xlu0 %2935, %v4821_v13   ;;  %v6402_v13 = vld [vmem:[#allocation59_spill] sm:$0xff] }
 0x285   :  { %vm1175_vm2 = vcmp.eq.f32.partialorder %v6402_v13, %v4806_v33 }
 0x287   :  { %1511 = vperm.xlu1 %2936, %v4773_v23  }
 0x28d   :  { %v1299_v63 = vpop.xlane.xlu0 %1298 }
 0x28e   :  { %v1906_v5 = vsel %vm1872_vm14, %v1299_v63, %v1889_v2  ;;  %v1243_v2 = vsel %vm1175_vm2, %v6404_v30, -inf  ;;  %v6405_v63 = vld [vmem:[#allocation60_spill] sm:$0xff] }
 0x28f   :  { %1923 = vst.msk [vmem:[#allocation4 + $0x48] sm:$0xff] %vm30_vm1, %v1906_v5  ;;  %vm1176_vm4 = vcmp.eq.f32.partialorder %v6405_v63, %v4806_v33  ;;  %v1325_v5 = vmax.f32 %v1242_v20, %v1243_v2  ;;  %v6413_v20 = vld [vmem:[#allocation40_spill] sm:$0xff] }
 0x290   :  { %vm1156_vm8 = vcmp.eq.f32.partialorder %v6413_v20, %v4741_v7 }
 0x291   :  { %v1274_v58 = vpop.xlane.xlu1 %1273 }
 0x292   :  { %v1901_v1 = vsel %vm1867_vm15, %v1274_v58, %v1884_v12  ;;  %v6407_v12 = vld [vmem:[#allocation39_spill] sm:$0xff]  ;;  %v6408_v58 = vld [vmem:[#allocation128_spill] sm:$0xff] }
 0x293   :  { %1918 = vst.msk [vmem:[#allocation4 + $0x20] sm:$0xff] %vm30_vm1, %v1901_v1  ;;  %vm1155_vm6 = vcmp.eq.f32.partialorder %v6407_v12, %v4741_v7  ;;  %v1244_v1 = vsel %vm1176_vm4, %v6408_v58, -inf  ;;  %v1224_v12 = vsel %vm1156_vm8, %v6414_v47, -inf  ;;  %v6415_v58 = vld [vmem:[#allocation42_spill] sm:$0xff] }
 0x294   :  { %v1326_v44 = vmax.f32 %v1325_v5, %v1244_v1  ;;  %v1223_v30 = vsel %vm1155_vm6, %v6411_v42, -inf  ;;  %vm1157_vm9 = vcmp.eq.f32.partialorder %v6415_v58, %v4741_v7 }
 0x295   :  { %v1300_v2 = vmax.f32 %v1222_v45, %v1223_v30  ;;  %v1225_v5 = vsel %vm1157_vm9, %v6416_v19, -inf  ;;  %v1891_v45 = vld [vmem:[#allocation4 + $0x58] sm:$0xff] }
 0x296   :  { %v1327_v38 = vmax.f32 %v1326_v44, %v1245_v50  ;;  %v5123_v44 = vpop.permute.xlu0 %1516 }
 0x297   :  { %v1301_v63 = vmax.f32 %v1300_v2, %v1224_v12  ;;  %v6417_v12 = vld [vmem:[#allocation143_spill] sm:$0xff] }
 0x298   :  { %vm1869_vm11 = vcmp.gt.f32.partialorder %v6367_v48, %v6417_v12  ;;  %v6421_v48 = vld [vmem:[#allocation8_spill] sm:$0xff] }
 0x299   :  { %v1302_v1 = vmax.f32 %v1301_v63, %v1225_v5  ;;  %v1886_v63 = vld [vmem:[#allocation4 + $0x30] sm:$0xff] }
 0x2a3   :  { %1328 = vmax.xlane.f32.xlu0 %v1327_v38  ;;  %v5126_v38 = vpop.permute.xlu1 %1486 }
 0x2ab   :  { %1303 = vmax.xlane.f32.xlu1 %v1302_v1  ;;  %v6419_v1 = vld [vmem:[#allocation47_spill] sm:$0xff] }
 0x2ac   :  { %vm1163_vm13 = vcmp.eq.f32.partialorder %v6419_v1, %v4775_v49 }
 0x2b9   :  { %2159 = vperm.xlu0 %2935, %v4840_v10   ;;  %v6425_v10 = vld [vmem:[#allocation50_spill] sm:$0xff] }
 0x2ba   :  { %vm1165_vm15 = vcmp.eq.f32.partialorder %v6425_v10, %v4775_v49 }
 0x2bc   :  { %1521 = vperm.xlu1 %2936, %v4794_v61  }
 0x2bd   :  { %2169 = vperm.xlu0 %2935, %v4855_v11   ;;  %v1548_v11 = vsub.f32 %v3882_v8, %v5043_v28  ;;  %v6427_v8 = vld [vmem:[#allocation14_spill] sm:$0xff] }
 0x2bf   :  { %v1625_v12 = vmul.f32 1.442695, %v1548_v11 }
 0x2c1   :  { %2179 = vperm.xlu0 %2935, %v4871_v31  }
 0x2c2   :  { %v1309_v30 = vpop.xlane.xlu0 %1308 }
 0x2c3   :  { %v1908_v50 = vsel %vm1874_vm10, %v1309_v30, %v1891_v45  ;;  %v6420_v45 = vld [vmem:[#allocation7_spill] sm:$0xff] }
 0x2c4   :  { %1925 = vst.msk [vmem:[#allocation4 + $0x58] sm:$0xff] %vm30_vm1, %v1908_v50  ;;  %v1539_v30 = vsub.f32 %v6420_v45, %v5001_v35  ;;  %v1540_v50 = vsub.f32 %v6421_v48, %v5001_v35  ;;  %v6424_v45 = vld [vmem:[#allocation48_spill] sm:$0xff]  ;;  %v1541_v48 = vsub.f32 %v3851_v51, %v5001_v35 }
 0x2c5   :  { %2189 = vperm.xlu0 %2935, %v4899_v62   ;;  %vm1164_vm14 = vcmp.eq.f32.partialorder %v6424_v45, %v4775_v49 }
 0x2c6   :  { %v1284_v2 = vpop.xlane.xlu1 %1283  ;;  %v1607_v62 = vmul.f32 1.442695, %v1539_v30  ;;  %v1609_v31 = vmul.f32 1.442695, %v1540_v50  ;;  %v1611_v51 = vmul.f32 1.442695, %v1541_v48 }
 0x2c7   :  { %v1903_v5 = vsel %vm1869_vm11, %v1284_v2, %v1886_v63  ;;  %v6422_v63 = vld [vmem:[#allocation113_spill] sm:$0xff] }
 0x2c8   :  { %1920 = vst.msk [vmem:[#allocation4 + $0x30] sm:$0xff] %vm30_vm1, %v1903_v5  ;;  %v1230_v2 = vsel %vm1162_vm12, %v6422_v63, -inf  ;;  %v6423_v5 = vld [vmem:[#allocation115_spill] sm:$0xff]  ;;  %2937 = vpow2.f32 %v1607_v62 }
 0x2c9   :  { %2199 = vperm.xlu0 %2935, %v4921_v39   ;;  %v1231_v39 = vsel %vm1163_vm13, %v6423_v5, -inf  ;;  %2939 = vpow2.f32 %v1609_v31  ;;  %v1552_v5 = vsub.f32 %v6427_v8, %v5048_v46  ;;  %v6428_v31 = vld [vmem:[#allocation118_spill] sm:$0xff] }
 0x2ca   :  { %v5168_v62 = vpop.permute.xlu1 %1496  ;;  %v1233_v11 = vsel %vm1165_vm15, %v6428_v31, -inf }
 0x2cd   :  { %2209 = vperm.xlu0 %2935, %v4935_v25   ;;  %v1547_v25 = vsub.f32 %v3876_v4, %v5043_v28  ;;  %v1551_v4 = vsub.f32 %v4070_v16, %v5048_v46  ;;  %v1559_v16 = vsub.f32 %v4109_v41, %v5088_v17  ;;  %v1553_v41 = vsub.f32 %v4080_v21, %v5048_v46  ;;  %v6432_v21 = vld [vmem:[#allocation20_spill] sm:$0xff] }
 0x2ce   :  { %v1502_v8 = vpop.permute.xlu1 %1501 }
 0x2cf   :  { %v1623_v30 = vmul.f32 1.442695, %v1547_v25  ;;  %v1631_v25 = vmul.f32 1.442695, %v1551_v4  ;;  %v6429_v4 = vld [vmem:[#allocation25_spill] sm:$0xff] }
 0x2d1   :  { %2219 = vperm.xlu0 %2935, %v4949_v6   ;;  %v1310_v6 = vmax.f32 %v1230_v2, %v1231_v39  ;;  %v1542_v39 = vsub.f32 %v3863_v59, %v5001_v35  ;;  %v1549_v2 = vsub.f32 %v3885_v9, %v5043_v28  ;;  %2941 = vpow2.f32 %v1623_v30 }
 0x2d2   :  { %2943 = vpow2.f32 %v1625_v12  ;;  %v1560_v59 = vsub.f32 %v4115_v53, %v5088_v17  ;;  %v1550_v9 = vsub.f32 %v6325_v52, %v5043_v28  ;;  %v1647_v12 = vmul.f32 1.442695, %v1559_v16  ;;  %v6431_v52 = vld [vmem:[#allocation16_spill] sm:$0xff] }
 0x2d3   :  { %v1613_v48 = vmul.f32 1.442695, %v1542_v39  ;;  %2945 = vpow2.f32 %v1611_v51  ;;  %v1627_v30 = vmul.f32 1.442695, %v1549_v2  ;;  %v1554_v28 = vsub.f32 %v6431_v52, %v5048_v46 }
 0x2d4   :  { %2947 = vpow2.f32 %v1631_v25  ;;  %v1629_v39 = vmul.f32 1.442695, %v1550_v9  ;;  %v1635_v51 = vmul.f32 1.442695, %v1553_v41  ;;  %v1561_v2 = vsub.f32 %v6432_v21, %v5088_v17  ;;  %v6435_v9 = vld [vmem:[#allocation28_spill] sm:$0xff] }
 0x2d5   :  { %2229 = vperm.xlu0 %2935, %v4966_v57   ;;  %v6426_v57 = vld [vmem:[#allocation116_spill] sm:$0xff]  ;;  %v1569_v46 = vsub.f32 %v6435_v9, %v5050_v36 }
 0x2d6   :  { %v1232_v50 = vsel %vm1164_vm14, %v6426_v57, -inf  ;;  %v1651_v52 = vmul.f32 1.442695, %v1561_v2  ;;  %v6438_v9 = vld [vmem:[#allocation36_spill] sm:$0xff] }
 0x2d7   :  { %v1311_v63 = vmax.f32 %v1310_v6, %v1232_v50  ;;  %v1633_v6 = vmul.f32 1.442695, %v1552_v5  ;;  %v1567_v50 = vsub.f32 %v6429_v4, %v5050_v36  ;;  %v6430_v5 = vld [vmem:[#allocation27_spill] sm:$0xff] }
 0x2d8   :  { %v1568_v53 = vsub.f32 %v6430_v5, %v5050_v36  ;;  %v6434_v4 = vld [vmem:[#allocation35_spill] sm:$0xff] }
 0x2d9   :  { %v1312_v35 = vmax.f32 %v1311_v63, %v1233_v11  ;;  %2949 = vpow2.f32 %v1633_v6  ;;  %v1649_v63 = vmul.f32 1.442695, %v1560_v59  ;;  %v1663_v25 = vmul.f32 1.442695, %v1567_v50  ;;  %v6433_v11 = vld [vmem:[#allocation33_spill] sm:$0xff]  ;;  %v2938_v6 = vpop.eup %2937 }
 0x2da   :  { %2951 = vpow2.f32 %v1613_v48  ;;  %v1575_v16 = vsub.f32 %v6433_v11, %v1502_v8  ;;  %v1576_v59 = vsub.f32 %v6434_v4, %v1502_v8  ;;  %v2940_v5 = vpop.eup %2939  ;;  %v1637_v48 = vmul.f32 1.442695, %v1554_v28  ;;  %v6437_v11 = vld [vmem:[#allocation30_spill] sm:$0xff] }
 0x2db   :  { %2953 = vpow2.f32 %v1627_v30  ;;  %v6436_v30 = vld [vmem:[#allocation22_spill] sm:$0xff]  ;;  %v1667_v28 = vmul.f32 1.442695, %v1569_v46 }
 0x2dc   :  { %2955 = vpow2.f32 %v1647_v12  ;;  %v1562_v41 = vsub.f32 %v6436_v30, %v5088_v17  ;;  %v1679_v50 = vmul.f32 1.442695, %v1575_v16  ;;  %v1681_v21 = vmul.f32 1.442695, %v1576_v59  ;;  %v6439_v59 = vld [vmem:[#allocation38_spill] sm:$0xff] }
 0x2dd   :  { %2957 = vpow2.f32 %v1649_v63  ;;  %v6440_v46 = vld [vmem:[#allocation162_spill] sm:$0xff] }
 0x2de   :  { %2959 = vpow2.f32 %v1629_v39  ;;  %v2942_v12 = vpop.eup %2941  ;;  %v1570_v39 = vsub.f32 %v6437_v11, %v5050_v36  ;;  %v1653_v4 = vmul.f32 1.442695, %v1562_v41 }
 0x2df   :  { %2961 = vpow2.f32 %v1635_v51  ;;  %v2944_v63 = vpop.eup %2943  ;;  %v1577_v51 = vsub.f32 %v6438_v9, %v1502_v8 }
 0x2e0   :  { %1313 = vmax.xlane.f32.xlu1 %v1312_v35  ;;  %v1665_v35 = vmul.f32 1.442695, %v1568_v53  ;;  %2963 = vpow2.f32 %v1663_v25  ;;  %v1743_v53 = vadd.f32 %v2940_v5, %v2938_v6  ;;  %v2946_v31 = vpop.eup %2945  ;;  %v1753_v25 = vadd.f32 %v2944_v63, %v2942_v12  ;;  %v1893_v63 = vld [vmem:[#allocation4 + $0x68] sm:$0xff] }
 0x2e1   :  { %v2948_v17 = vpop.eup %2947  ;;  %v1578_v5 = vsub.f32 %v6439_v59, %v1502_v8 }
 0x2e2   :  { %2965 = vpow2.f32 %v1665_v35  ;;  %v1744_v2 = vadd.f32 %v2946_v31, %v1743_v53  ;;  %v1669_v35 = vmul.f32 1.442695, %v1570_v39 }
 0x2e3   :  { %2967 = vpow2.f32 %v1637_v48  ;;  %v1683_v48 = vmul.f32 1.442695, %v1577_v51  ;;  %v1685_v12 = vmul.f32 1.442695, %v1578_v5  ;;  %v6441_v51 = vld [vmem:[#allocation156_spill] sm:$0xff] }
 0x2e4   :  { %2969 = vpow2.f32 %v1651_v52  ;;  %vm1876_vm0 = vcmp.gt.f32.partialorder %v4786_v55, %v6441_v51 }
 0x2e5   :  { %2971 = vpow2.f32 %v1679_v50 }
 0x2e6   :  { %2973 = vpow2.f32 %v1681_v21  ;;  %v2950_v16 = vpop.eup %2949  ;;  %v5201_v21 = vpop.permute.xlu0 %1526 }
 0x2e7   :  { %2975 = vpow2.f32 %v1667_v28  ;;  %v2952_v6 = vpop.eup %2951  ;;  %v1758_v11 = vadd.f32 %v2950_v16, %v2948_v17 }
 0x2e8   :  { %2977 = vpow2.f32 %v1653_v4  ;;  %v2954_v36 = vpop.eup %2953  ;;  %v1745_v41 = vadd.f32 %v2952_v6, %v1744_v2 }
 0x2e9   :  { %v2956_v30 = vpop.eup %2955  ;;  %v1754_v52 = vadd.f32 %v2954_v36, %v1753_v25  ;;  %2979 = vpow2.f32 %v1669_v35 }
 0x2ea   :  { %v2958_v50 = vpop.eup %2957  ;;  %2981 = vpow2.f32 %v1683_v48 }
 0x2eb   :  { %v2960_v31 = vpop.eup %2959  ;;  %v1768_v4 = vadd.f32 %v2958_v50, %v2956_v30  ;;  %2983 = vpow2.f32 %v1685_v12  ;;  %v6442_v50 = vld [vmem:[#allocation149_spill] sm:$0xff] }
 0x2ec   :  { %v2962_v53 = vpop.eup %2961  ;;  %v1755_v8 = vadd.f32 %v2960_v31, %v1754_v52  ;;  %vm1871_vm2 = vcmp.gt.f32.partialorder %v4700_v56, %v6442_v50  ;;  %v6464_v50 = vld [vmem:[#allocation170_spill] sm:$0xff] }
 0x2ed   :  { %v2964_v39 = vpop.eup %2963  ;;  %v1759_v28 = vadd.f32 %v2962_v53, %v1758_v11 }
 0x2ef   :  { %v2966_v9 = vpop.eup %2965 }
 0x2f0   :  { %v2968_v17 = vpop.eup %2967  ;;  %v1778_v5 = vadd.f32 %v2966_v9, %v2964_v39 }
 0x2f1   :  { %1531 = vperm.xlu1 %2936, %v6440_v46   ;;  %v2970_v16 = vpop.eup %2969  ;;  %v1760_v6 = vadd.f32 %v2968_v17, %v1759_v28 }
 0x2f2   :  { %v2972_v35 = vpop.eup %2971  ;;  %v1769_v59 = vadd.f32 %v2970_v16, %v1768_v4  ;;  %v6444_v16 = vld [vmem:[#allocation53_spill] sm:$0xff] }
 0x2f3   :  { %v2974_v48 = vpop.eup %2973 }
 0x2f4   :  { %1746 = vadd.xlane.f32.xlu0 %v1745_v41  ;;  %v2976_v36 = vpop.eup %2975  ;;  %v1888_v41 = vld [vmem:[#allocation4 + $0x40] sm:$0xff]  ;;  %v1788_v55 = vadd.f32 %v2974_v48, %v2972_v35  ;;  %v6445_v35 = vld [vmem:[#allocation55_spill] sm:$0xff] }
 0x2f5   :  { %v2978_v30 = vpop.eup %2977  ;;  %v1779_v11 = vadd.f32 %v2976_v36, %v1778_v5  ;;  %v6447_v36 = vld [vmem:[#allocation123_spill] sm:$0xff] }
 0x2f6   :  { %v1770_v52 = vadd.f32 %v2978_v30, %v1769_v59  ;;  %v2980_v12 = vpop.eup %2979 }
 0x2f7   :  { %v1319_v2 = vpop.xlane.xlu0 %1318 }
 0x2f8   :  { %v1910_v25 = vsel %vm1876_vm0, %v1319_v2, %v1893_v63  ;;  %1756 = vadd.xlane.f32.xlu0 %v1755_v8  ;;  %v2982_v63 = vpop.eup %2981  ;;  %v1780_v8 = vadd.f32 %v2980_v12, %v1779_v11  ;;  %v6451_v12 = vld [vmem:[#allocation126_spill] sm:$0xff] }
 0x2f9   :  { %1927 = vst.msk [vmem:[#allocation4 + $0x68] sm:$0xff] %vm30_vm1, %v1910_v25  ;;  %v1789_v39 = vadd.f32 %v2982_v63, %v1788_v55  ;;  %v2984_v17 = vpop.eup %2983  ;;  %v6443_v25 = vld [vmem:[#allocation158_spill] sm:$0xff] }
 0x2fa   :  { %vm1170_vm4 = vcmp.eq.f32.partialorder %v6444_v16, %v6443_v25  ;;  %vm1171_vm5 = vcmp.eq.f32.partialorder %v6445_v35, %v6443_v25  ;;  %v6450_v55 = vld [vmem:[#allocation58_spill] sm:$0xff] }
 0x2fb   :  { %v1790_v5 = vadd.f32 %v2984_v17, %v1789_v39  ;;  %vm1173_vm7 = vcmp.eq.f32.partialorder %v6450_v55, %v6443_v25 }
 0x2fc   :  { %1761 = vadd.xlane.f32.xlu0 %v1760_v6 }
 0x2ff   :  { %v1294_v31 = vpop.xlane.xlu1 %1293 }
 0x300   :  { %v1905_v53 = vsel %vm1871_vm2, %v1294_v31, %v1888_v41  ;;  %1771 = vadd.xlane.f32.xlu0 %v1770_v52  ;;  %v6449_v52 = vld [vmem:[#allocation124_spill] sm:$0xff] }
 0x301   :  { %1922 = vst.msk [vmem:[#allocation4 + $0x40] sm:$0xff] %vm30_vm1, %v1905_v53  ;;  %v1241_v53 = vsel %vm1173_vm7, %v6451_v12, -inf }
 0x303   :  { %v1512_v28 = vpop.permute.xlu1 %1511 }
 0x304   :  { %v1583_v4 = vsub.f32 %v6363_v22, %v1512_v28  ;;  %v1584_v9 = vsub.f32 %v6364_v40, %v1512_v28  ;;  %v1585_v2 = vsub.f32 %v6370_v0, %v1512_v28  ;;  %1781 = vadd.xlane.f32.xlu0 %v1780_v8  ;;  %v1586_v56 = vsub.f32 %v6374_v37, %v1512_v28  ;;  %v6446_v22 = vld [vmem:[#allocation121_spill] sm:$0xff]  ;;  %v6448_v37 = vld [vmem:[#allocation56_spill] sm:$0xff] }
 0x305   :  { %v1238_v40 = vsel %vm1170_vm4, %v6446_v22, -inf  ;;  %v1239_v0 = vsel %vm1171_vm5, %v6447_v36, -inf  ;;  %vm1172_vm6 = vcmp.eq.f32.partialorder %v6448_v37, %v6443_v25  ;;  %v1372_v22 = vld [vmem:[#allocation3 + $0x18] sm:$0xff] }
 0x306   :  { %v1695_v6 = vmul.f32 1.442695, %v1583_v4  ;;  %v1697_v59 = vmul.f32 1.442695, %v1584_v9  ;;  %v1699_v48 = vmul.f32 1.442695, %v1585_v2  ;;  %v1320_v41 = vmax.f32 %v1238_v40, %v1239_v0 }
 0x307   :  { %v1701_v30 = vmul.f32 1.442695, %v1586_v56  ;;  %v1240_v11 = vsel %vm1172_vm6, %v6449_v52, -inf  ;;  %v6452_v56 = vld [vmem:[#allocation166_spill] sm:$0xff] }
 0x308   :  { %2985 = vpow2.f32 %v1695_v6  ;;  %1791 = vadd.xlane.f32.xlu0 %v1790_v5  ;;  %v1321_v31 = vmax.f32 %v1320_v41, %v1240_v11  ;;  %v5226_v6 = vpop.permute.xlu0 %1536  ;;  %v6453_v5 = vld [vmem:[#allocation160_spill] sm:$0xff]  ;;  %v1890_v0 = vld [vmem:[#allocation4 + $0x50] sm:$0xff] }
 0x309   :  { %2987 = vpow2.f32 %v1697_v59  ;;  %v1895_v59 = vld [vmem:[#allocation4 + $0x78] sm:$0xff]  ;;  %vm1878_vm8 = vcmp.gt.f32.partialorder %v4806_v33, %v6453_v5 }
 0x30a   :  { %2989 = vpow2.f32 %v1699_v48  ;;  %v1322_v63 = vmax.f32 %v1321_v31, %v1241_v53  ;;  %v6473_v5 = vld [vmem:[#allocation139_spill] sm:$0xff] }
 0x30b   :  { %2991 = vpow2.f32 %v1701_v30  ;;  %v6454_v30 = vld [vmem:[#allocation151_spill] sm:$0xff] }
 0x30c   :  { %vm1873_vm9 = vcmp.gt.f32.partialorder %v4741_v7, %v6454_v30 }
 0x315   :  { %v2986_v8 = vpop.eup %2985  ;;  %1323 = vmax.xlane.f32.xlu1 %v1322_v63 }
 0x316   :  { %v2988_v39 = vpop.eup %2987 }
 0x317   :  { %v1798_v28 = vadd.f32 %v2988_v39, %v2986_v8  ;;  %v2990_v4 = vpop.eup %2989  ;;  %v6455_v39 = vld [vmem:[#allocation163_spill] sm:$0xff] }
 0x318   :  { %v2992_v2 = vpop.eup %2991 }
 0x319   :  { %v1799_v9 = vadd.f32 %v2990_v4, %v1798_v28  ;;  %v6456_v28 = vld [vmem:[#allocation61_spill] sm:$0xff]  ;;  %v6457_v4 = vld [vmem:[#allocation63_spill] sm:$0xff] }
 0x31a   :  { %vm1178_vm10 = vcmp.eq.f32.partialorder %v6456_v28, %v6455_v39  ;;  %vm1179_vm11 = vcmp.eq.f32.partialorder %v6457_v4, %v6455_v39 }
 0x31b   :  { %v1800_v17 = vadd.f32 %v2992_v2, %v1799_v9 }
 0x31d   :  { %1801 = vadd.xlane.f32.xlu0 %v1800_v17  ;;  %v6458_v17 = vld [vmem:[#allocation129_spill] sm:$0xff] }
 0x326   :  { %2154 = vperm.xlu1 %2936, %v6452_v56  }
 0x32c   :  { %v1329_v48 = vpop.xlane.xlu0 %1328 }
 0x32d   :  { %v1912_v40 = vsel %vm1878_vm8, %v1329_v48, %v1895_v59  ;;  %v1246_v59 = vsel %vm1178_vm10, %v6458_v17, -inf  ;;  %v6459_v48 = vld [vmem:[#allocation131_spill] sm:$0xff] }
 0x32e   :  { %1929 = vst.msk [vmem:[#allocation4 + $0x78] sm:$0xff] %vm30_vm1, %v1912_v40  ;;  %v6461_v40 = vld [vmem:[#allocation132_spill] sm:$0xff] }
 0x334   :  { %v1304_v41 = vpop.xlane.xlu1 %1303  ;;  %v5250_v30 = vpop.permute.xlu0 %2159 }
 0x335   :  { %v1907_v11 = vsel %vm1873_vm9, %v1304_v41, %v1890_v0  ;;  %v6462_v41 = vld [vmem:[#allocation66_spill] sm:$0xff] }
 0x336   :  { %1924 = vst.msk [vmem:[#allocation4 + $0x50] sm:$0xff] %vm30_vm1, %v1907_v11  ;;  %vm1181_vm13 = vcmp.eq.f32.partialorder %v6462_v41, %v6455_v39 }
 0x338   :  { %v1522_v31 = vpop.permute.xlu1 %1521 }
 0x339   :  { %v1591_v53 = vsub.f32 %v6382_v54, %v1522_v31  ;;  %v1592_v63 = vsub.f32 %v6383_v18, %v1522_v31  ;;  %v1593_v8 = vsub.f32 %v6386_v26, %v1522_v31  ;;  %v1594_v33 = vsub.f32 %v6390_v29, %v1522_v31  ;;  %v6460_v26 = vld [vmem:[#allocation64_spill] sm:$0xff]  ;;  %v6463_v31 = vld [vmem:[#allocation133_spill] sm:$0xff] }
 0x33a   :  { %v1247_v54 = vsel %vm1179_vm11, %v6459_v48, -inf  ;;  %vm1180_vm12 = vcmp.eq.f32.partialorder %v6460_v26, %v6455_v39 }
 0x33b   :  { %v1711_v7 = vmul.f32 1.442695, %v1591_v53  ;;  %v1713_v9 = vmul.f32 1.442695, %v1592_v63  ;;  %v1715_v2 = vmul.f32 1.442695, %v1593_v8  ;;  %v1330_v29 = vmax.f32 %v1246_v59, %v1247_v54  ;;  %v5252_v54 = vpop.permute.xlu0 %2169 }
 0x33c   :  { %v1717_v18 = vmul.f32 1.442695, %v1594_v33  ;;  %v1248_v0 = vsel %vm1180_vm12, %v6461_v40, -inf  ;;  %v1249_v53 = vsel %vm1181_vm13, %v6463_v31, -inf }
 0x33d   :  { %2993 = vpow2.f32 %v1711_v7  ;;  %v1331_v11 = vmax.f32 %v1330_v29, %v1248_v0  ;;  %v6465_v29 = vld [vmem:[#allocation174_spill] sm:$0xff] }
 0x33e   :  { %2995 = vpow2.f32 %v1713_v9 }
 0x33f   :  { %2997 = vpow2.f32 %v1715_v2  ;;  %v1332_v63 = vmax.f32 %v1331_v11, %v1249_v53  ;;  %v6466_v11 = vld [vmem:[#allocation144_spill] sm:$0xff] }
 0x340   :  { %2999 = vpow2.f32 %v1717_v18  ;;  %v5254_v18 = vpop.permute.xlu0 %2179  ;;  %v1391_v53 = vsub.f32 %v4658_v15, %v6466_v11  ;;  %v1397_v15 = vsub.f32 %v4762_v43, %v4773_v23 }
 0x342   :  { %v1413_v40 = vmul.f32 1.442695, %v1391_v53  ;;  %v1425_v23 = vmul.f32 1.442695, %v1397_v15  ;;  %v6483_v53 = vld [vmem:[#allocation185_spill] sm:$0xff]  ;;  %v6486_v15 = vld [vmem:[#allocation60_spill] sm:$0xff] }
 0x344   :  { %v5258_v0 = vpop.permute.xlu0 %2189 }
 0x348   :  { %v5276_v11 = vpop.permute.xlu0 %2199 }
 0x34a   :  { %v2994_v8 = vpop.eup %2993  ;;  %1333 = vmax.xlane.f32.xlu1 %v1332_v63  ;;  %v6467_v63 = vld [vmem:[#allocation178_spill] sm:$0xff] }
 0x34b   :  { %v2996_v7 = vpop.eup %2995 }
 0x34c   :  { %v1808_v9 = vadd.f32 %v2996_v7, %v2994_v8  ;;  %v2998_v33 = vpop.eup %2997  ;;  %v6468_v8 = vld [vmem:[#allocation134_spill] sm:$0xff] }
 0x34d   :  { %v3000_v56 = vpop.eup %2999  ;;  %v6469_v7 = vsub.f32 %v4596_v34, %v6468_v8  ;;  %v1892_v34 = vld [vmem:[#allocation4 + $0x60] sm:$0xff]  ;;  %v6477_v8 = vld [vmem:[#allocation147_spill] sm:$0xff] }
 0x34e   :  { %v1809_v2 = vadd.f32 %v2998_v33, %v1808_v9  ;;  %v6470_v9 = vld [vmem:[#allocation138_spill] sm:$0xff] }
 0x34f   :  { %v6471_v33 = vsub.f32 %v6380_v27, %v6470_v9  ;;  %v6478_v27 = vld [vmem:[#allocation148_spill] sm:$0xff] }
 0x350   :  { %v1810_v59 = vadd.f32 %v3000_v56, %v1809_v2  ;;  %v1403_v56 = vmul.f32 1.442695, %v6469_v7  ;;  %v6479_v7 = vsub.f32 %v6477_v8, %v6478_v27  ;;  %v5290_v27 = vpop.permute.xlu0 %2209 }
 0x351   :  { %v1407_v2 = vmul.f32 1.442695, %v6471_v33  ;;  %v6481_v33 = vld [vmem:[#allocation9_spill] sm:$0xff] }
 0x352   :  { %1811 = vadd.xlane.f32.xlu0 %v1810_v59  ;;  %v6472_v59 = vld [vmem:[#allocation152_spill] sm:$0xff]  ;;  %3001 = vpow2.f32 %v1403_v56  ;;  %v1417_v9 = vmul.f32 1.442695, %v6479_v7  ;;  %v6484_v56 = vld [vmem:[#allocation10_spill] sm:$0xff] }
 0x353   :  { %3003 = vpow2.f32 %v1407_v2 }
 0x35b   :  { %2164 = vperm.xlu1 %2936, %v6464_v50   ;;  %v1395_v50 = vsub.f32 %v4725_v3, %v6472_v59  ;;  %v6480_v3 = vld [vmem:[#allocation198_spill] sm:$0xff] }
 0x35c   :  { %v1543_v59 = vsub.f32 %v6481_v33, %v6480_v3  ;;  %v1544_v2 = vsub.f32 %v6484_v56, %v6480_v3  ;;  %v6487_v33 = vld [vmem:[#allocation62_spill] sm:$0xff] }
 0x35e   :  { %v1615_v8 = vmul.f32 1.442695, %v1543_v59  ;;  %v6489_v59 = vld [vmem:[#allocation12_spill] sm:$0xff] }
 0x35f   :  { %2174 = vperm.xlu1 %2936, %v6465_v29   ;;  %v6474_v29 = vld [vmem:[#allocation140_spill] sm:$0xff] }
 0x360   :  { %v6475_v46 = vsub.f32 %v6473_v5, %v6474_v29  ;;  %v1421_v5 = vmul.f32 1.442695, %v1395_v50 }
 0x362   :  { %v1409_v31 = vmul.f32 1.442695, %v6475_v46  ;;  %v6482_v46 = vld [vmem:[#allocation154_spill] sm:$0xff] }
 0x363   :  { %2184 = vperm.xlu1 %2936, %v6467_v63   ;;  %v6476_v63 = vld [vmem:[#allocation13_spill] sm:$0xff]  ;;  %vm1875_vm14 = vcmp.gt.f32.partialorder %v4775_v49, %v6482_v46  ;;  %v6485_v49 = vld [vmem:[#allocation11_spill] sm:$0xff] }
 0x364   :  { %3005 = vpow2.f32 %v1409_v31  ;;  %v1545_v7 = vsub.f32 %v6485_v49, %v6480_v3  ;;  %v6491_v49 = vld [vmem:[#allocation15_spill] sm:$0xff] }
 0x365   :  { %3007 = vpow2.f32 %v1413_v40 }
 0x366   :  { %3009 = vpow2.f32 %v1417_v9  ;;  %v1619_v48 = vmul.f32 1.442695, %v1545_v7 }
 0x367   :  { %2194 = vperm.xlu1 %2936, %v6476_v63   ;;  %3011 = vpow2.f32 %v1421_v5  ;;  %v1546_v5 = vsub.f32 %v6489_v59, %v6480_v3  ;;  %v6490_v63 = vld [vmem:[#allocation41_spill] sm:$0xff]  ;;  %v6496_v59 = vld [vmem:[#allocation43_spill] sm:$0xff] }
 0x368   :  { %3013 = vpow2.f32 %v1425_v23  ;;  %v1555_v46 = vsub.f32 %v6491_v49, %v6490_v63  ;;  %v6493_v23 = vld [vmem:[#allocation18_spill] sm:$0xff]  ;;  %v6497_v49 = vld [vmem:[#allocation37_spill] sm:$0xff] }
 0x369   :  { %v1314_v29 = vpop.xlane.xlu1 %1313  ;;  %3015 = vpow2.f32 %v1615_v8  ;;  %v1621_v8 = vmul.f32 1.442695, %v1546_v5  ;;  %v6499_v5 = vld [vmem:[#allocation21_spill] sm:$0xff] }
 0x36a   :  { %v1909_v43 = vsel %vm1875_vm14, %v1314_v29, %v1892_v34  ;;  %v6488_v29 = vld [vmem:[#allocation189_spill] sm:$0xff]  ;;  %v1639_v7 = vmul.f32 1.442695, %v1555_v46 }
 0x36b   :  { %1926 = vst.msk [vmem:[#allocation4 + $0x60] sm:$0xff] %vm30_vm1, %v1909_v43  ;;  %2204 = vperm.xlu1 %2936, %v6483_v53   ;;  %v1617_v43 = vmul.f32 1.442695, %v1544_v2  ;;  %v6494_v2 = vld [vmem:[#allocation193_spill] sm:$0xff] }
 0x36d   :  { %v1532_v50 = vpop.permute.xlu1 %1531 }
 0x36e   :  { %v1599_v31 = vsub.f32 %v6401_v60, %v1532_v50  ;;  %v1600_v40 = vsub.f32 %v6402_v13, %v1532_v50  ;;  %v1601_v34 = vsub.f32 %v6486_v15, %v1532_v50  ;;  %v1602_v9 = vsub.f32 %v6487_v33, %v1532_v50  ;;  %v6492_v13 = vld [vmem:[#allocation17_spill] sm:$0xff]  ;;  %v5307_v33 = vpop.permute.xlu0 %2219 }
 0x36f   :  { %2214 = vperm.xlu1 %2936, %v6488_v29   ;;  %v1556_v15 = vsub.f32 %v6492_v13, %v6490_v63  ;;  %v1557_v50 = vsub.f32 %v6493_v23, %v6490_v63  ;;  %v1579_v13 = vsub.f32 %v6497_v49, %v6496_v59  ;;  %v6498_v29 = vld [vmem:[#allocation39_spill] sm:$0xff] }
 0x370   :  { %v1727_v56 = vmul.f32 1.442695, %v1599_v31  ;;  %v1729_v53 = vmul.f32 1.442695, %v1600_v40  ;;  %v1731_v60 = vmul.f32 1.442695, %v1601_v34  ;;  %v3002_v34 = vpop.eup %3001 }
 0x371   :  { %v1733_v3 = vmul.f32 1.442695, %v1602_v9  ;;  %v6495_v31 = vld [vmem:[#allocation19_spill] sm:$0xff]  ;;  %v1641_v23 = vmul.f32 1.442695, %v1556_v15 }
 0x372   :  { %3017 = vpow2.f32 %v1727_v56  ;;  %v1558_v40 = vsub.f32 %v6495_v31, %v6490_v63  ;;  %v3004_v56 = vpop.eup %3003  ;;  %v6500_v63 = vld [vmem:[#allocation197_spill] sm:$0xff]  ;;  %v5329_v49 = vpop.permute.xlu0 %2229 }
 0x373   :  { %3019 = vpow2.f32 %v1729_v53  ;;  %2224 = vperm.xlu1 %2936, %v6494_v2   ;;  %v1580_v53 = vsub.f32 %v6498_v29, %v6496_v59  ;;  %v5316_v9 = vpop.eup %3005  ;;  %v1643_v2 = vmul.f32 1.442695, %v1557_v50  ;;  %v1581_v29 = vsub.f32 %v6413_v20, %v6496_v59 }
 0x374   :  { %3021 = vpow2.f32 %v1617_v43  ;;  %v1563_v43 = vsub.f32 %v6499_v5, %v5126_v38  ;;  %v5321_v46 = vpop.eup %3007  ;;  %v1645_v31 = vmul.f32 1.442695, %v1558_v40  ;;  %v1687_v50 = vmul.f32 1.442695, %v1579_v13  ;;  %v1369_v5 = vld [vmem:[#allocation3] sm:$0xff] }
 0x375   :  { %3023 = vpow2.f32 %v1731_v60  ;;  %v6501_v60 = vld [vmem:[#allocation23_spill] sm:$0xff]  ;;  %v5325_v15 = vpop.eup %3009  ;;  %v1689_v40 = vmul.f32 1.442695, %v1580_v53  ;;  %v1587_v13 = vsub.f32 %v6418_v14, %v5123_v44  ;;  %v1437_v12 = vmul.f32 %v3002_v34, %v1369_v5 }
 0x376   :  { %3025 = vpow2.f32 %v1619_v48  ;;  %v1564_v48 = vsub.f32 %v6501_v60, %v5126_v38  ;;  %v6502_v60 = vld [vmem:[#allocation24_spill] sm:$0xff]  ;;  %v1655_v17 = vmul.f32 1.442695, %v1563_v43  ;;  %v1691_v52 = vmul.f32 1.442695, %v1581_v29  ;;  %v6503_v43 = vld [vmem:[#allocation29_spill] sm:$0xff] }
 0x377   :  { %3027 = vpow2.f32 %v1733_v3  ;;  %2234 = vperm.xlu1 %2936, %v6500_v63   ;;  %v5331_v3 = vpop.eup %3011  ;;  %v1565_v63 = vsub.f32 %v6502_v60, %v5126_v38  ;;  %v1571_v60 = vsub.f32 %v6503_v43, %v5168_v62  ;;  %v6504_v14 = vld [vmem:[#allocation31_spill] sm:$0xff] }
 0x378   :  { %3029 = vpow2.f32 %v1621_v8  ;;  %v1582_v8 = vsub.f32 %v6415_v58, %v6496_v59  ;;  %v1657_v20 = vmul.f32 1.442695, %v1564_v48  ;;  %v1371_v59 = vld [vmem:[#allocation3 + $0x10] sm:$0xff]  ;;  %v1572_v34 = vsub.f32 %v6504_v14, %v5168_v62 }
 0x379   :  { %3031 = vpow2.f32 %v1639_v7  ;;  %v5337_v7 = vpop.eup %3013  ;;  %v1659_v36 = vmul.f32 1.442695, %v1565_v63  ;;  %v1671_v63 = vmul.f32 1.442695, %v1571_v60 }
 0x37a   :  { %3033 = vpow2.f32 %v1641_v23  ;;  %v1588_v23 = vsub.f32 %v6419_v1, %v5123_v44  ;;  %v1693_v53 = vmul.f32 1.442695, %v1582_v8  ;;  %v1439_v1 = vmul.f32 %v3004_v56, %v1371_v59 }
 0x37b   :  { %3035 = vpow2.f32 %v1643_v2  ;;  %v5343_v2 = vpop.eup %3015  ;;  %v1673_v56 = vmul.f32 1.442695, %v1572_v34  ;;  %v1590_v34 = vsub.f32 %v6425_v10, %v5123_v44  ;;  %v1595_v10 = vsub.f32 %v6444_v16, %v5201_v21 }
 0x37c   :  { %3037 = vpow2.f32 %v1645_v31 }
 0x37d   :  { %3039 = vpow2.f32 %v1687_v50  ;;  %v1747_v58 = vpop.xlane.xlu0 %1746  ;;  %v1703_v50 = vmul.f32 1.442695, %v1587_v13 }
 0x37e   :  { %3041 = vpow2.f32 %v1689_v40  ;;  %v1828_v31 = vadd.f32 %v1747_v58, %v1437_v12  ;;  %v1705_v40 = vmul.f32 1.442695, %v1588_v23  ;;  %v6505_v12 = vld [vmem:[#allocation26_spill] sm:$0xff]  ;;  %v1440_v23 = vmul.f32 %v5316_v9, %v1372_v22 }
 0x37f   :  { %v3018_v48 = vpop.eup %3017  ;;  %3043 = vpow2.f32 %v1655_v17  ;;  %v1566_v17 = vsub.f32 %v6505_v12, %v5126_v38  ;;  %v6506_v38 = vld [vmem:[#allocation32_spill] sm:$0xff] }
 0x380   :  { %v3020_v29 = vpop.eup %3019  ;;  %3045 = vpow2.f32 %v1657_v20  ;;  %1846 = vst.msk [vmem:[#allocation3] sm:$0xff] %vm30_vm1, %v1828_v31  ;;  %v1589_v20 = vsub.f32 %v6424_v45, %v5123_v44 }
 0x381   :  { %v3022_v5 = vpop.eup %3021  ;;  %3047 = vpow2.f32 %v1691_v52  ;;  %v1757_v8 = vpop.xlane.xlu0 %1756  ;;  %v1818_v57 = vadd.f32 %v3020_v29, %v3018_v48  ;;  %v1661_v29 = vmul.f32 1.442695, %v1566_v17 }
 0x382   :  { %v3024_v43 = vpop.eup %3023  ;;  %3049 = vpow2.f32 %v1693_v53  ;;  %v1830_v58 = vadd.f32 %v1757_v8, %v1439_v1  ;;  %v1573_v53 = vsub.f32 %v6506_v38, %v5168_v62  ;;  %v6507_v8 = vld [vmem:[#allocation34_spill] sm:$0xff]  ;;  %v1748_v38 = vadd.f32 %v3022_v5, %v5343_v2 }
 0x383   :  { %v5352_v14 = vpop.eup %3025  ;;  %3051 = vpow2.f32 %v1659_v36  ;;  %v1819_v13 = vadd.f32 %v3024_v43, %v1818_v57  ;;  %v1374_v36 = vld [vmem:[#allocation3 + $0x28] sm:$0xff]  ;;  %v1574_v43 = vsub.f32 %v6507_v8, %v5168_v62  ;;  %v1603_v2 = vsub.f32 %v6456_v28, %v5226_v6 }
 0x384   :  { %v3028_v52 = vpop.eup %3027  ;;  %3053 = vpow2.f32 %v1703_v50  ;;  %1848 = vst.msk [vmem:[#allocation3 + $0x10] sm:$0xff] %vm30_vm1, %v1830_v58  ;;  %v1707_v50 = vmul.f32 1.442695, %v1589_v20  ;;  %v1442_v1 = vmul.f32 %v5321_v46, %v1374_v36  ;;  %v1675_v12 = vmul.f32 1.442695, %v1573_v53 }
 0x385   :  { %v5358_v59 = vpop.eup %3029  ;;  %3055 = vpow2.f32 %v1705_v40  ;;  %v1762_v60 = vpop.xlane.xlu0 %1761  ;;  %v1820_v31 = vadd.f32 %v3028_v52, %v1819_v13  ;;  %v1596_v46 = vsub.f32 %v6445_v35, %v5201_v21  ;;  %v1677_v16 = vmul.f32 1.442695, %v1574_v43 }
 0x386   :  { %v3032_v48 = vpop.eup %3031  ;;  %3057 = vpow2.f32 %v1671_v63  ;;  %v1831_v45 = vadd.f32 %v1762_v60, %v1440_v23  ;;  %v1376_v63 = vld [vmem:[#allocation3 + $0x38] sm:$0xff]  ;;  %v1378_v23 = vld [vmem:[#allocation3 + $0x48] sm:$0xff]  ;;  %v1598_v35 = vsub.f32 %v6450_v55, %v5201_v21 }
 0x387   :  { %v3034_v57 = vpop.eup %3033  ;;  %3059 = vpow2.f32 %v1673_v56  ;;  %v2597_v22 = vld [vmem:[#allocation3] sm:$0xff]  ;;  %1821 = vadd.xlane.f32.xlu0 %v1820_v31  ;;  %v1709_v56 = vmul.f32 1.442695, %v1590_v34  ;;  %v1444_v62 = vmul.f32 %v5325_v15, %v1376_v63  ;;  %v1597_v31 = vsub.f32 %v6448_v37, %v5201_v21  ;;  %v1380_v55 = vld [vmem:[#allocation3 + $0x58] sm:$0xff] }
 0x388   :  { %v3036_v9 = vpop.eup %3035  ;;  %3061 = vlog2.f32 %v2597_v22  ;;  %1849 = vst.msk [vmem:[#allocation3 + $0x18] sm:$0xff] %vm30_vm1, %v1831_v45  ;;  %v1763_v53 = vadd.f32 %v3034_v57, %v3032_v48  ;;  %v1719_v45 = vmul.f32 1.442695, %v1595_v10  ;;  %v1721_v15 = vmul.f32 1.442695, %v1596_v46 }
 0x389   :  { %v5366_v40 = vpop.eup %3037  ;;  %v1772_v17 = vpop.xlane.xlu0 %1771  ;;  %3063 = vpow2.f32 %v1661_v29  ;;  %v1446_v48 = vmul.f32 %v5331_v3, %v1378_v23  ;;  %v1749_v37 = vadd.f32 %v5352_v14, %v1748_v38  ;;  %v1723_v43 = vmul.f32 1.442695, %v1597_v31 }
 0x38a   :  { %v3040_v58 = vpop.eup %3039  ;;  %v1833_v44 = vadd.f32 %v1772_v17, %v1442_v1  ;;  %3065 = vpow2.f32 %v1707_v50  ;;  %v1764_v1 = vadd.f32 %v3036_v9, %v1763_v53  ;;  %v1725_v63 = vmul.f32 1.442695, %v1598_v35 }
 0x38b   :  { %v3042_v20 = vpop.eup %3041  ;;  %v2599_v13 = vld [vmem:[#allocation3 + $0x10] sm:$0xff]  ;;  %v1605_v14 = vsub.f32 %v6460_v26, %v5226_v6  ;;  %v1735_v9 = vmul.f32 1.442695, %v1603_v2  ;;  %v1606_v26 = vsub.f32 %v6462_v41, %v5226_v6 }
 0x38c   :  { %v3044_v52 = vpop.eup %3043  ;;  %3067 = vlog2.f32 %v2599_v13  ;;  %1851 = vst.msk [vmem:[#allocation3 + $0x28] sm:$0xff] %vm30_vm1, %v1833_v44  ;;  %v1793_v50 = vadd.f32 %v3042_v20, %v3040_v58  ;;  %v5391_v20 = vmul.f32 %v5337_v7, %v1380_v55  ;;  %v5396_v46 = vadd.f32 %v5366_v40, %v1764_v1  ;;  %v6508_v7 = vld [vmem:[#allocation69_spill] sm:$0xff] }
 0x38d   :  { %v3046_v60 = vpop.eup %3045  ;;  %3069 = vpow2.f32 %v1675_v12  ;;  %v1782_v36 = vpop.xlane.xlu0 %1781  ;;  %v1604_v12 = vsub.f32 %v6457_v4, %v5226_v6  ;;  %v1750_v4 = vadd.f32 %v5358_v59, %v1749_v37  ;;  %v2241_v38 = vsub.f32 %v6508_v7, %v5250_v30 }
 0x38e   :  { %v3048_v29 = vpop.eup %3047  ;;  %v1835_v34 = vadd.f32 %v1782_v36, %v1444_v62  ;;  %3071 = vpow2.f32 %v1709_v56  ;;  %v1773_v21 = vadd.f32 %v3046_v60, %v3044_v52  ;;  %v6509_v60 = vld [vmem:[#allocation157_spill] sm:$0xff]  ;;  %v1739_v31 = vmul.f32 1.442695, %v1605_v14  ;;  %v6510_v36 = vld [vmem:[#allocation71_spill] sm:$0xff]  ;;  %v6515_v14 = vld [vmem:[#allocation80_spill] sm:$0xff] }
 0x38f   :  { %v3050_v22 = vpop.eup %3049  ;;  %v2600_v5 = vld [vmem:[#allocation3 + $0x18] sm:$0xff]  ;;  %v1794_v58 = vadd.f32 %v3048_v29, %v1793_v50  ;;  %v1737_v62 = vmul.f32 1.442695, %v1604_v12  ;;  %vm1877_vm15 = vcmp.gt.f32.partialorder %v6443_v25, %v6509_v60  ;;  %v2242_v29 = vsub.f32 %v6510_v36, %v5250_v30  ;;  %v2582_v12 = vld [vmem:[#allocation2 + $0x10] sm:$0xff]  ;;  %v2583_v36 = vld [vmem:[#allocation2 + $0x18] sm:$0xff] }
 0x390   :  { %v3052_v57 = vpop.eup %3051  ;;  %3073 = vlog2.f32 %v2600_v5  ;;  %1853 = vst.msk [vmem:[#allocation3 + $0x38] sm:$0xff] %vm30_vm1, %v1835_v34  ;;  %v6512_v5 = vld [vmem:[#allocation74_spill] sm:$0xff]  ;;  %v2313_v1 = vmul.f32 1.442695, %v2241_v38 }
 0x391   :  { %v3054_v8 = vpop.eup %3053  ;;  %3075 = vpow2.f32 %v1677_v16  ;;  %v1792_v17 = vpop.xlane.xlu0 %1791  ;;  %v1774_v13 = vadd.f32 %v3052_v57, %v1773_v21  ;;  %v5404_v59 = vadd.f32 %v3050_v22, %v1794_v58  ;;  %v2580_v16 = vld [vmem:[#allocation2] sm:$0xff]  ;;  %v1741_v22 = vmul.f32 1.442695, %v1606_v26  ;;  %v6513_v21 = vld [vmem:[#allocation77_spill] sm:$0xff] }
 0x392   :  { %v3056_v28 = vpop.eup %3055  ;;  %3077 = vpow2.f32 %v1719_v45  ;;  %v1837_v3 = vadd.f32 %v1792_v17, %v1446_v48  ;;  %v6511_v45 = vld [vmem:[#allocation72_spill] sm:$0xff]  ;;  %v2244_v48 = vsub.f32 %v6512_v5, %v5250_v30  ;;  %v2249_v55 = vsub.f32 %v6513_v21, %v5252_v54 }
 0x393   :  { %v3058_v10 = vpop.eup %3057  ;;  %3079 = vpow2.f32 %v1721_v15  ;;  %v2602_v44 = vld [vmem:[#allocation3 + $0x28] sm:$0xff]  ;;  %v1803_v23 = vadd.f32 %v3056_v28, %v3054_v8  ;;  %v2243_v34 = vsub.f32 %v6511_v45, %v5250_v30  ;;  %v2315_v17 = vmul.f32 1.442695, %v2242_v29  ;;  %v6514_v28 = vld [vmem:[#allocation79_spill] sm:$0xff] }
 0x394   :  { %v3060_v56 = vpop.eup %3059  ;;  %3081 = vlog2.f32 %v2602_v44  ;;  %1855 = vst.msk [vmem:[#allocation3 + $0x48] sm:$0xff] %vm30_vm1, %v1837_v3  ;;  %v2250_v30 = vsub.f32 %v6514_v28, %v5252_v54  ;;  %v2329_v38 = vmul.f32 1.442695, %v2249_v55  ;;  %v6518_v45 = vld [vmem:[#allocation87_spill] sm:$0xff] }
 0x395   :  { %v3062_v52 = vpop.eup %3061  ;;  %3083 = vpow2.f32 %v1723_v43  ;;  %v1783_v41 = vadd.f32 %v3060_v56, %v3058_v10  ;;  %v2317_v10 = vmul.f32 1.442695, %v2243_v34  ;;  %v1894_v56 = vld [vmem:[#allocation4 + $0x70] sm:$0xff]  ;;  %v2258_v34 = vsub.f32 %v6518_v45, %v5254_v18 }
 0x396   :  { %3085 = vpow2.f32 %v1725_v63  ;;  %v2615_v53 = vmul.f32 0.6931472, %v3062_v52  ;;  %v3064_v40 = vpop.eup %3063  ;;  %v2319_v52 = vmul.f32 1.442695, %v2244_v48  ;;  %v2331_v29 = vmul.f32 1.442695, %v2250_v30 }
 0x397   :  { %3087 = vpow2.f32 %v1735_v9  ;;  %v2604_v6 = vld [vmem:[#allocation3 + $0x38] sm:$0xff]  ;;  %v3066_v35 = vpop.eup %3065  ;;  %v5410_v15 = vadd.f32 %v3064_v40, %v1774_v13  ;;  %v2251_v9 = vsub.f32 %v6515_v14, %v5252_v54  ;;  %v6522_v30 = vld [vmem:[#allocation67_spill] sm:$0xff] }
 0x398   :  { %v2648_v50 = vadd.f32 %v2615_v53, %v2580_v16  ;;  %3089 = vlog2.f32 %v2604_v6  ;;  %v5414_v57 = vadd.f32 %v3066_v35, %v1803_v23 }
 0x399   :  { %v3068_v2 = vpop.eup %3067  ;;  %3091 = vpow2.f32 %v1737_v62  ;;  %v6517_v62 = vld [vmem:[#allocation85_spill] sm:$0xff]  ;;  %v2333_v35 = vmul.f32 1.442695, %v2251_v9  ;;  %v2347_v9 = vmul.f32 1.442695, %v2258_v34  ;;  %v6527_v34 = vld [vmem:[#allocation103_spill] sm:$0xff] }
 0x39a   :  { %v3070_v37 = vpop.eup %3069  ;;  %v2750_v8 = vsub.f32 %v2580_v16, %v2648_v50  ;;  %2835 = vst.msk [vmem:[%s5826_s8] sm:$0xff] %vm30_vm1, %v2648_v50  ;;  %v2619_v43 = vmul.f32 0.6931472, %v3068_v2  ;;  %3093 = vpow2.f32 %v1739_v31  ;;  %v2257_v23 = vsub.f32 %v6517_v62, %v5254_v18 }
 0x39b   :  { %v2606_v63 = vld [vmem:[#allocation3 + $0x48] sm:$0xff]  ;;  %1751 = vadd.xlane.f32.xlu1 %v1750_v4  ;;  %v1784_v3 = vadd.f32 %v3070_v37, %v1783_v41  ;;  %v5424_v58 = vpop.eup %3071  ;;  %v6516_v4 = vld [vmem:[#allocation82_spill] sm:$0xff]  ;;  %v6520_v37 = vld [vmem:[#allocation93_spill] sm:$0xff] }
 0x39c   :  { %2767 = vst.msk [vmem:[%s5827_s6] sm:$0xff] %vm30_vm1, %v2750_v8  ;;  %v2650_v44 = vadd.f32 %v2619_v43, %v2582_v12  ;;  %3095 = vlog2.f32 %v2606_v63  ;;  %v2252_v26 = vsub.f32 %v6516_v4, %v5252_v54  ;;  %v2345_v5 = vmul.f32 1.442695, %v2257_v23  ;;  %v6525_v4 = vld [vmem:[#allocation95_spill] sm:$0xff] }
 0x39d   :  { %v3074_v13 = vpop.eup %3073  ;;  %3097 = vpow2.f32 %v1741_v22 }
 0x39e   :  { %v3076_v7 = vpop.eup %3075  ;;  %3099 = vpow2.f32 %v2313_v1  ;;  %v2752_v53 = vsub.f32 %v2582_v12, %v2650_v44  ;;  %2837 = vst.msk [vmem:[%s5826_s8 + $0x10] sm:$0xff] %vm30_vm1, %v2650_v44  ;;  %v2621_v40 = vmul.f32 0.6931472, %v3074_v13  ;;  %v1324_v16 = vpop.xlane.xlu1 %1323  ;;  %v2335_v25 = vmul.f32 1.442695, %v2252_v26  ;;  %v2585_v12 = vld [vmem:[#allocation2 + $0x28] sm:$0xff] }
 0x39f   :  { %v5440_v31 = vpop.eup %3077  ;;  %3101 = vpow2.f32 %v2315_v17  ;;  %v1911_v54 = vsel %vm1877_vm15, %v1324_v16, %v1894_v56  ;;  %1766 = vadd.xlane.f32.xlu1 %v5396_v46  ;;  %v1785_v6 = vadd.f32 %v3076_v7, %v1784_v3  ;;  %v6519_v46 = vld [vmem:[#allocation88_spill] sm:$0xff]  ;;  %v2265_v1 = vsub.f32 %v6520_v37, %v5258_v0  ;;  %v6521_v17 = vld [vmem:[#allocation65_spill] sm:$0xff]  ;;  %v6524_v56 = vld [vmem:[#allocation70_spill] sm:$0xff] }
 0x3a0   :  { %v3080_v41 = vpop.eup %3079  ;;  %3103 = vpow2.f32 %v2317_v10  ;;  %2769 = vst.msk [vmem:[%s5827_s6 + $0x10] sm:$0xff] %vm30_vm1, %v2752_v53  ;;  %v2651_v50 = vadd.f32 %v2621_v40, %v2583_v36  ;;  %1928 = vst.msk [vmem:[#allocation4 + $0x70] sm:$0xff] %vm30_vm1, %v1911_v54  ;;  %v2259_v22 = vsub.f32 %v6519_v46, %v5254_v18  ;;  %v6523_v3 = vld [vmem:[#allocation68_spill] sm:$0xff]  ;;  %v2266_v26 = vsub.f32 %v6525_v4, %v5258_v0  ;;  %v2587_v16 = vld [vmem:[#allocation2 + $0x38] sm:$0xff] }
 0x3a1   :  { %v3082_v2 = vpop.eup %3081  ;;  %3105 = vpow2.f32 %v2319_v52  ;;  %v6532_v4 = vld [vmem:[#allocation98_spill] sm:$0xff] }
 0x3a2   :  { %v5455_v48 = vpop.eup %3083  ;;  %3107 = vpow2.f32 %v2329_v38  ;;  %v2753_v21 = vsub.f32 %v2583_v36, %v2651_v50  ;;  %2838 = vst.msk [vmem:[%s5826_s8 + $0x18] sm:$0xff] %vm30_vm1, %v2651_v50  ;;  %v2625_v55 = vmul.f32 0.6931472, %v3082_v2  ;;  %v2155_v8 = vpop.permute.xlu1 %2154  ;;  %v2361_v36 = vmul.f32 1.442695, %v2265_v1 }
 0x3a3   :  { %v5463_v43 = vpop.eup %3085  ;;  %3109 = vpow2.f32 %v2331_v29  ;;  %v2237_v28 = vsub.f32 %v6521_v17, %v2155_v8  ;;  %v2238_v63 = vsub.f32 %v6522_v30, %v2155_v8  ;;  %v2239_v10 = vsub.f32 %v6523_v3, %v2155_v8  ;;  %1776 = vadd.xlane.f32.xlu1 %v5410_v15  ;;  %v6526_v29 = vld [vmem:[#allocation101_spill] sm:$0xff]  ;;  %v2589_v17 = vld [vmem:[#allocation2 + $0x48] sm:$0xff] }
 0x3a4   :  { %v3088_v14 = vpop.eup %3087  ;;  %3111 = vpow2.f32 %v2333_v35  ;;  %2770 = vst.msk [vmem:[%s5827_s6 + $0x18] sm:$0xff] %vm30_vm1, %v2753_v21  ;;  %v2653_v44 = vadd.f32 %v2625_v55, %v2585_v12  ;;  %v2240_v13 = vsub.f32 %v6524_v56, %v2155_v8  ;;  %v2273_v54 = vsub.f32 %v6526_v29, %v5276_v11 }
 0x3a5   :  { %v3090_v52 = vpop.eup %3089  ;;  %3113 = vpow2.f32 %v2335_v25  ;;  %v2305_v62 = vmul.f32 1.442695, %v2237_v28  ;;  %v2307_v23 = vmul.f32 1.442695, %v2238_v63  ;;  %v2309_v53 = vmul.f32 1.442695, %v2239_v10 }
 0x3a6   :  { %v3092_v7 = vpop.eup %3091  ;;  %3115 = vpow2.f32 %v2345_v5  ;;  %v2755_v15 = vsub.f32 %v2585_v12, %v2653_v44  ;;  %2840 = vst.msk [vmem:[%s5826_s8 + $0x28] sm:$0xff] %vm30_vm1, %v2653_v44  ;;  %v2629_v38 = vmul.f32 0.6931472, %v3090_v52  ;;  %v1802_v40 = vpop.xlane.xlu0 %1801  ;;  %v2274_v50 = vsub.f32 %v6527_v34, %v5276_v11  ;;  %v6528_v5 = vld [vmem:[#allocation90_spill] sm:$0xff]  ;;  %v6530_v63 = vld [vmem:[#allocation109_spill] sm:$0xff]  ;;  %v6531_v44 = vld [vmem:[#allocation111_spill] sm:$0xff] }
 0x3a7   :  { %3117 = vpow2.f32 %v2305_v62  ;;  %v1839_v35 = vadd.f32 %v1802_v40, %v5391_v20  ;;  %1786 = vadd.xlane.f32.xlu1 %v1785_v6  ;;  %v3094_v45 = vpop.eup %3093  ;;  %v2311_v25 = vmul.f32 1.442695, %v2240_v13  ;;  %v2260_v37 = vsub.f32 %v6528_v5, %v5254_v18  ;;  %v6529_v18 = vld [vmem:[#allocation96_spill] sm:$0xff] }
 0x3a8   :  { %2772 = vst.msk [vmem:[%s5827_s6 + $0x28] sm:$0xff] %vm30_vm1, %v2755_v15  ;;  %v2655_v2 = vadd.f32 %v2629_v38, %v2587_v16  ;;  %3119 = vpow2.f32 %v2307_v23  ;;  %v2363_v1 = vmul.f32 1.442695, %v2266_v26  ;;  %v1813_v20 = vadd.f32 %v3080_v41, %v5440_v31  ;;  %v6533_v15 = vld [vmem:[#allocation104_spill] sm:$0xff] }
 0x3a9   :  { %v3096_v46 = vpop.eup %3095  ;;  %3121 = vpow2.f32 %v2347_v9  ;;  %1857 = vst.msk [vmem:[#allocation3 + $0x58] sm:$0xff] %vm30_vm1, %v1839_v35  ;;  %v2349_v21 = vmul.f32 1.442695, %v2259_v22  ;;  %v2267_v28 = vsub.f32 %v6529_v18, %v5258_v0  ;;  %v2377_v30 = vmul.f32 1.442695, %v2273_v54  ;;  %v6535_v54 = vld [vmem:[#allocation119_spill] sm:$0xff] }
 0x3aa   :  { %v3098_v6 = vpop.eup %3097  ;;  %v2757_v55 = vsub.f32 %v2587_v16, %v2655_v2  ;;  %2842 = vst.msk [vmem:[%s5826_s8 + $0x38] sm:$0xff] %vm30_vm1, %v2655_v2  ;;  %v2633_v8 = vmul.f32 0.6931472, %v3096_v46  ;;  %3123 = vpow2.f32 %v2309_v53  ;;  %v1823_v31 = vadd.f32 %v3092_v7, %v3088_v14  ;;  %v6534_v53 = vld [vmem:[#allocation117_spill] sm:$0xff]  ;;  %v6536_v2 = vld [vmem:[#allocation106_spill] sm:$0xff] }
 0x3ab   :  { %v3100_v12 = vpop.eup %3099  ;;  %3125 = vpow2.f32 %v2361_v36  ;;  %1796 = vadd.xlane.f32.xlu1 %v5404_v59  ;;  %v2379_v22 = vmul.f32 1.442695, %v2274_v50  ;;  %v2281_v3 = vsub.f32 %v6530_v63, %v5290_v27  ;;  %v2282_v56 = vsub.f32 %v6531_v44, %v5290_v27  ;;  %v6541_v44 = vld [vmem:[#allocation120_spill] sm:$0xff] }
 0x3ac   :  { %v3102_v41 = vpop.eup %3101  ;;  %2774 = vst.msk [vmem:[%s5827_s6 + $0x38] sm:$0xff] %vm30_vm1, %v2757_v55  ;;  %v2657_v10 = vadd.f32 %v2633_v8, %v2589_v17  ;;  %3127 = vpow2.f32 %v2311_v25  ;;  %v1805_v59 = vadd.f32 %v5424_v58, %v5414_v57  ;;  %v1814_v14 = vadd.f32 %v5455_v48, %v1813_v20  ;;  %v6538_v8 = vld [vmem:[#allocation125_spill] sm:$0xff] }
 0x3ad   :  { %v3104_v9 = vpop.eup %3103  ;;  %3129 = vpow2.f32 %v2363_v1  ;;  %v2351_v52 = vmul.f32 1.442695, %v2260_v37  ;;  %v2268_v26 = vsub.f32 %v6532_v4, %v5258_v0  ;;  %v2365_v7 = vmul.f32 1.442695, %v2267_v28  ;;  %v6537_v37 = vld [vmem:[#allocation112_spill] sm:$0xff] }
 0x3ae   :  { %v3106_v13 = vpop.eup %3105  ;;  %3131 = vpow2.f32 %v2349_v21  ;;  %v2759_v62 = vsub.f32 %v2589_v17, %v2657_v10  ;;  %2844 = vst.msk [vmem:[%s5826_s8 + $0x48] sm:$0xff] %vm30_vm1, %v2657_v10  ;;  %v2275_v38 = vsub.f32 %v6533_v15, %v5276_v11  ;;  %v1824_v57 = vadd.f32 %v3094_v45, %v1823_v31  ;;  %v6542_v15 = vld [vmem:[#allocation122_spill] sm:$0xff] }
 0x3af   :  { %v3108_v23 = vpop.eup %3107  ;;  %3133 = vpow2.f32 %v2377_v30  ;;  %1806 = vadd.xlane.f32.xlu1 %v1805_v59  ;;  %v2393_v48 = vmul.f32 1.442695, %v2281_v3  ;;  %v2289_v0 = vsub.f32 %v6534_v53, %v5307_v33  ;;  %v2446_v16 = vadd.f32 %v3102_v41, %v3100_v12  ;;  %v6543_v53 = vld [vmem:[#allocation128_spill] sm:$0xff] }
 0x3b0   :  { %v3110_v58 = vpop.eup %3109  ;;  %3135 = vpow2.f32 %v2379_v22  ;;  %2776 = vst.msk [vmem:[%s5827_s6 + $0x48] sm:$0xff] %vm30_vm1, %v2759_v62  ;;  %v2608_v40 = vld [vmem:[#allocation3 + $0x58] sm:$0xff]  ;;  %v2395_v29 = vmul.f32 1.442695, %v2282_v56  ;;  %v2290_v35 = vsub.f32 %v6535_v54, %v5307_v33  ;;  %v1815_v45 = vadd.f32 %v5463_v43, %v1814_v14 }
 0x3b1   :  { %v3112_v36 = vpop.eup %3111  ;;  %3137 = vlog2.f32 %v2608_v40  ;;  %v2367_v50 = vmul.f32 1.442695, %v2268_v26  ;;  %v2276_v25 = vsub.f32 %v6536_v2, %v5276_v11  ;;  %v2381_v5 = vmul.f32 1.442695, %v2275_v38  ;;  %v6539_v11 = vld [vmem:[#allocation127_spill] sm:$0xff]  ;;  %v6540_v22 = vld [vmem:[#allocation114_spill] sm:$0xff] }
 0x3b2   :  { %v3114_v34 = vpop.eup %3113  ;;  %3139 = vpow2.f32 %v2351_v52  ;;  %v2283_v1 = vsub.f32 %v6537_v37, %v5290_v27  ;;  %v1825_v20 = vadd.f32 %v3098_v6, %v1824_v57  ;;  %v2409_v55 = vmul.f32 1.442695, %v2289_v0 }
 0x3b3   :  { %v3116_v46 = vpop.eup %3115  ;;  %3141 = vpow2.f32 %v2365_v7  ;;  %1816 = vadd.xlane.f32.xlu1 %v1815_v45  ;;  %v2297_v43 = vsub.f32 %v6538_v8, %v5329_v49  ;;  %v2447_v12 = vadd.f32 %v3104_v9, %v2446_v16  ;;  %v2411_v18 = vmul.f32 1.442695, %v2290_v35 }
 0x3b4   :  { %v3118_v21 = vpop.eup %3117  ;;  %3143 = vpow2.f32 %v2393_v48  ;;  %v2298_v28 = vsub.f32 %v6539_v11, %v5329_v49  ;;  %v2456_v30 = vadd.f32 %v3110_v58, %v3108_v23  ;;  %v2383_v41 = vmul.f32 1.442695, %v2276_v25 }
 0x3b5   :  { %v3120_v17 = vpop.eup %3119  ;;  %3145 = vpow2.f32 %v2395_v29  ;;  %v2284_v6 = vsub.f32 %v6540_v22, %v5290_v27  ;;  %v2397_v10 = vmul.f32 1.442695, %v2283_v1  ;;  %v2291_v9 = vsub.f32 %v6541_v44, %v5307_v33 }
 0x3b6   :  { %v3122_v31 = vpop.eup %3121  ;;  %3147 = vpow2.f32 %v2367_v50  ;;  %v2441_v63 = vadd.f32 %v3120_v17, %v3118_v21  ;;  %v2425_v59 = vmul.f32 1.442695, %v2297_v43  ;;  %v2448_v52 = vadd.f32 %v3106_v13, %v2447_v12 }
 0x3b7   :  { %v3124_v3 = vpop.eup %3123  ;;  %3149 = vpow2.f32 %v2381_v5  ;;  %1826 = vadd.xlane.f32.xlu1 %v1825_v20  ;;  %v2427_v26 = vmul.f32 1.442695, %v2298_v28  ;;  %v2457_v62 = vadd.f32 %v3112_v36, %v2456_v30  ;;  %v2466_v23 = vadd.f32 %v3122_v31, %v3116_v46  ;;  %v2591_v46 = vld [vmem:[#allocation2 + $0x58] sm:$0xff] }
 0x3b8   :  { %v3126_v56 = vpop.eup %3125  ;;  %3151 = vpow2.f32 %v2409_v55  ;;  %v2442_v14 = vadd.f32 %v3124_v3, %v2441_v63  ;;  %v2399_v27 = vmul.f32 1.442695, %v2284_v6  ;;  %v2292_v38 = vsub.f32 %v6542_v15, %v5307_v33 }
 0x3b9   :  { %v3128_v4 = vpop.eup %3127  ;;  %3153 = vpow2.f32 %v2411_v18  ;;  %v2413_v48 = vmul.f32 1.442695, %v2291_v9  ;;  %v2299_v0 = vsub.f32 %v6543_v53, %v5329_v49  ;;  %v2458_v16 = vadd.f32 %v3114_v34, %v2457_v62 }
 0x3ba   :  { %v3130_v7 = vpop.eup %3129  ;;  %3155 = vpow2.f32 %v2383_v41  ;;  %v2443_v57 = vadd.f32 %v3128_v4, %v2442_v14  ;;  %v2415_v35 = vmul.f32 1.442695, %v2292_v38  ;;  %v2300_v45 = vsub.f32 %v6412_v32, %v5329_v49 }
 0x3bb   :  { %v3132_v58 = vpop.eup %3131  ;;  %3157 = vpow2.f32 %v2397_v10  ;;  %2449 = vadd.xlane.f32.xlu1 %v2448_v52  ;;  %v2476_v29 = vadd.f32 %v3130_v7, %v3126_v56  ;;  %v2429_v50 = vmul.f32 1.442695, %v2299_v0  ;;  %v1399_v55 = vsub.f32 %v6441_v51, %v4794_v61  ;;  %v1896_v52 = vld [vmem:[#allocation4 + $0x80] sm:$0xff]  ;;  %v6544_v7 = vld [vmem:[#allocation161_spill] sm:$0xff]  ;;  %v6546_v0 = vld [vmem:[#allocation75_spill] sm:$0xff] }
 0x3bc   :  { %v3134_v13 = vpop.eup %3133  ;;  %3159 = vpow2.f32 %v2425_v59  ;;  %2444 = vadd.xlane.f32.xlu0 %v2443_v57  ;;  %v2467_v36 = vadd.f32 %v3132_v58, %v2466_v23  ;;  %v2431_v43 = vmul.f32 1.442695, %v2300_v45  ;;  %v1382_v58 = vld [vmem:[#allocation3 + $0x68] sm:$0xff] }
 0x3bd   :  { %v3136_v40 = vpop.eup %3135  ;;  %3161 = vpow2.f32 %v2427_v26  ;;  %v1429_v11 = vmul.f32 1.442695, %v1399_v55 }
 0x3be   :  { %v3138_v54 = vpop.eup %3137  ;;  %3163 = vpow2.f32 %v2399_v27  ;;  %v2486_v34 = vadd.f32 %v3136_v40, %v3134_v13  ;;  %v6547_v40 = vld [vmem:[#allocation76_spill] sm:$0xff] }
 0x3bf   :  { %v3140_v33 = vpop.eup %3139  ;;  %3165 = vpow2.f32 %v2413_v48  ;;  %v2637_v2 = vmul.f32 0.6931472, %v3138_v54  ;;  %2459 = vadd.xlane.f32.xlu1 %v2458_v16  ;;  %v6545_v48 = vld [vmem:[#allocation73_spill] sm:$0xff] }
 0x3c0   :  { %v3142_v25 = vpop.eup %3141  ;;  %v2468_v1 = vadd.f32 %v3140_v33, %v2467_v36  ;;  %3167 = vpow2.f32 %v2415_v35  ;;  %v6548_v36 = vld [vmem:[#allocation78_spill] sm:$0xff] }
 0x3c1   :  { %v3144_v5 = vpop.eup %3143  ;;  %v2659_v37 = vadd.f32 %v2637_v2, %v2591_v46  ;;  %v2477_v20 = vadd.f32 %v3142_v25, %v2476_v29  ;;  %3169 = vpow2.f32 %v2429_v50 }
 0x3c2   :  { %v3146_v21 = vpop.eup %3145  ;;  %3171 = vpow2.f32 %v2431_v43 }
 0x3c3   :  { %v3148_v8 = vpop.eup %3147  ;;  %v2761_v12 = vsub.f32 %v2591_v46, %v2659_v37  ;;  %2846 = vst.msk [vmem:[%s5826_s8 + $0x58] sm:$0xff] %vm30_vm1, %v2659_v37  ;;  %2469 = vadd.xlane.f32.xlu1 %v2468_v1  ;;  %v2496_v51 = vadd.f32 %v3146_v21, %v3144_v5  ;;  %3173 = vpow2.f32 %v1429_v11  ;;  %v6549_v46 = vld [vmem:[#allocation81_spill] sm:$0xff]  ;;  %v6550_v37 = vld [vmem:[#allocation83_spill] sm:$0xff]  ;;  %v6552_v21 = vld [vmem:[#allocation86_spill] sm:$0xff] }
 0x3c4   :  { %v3150_v32 = vpop.eup %3149  ;;  %v2478_v17 = vadd.f32 %v3148_v8, %v2477_v20  ;;  %v6551_v20 = vld [vmem:[#allocation84_spill] sm:$0xff] }
 0x3c5   :  { %v3152_v49 = vpop.eup %3151  ;;  %2778 = vst.msk [vmem:[%s5827_s6 + $0x58] sm:$0xff] %vm30_vm1, %v2761_v12  ;;  %v2487_v61 = vadd.f32 %v3150_v32, %v2486_v34  ;;  %v6555_v11 = vld [vmem:[#allocation92_spill] sm:$0xff] }
 0x3c6   :  { %v3154_v18 = vpop.eup %3153 }
 0x3c7   :  { %v3156_v28 = vpop.eup %3155  ;;  %2479 = vadd.xlane.f32.xlu1 %v2478_v17  ;;  %v2506_v6 = vadd.f32 %v3154_v18, %v3152_v49  ;;  %v6553_v17 = vld [vmem:[#allocation89_spill] sm:$0xff] }
 0x3c8   :  { %v3158_v30 = vpop.eup %3157  ;;  %v2488_v41 = vadd.f32 %v3156_v28, %v2487_v61 }
 0x3c9   :  { %v3160_v31 = vpop.eup %3159  ;;  %v2497_v22 = vadd.f32 %v3158_v30, %v2496_v51  ;;  %v6554_v51 = vld [vmem:[#allocation91_spill] sm:$0xff]  ;;  %v6556_v30 = vld [vmem:[#allocation94_spill] sm:$0xff] }
 0x3ca   :  { %v3162_v63 = vpop.eup %3161 }
 0x3cb   :  { %v3164_v3 = vpop.eup %3163  ;;  %2489 = vadd.xlane.f32.xlu1 %v2488_v41  ;;  %v2516_v56 = vadd.f32 %v3162_v63, %v3160_v31 }
 0x3cc   :  { %v3166_v10 = vpop.eup %3165  ;;  %v2498_v44 = vadd.f32 %v3164_v3, %v2497_v22 }
 0x3cd   :  { %v2507_v9 = vadd.f32 %v3166_v10, %v2506_v6  ;;  %v3168_v59 = vpop.eup %3167  ;;  %v6557_v10 = vld [vmem:[#allocation97_spill] sm:$0xff] }
 0x3ce   :  { %v3170_v14 = vpop.eup %3169 }
 0x3cf   :  { %2499 = vadd.xlane.f32.xlu1 %v2498_v44  ;;  %v2508_v4 = vadd.f32 %v3168_v59, %v2507_v9  ;;  %v2517_v26 = vadd.f32 %v3170_v14, %v2516_v56  ;;  %v3172_v23 = vpop.eup %3171  ;;  %v6558_v9 = vld [vmem:[#allocation99_spill] sm:$0xff]  ;;  %v6559_v59 = vld [vmem:[#allocation100_spill] sm:$0xff] }
 0x3d0   :  { %v3174_v38 = vpop.eup %3173 }
 0x3d1   :  { %v2518_v15 = vadd.f32 %v3172_v23, %v2517_v26  ;;  %v1450_v39 = vmul.f32 %v3174_v38, %v1382_v58 }
 0x3d3   :  { %v1334_v62 = vpop.xlane.xlu1 %1333  ;;  %2509 = vadd.xlane.f32.xlu1 %v2508_v4  ;;  %v6560_v4 = vld [vmem:[#allocation102_spill] sm:$0xff] }
 0x3d4   :  { %v1913_v27 = vsel %vm1879_vm3, %v1334_v62, %v1896_v52 }
 0x3d5   :  { %1930 = vst.msk [vmem:[#allocation4 + $0x80] sm:$0xff] %vm30_vm1, %v1913_v27 }
 0x3d7   :  { %v2165_v57 = vpop.permute.xlu1 %2164  ;;  %2519 = vadd.xlane.f32.xlu1 %v2518_v15 }
 0x3d8   :  { %v2245_v53 = vsub.f32 %v6545_v48, %v2165_v57  ;;  %v2246_v13 = vsub.f32 %v6546_v0, %v2165_v57  ;;  %v2247_v16 = vsub.f32 %v6547_v40, %v2165_v57  ;;  %v2248_v29 = vsub.f32 %v6548_v36, %v2165_v57 }
 0x3da   :  { %v2321_v54 = vmul.f32 1.442695, %v2245_v53  ;;  %v2323_v35 = vmul.f32 1.442695, %v2246_v13  ;;  %v2325_v33 = vmul.f32 1.442695, %v2247_v16 }
 0x3db   :  { %v2327_v45 = vmul.f32 1.442695, %v2248_v29  ;;  %v1812_v50 = vpop.xlane.xlu0 %1811  ;;  %v2175_v2 = vpop.permute.xlu1 %2174 }
 0x3dc   :  { %3175 = vpow2.f32 %v2321_v54  ;;  %v1841_v25 = vadd.f32 %v1812_v50, %v1450_v39  ;;  %v2253_v5 = vsub.f32 %v6549_v46, %v2175_v2  ;;  %v2254_v1 = vsub.f32 %v6550_v37, %v2175_v2  ;;  %v6563_v50 = vld [vmem:[#allocation116_spill] sm:$0xff] }
 0x3dd   :  { %3177 = vpow2.f32 %v2323_v35  ;;  %v2255_v34 = vsub.f32 %v6551_v20, %v2175_v2  ;;  %v2256_v55 = vsub.f32 %v6552_v21, %v2175_v2 }
 0x3de   :  { %3179 = vpow2.f32 %v2325_v33  ;;  %1859 = vst.msk [vmem:[#allocation3 + $0x68] sm:$0xff] %vm30_vm1, %v1841_v25  ;;  %v2337_v8 = vmul.f32 1.442695, %v2253_v5  ;;  %v2339_v43 = vmul.f32 1.442695, %v2254_v1 }
 0x3df   :  { %3181 = vpow2.f32 %v2327_v45  ;;  %v2341_v12 = vmul.f32 1.442695, %v2255_v34  ;;  %v2343_v32 = vmul.f32 1.442695, %v2256_v55  ;;  %v2185_v49 = vpop.permute.xlu1 %2184  ;;  %v6562_v45 = vld [vmem:[#allocation115_spill] sm:$0xff] }
 0x3e0   :  { %3183 = vpow2.f32 %v2337_v8  ;;  %v2261_v61 = vsub.f32 %v6553_v17, %v2185_v49  ;;  %v2262_v18 = vsub.f32 %v6554_v51, %v2185_v49  ;;  %v2263_v28 = vsub.f32 %v6555_v11, %v2185_v49 }
 0x3e1   :  { %3185 = vpow2.f32 %v2339_v43  ;;  %v2264_v31 = vsub.f32 %v6556_v30, %v2185_v49  ;;  %v6565_v49 = vld [vmem:[#allocation121_spill] sm:$0xff]  ;;  %v6568_v30 = vld [vmem:[#allocation126_spill] sm:$0xff] }
 0x3e2   :  { %3187 = vpow2.f32 %v2341_v12  ;;  %v2353_v41 = vmul.f32 1.442695, %v2261_v61  ;;  %v2355_v22 = vmul.f32 1.442695, %v2262_v18  ;;  %v2357_v6 = vmul.f32 1.442695, %v2263_v28 }
 0x3e3   :  { %3189 = vpow2.f32 %v2343_v32  ;;  %v2359_v63 = vmul.f32 1.442695, %v2264_v31  ;;  %v2195_v3 = vpop.permute.xlu1 %2194  ;;  %v6566_v61 = vld [vmem:[#allocation123_spill] sm:$0xff]  ;;  %v6567_v18 = vld [vmem:[#allocation124_spill] sm:$0xff] }
 0x3e4   :  { %3191 = vpow2.f32 %v2353_v41  ;;  %v2269_v44 = vsub.f32 %v6557_v10, %v2195_v3  ;;  %v2270_v56 = vsub.f32 %v6558_v9, %v2195_v3  ;;  %v2271_v14 = vsub.f32 %v6559_v59, %v2195_v3 }
 0x3e5   :  { %v2610_v52 = vld [vmem:[#allocation3 + $0x68] sm:$0xff]  ;;  %3193 = vpow2.f32 %v2355_v22  ;;  %v2272_v26 = vsub.f32 %v6560_v4, %v2195_v3  ;;  %v6569_v4 = vld [vmem:[#allocation129_spill] sm:$0xff] }
 0x3e6   :  { %3195 = vlog2.f32 %v2610_v52  ;;  %v2369_v62 = vmul.f32 1.442695, %v2269_v44  ;;  %v2371_v23 = vmul.f32 1.442695, %v2270_v56  ;;  %v2373_v27 = vmul.f32 1.442695, %v2271_v14 }
 0x3e7   :  { %3197 = vpow2.f32 %v2357_v6  ;;  %v2375_v15 = vmul.f32 1.442695, %v2272_v26  ;;  %v2205_v38 = vpop.permute.xlu1 %2204 }
 0x3e8   :  { %3199 = vpow2.f32 %v2359_v63  ;;  %v2277_v57 = vsub.f32 %v6410_v24, %v2205_v38  ;;  %v2278_v58 = vsub.f32 %v6411_v42, %v2205_v38  ;;  %v2279_v48 = vsub.f32 %v6414_v47, %v2205_v38  ;;  %v6561_v24 = vld [vmem:[#allocation113_spill] sm:$0xff] }
 0x3e9   :  { %v3176_v53 = vpop.eup %3175  ;;  %3201 = vpow2.f32 %v2369_v62  ;;  %v2280_v0 = vsub.f32 %v6416_v19, %v2205_v38  ;;  %v6564_v19 = vld [vmem:[#allocation118_spill] sm:$0xff]  ;;  %v6570_v62 = vld [vmem:[#allocation131_spill] sm:$0xff]  ;;  %v6571_v38 = vld [vmem:[#allocation132_spill] sm:$0xff] }
 0x3ea   :  { %v3178_v13 = vpop.eup %3177  ;;  %3203 = vpow2.f32 %v2371_v23  ;;  %v2385_v40 = vmul.f32 1.442695, %v2277_v57  ;;  %v2387_v16 = vmul.f32 1.442695, %v2278_v58  ;;  %v2389_v29 = vmul.f32 1.442695, %v2279_v48 }
 0x3eb   :  { %v3180_v36 = vpop.eup %3179  ;;  %3205 = vpow2.f32 %v2373_v27  ;;  %v2391_v54 = vmul.f32 1.442695, %v2280_v0  ;;  %v2215_v35 = vpop.permute.xlu1 %2214  ;;  %v2451_v33 = vadd.f32 %v3178_v13, %v3176_v53  ;;  %v6572_v58 = vld [vmem:[#allocation133_spill] sm:$0xff] }
 0x3ec   :  { %v3182_v39 = vpop.eup %3181  ;;  %3207 = vpow2.f32 %v2375_v15  ;;  %v2285_v42 = vsub.f32 %v6561_v24, %v2215_v35  ;;  %v2286_v47 = vsub.f32 %v6562_v45, %v2215_v35  ;;  %v2287_v2 = vsub.f32 %v6563_v50, %v2215_v35  ;;  %v2593_v15 = vld [vmem:[#allocation2 + $0x68] sm:$0xff] }
 0x3ed   :  { %v3184_v25 = vpop.eup %3183  ;;  %3209 = vpow2.f32 %v2385_v40  ;;  %v2288_v46 = vsub.f32 %v6564_v19, %v2215_v35  ;;  %v2452_v5 = vadd.f32 %v3180_v36, %v2451_v33 }
 0x3ee   :  { %v3186_v37 = vpop.eup %3185  ;;  %3211 = vpow2.f32 %v2387_v16  ;;  %v2401_v1 = vmul.f32 1.442695, %v2285_v42  ;;  %v2403_v20 = vmul.f32 1.442695, %v2286_v47  ;;  %v2405_v34 = vmul.f32 1.442695, %v2287_v2 }
 0x3ef   :  { %v3188_v21 = vpop.eup %3187  ;;  %3213 = vpow2.f32 %v2389_v29  ;;  %v2407_v55 = vmul.f32 1.442695, %v2288_v46  ;;  %v2225_v8 = vpop.permute.xlu1 %2224  ;;  %v2453_v43 = vadd.f32 %v3182_v39, %v2452_v5  ;;  %v2461_v12 = vadd.f32 %v3186_v37, %v3184_v25  ;;  %v6573_v29 = vld [vmem:[#allocation162_spill] sm:$0xff] }
 0x3f0   :  { %v3190_v32 = vpop.eup %3189  ;;  %3215 = vpow2.f32 %v2391_v54  ;;  %v2293_v17 = vsub.f32 %v6565_v49, %v2225_v8  ;;  %v2294_v51 = vsub.f32 %v6566_v61, %v2225_v8  ;;  %v2295_v11 = vsub.f32 %v6567_v18, %v2225_v8  ;;  %v6574_v54 = vld [vmem:[#allocation160_spill] sm:$0xff] }
 0x3f1   :  { %v3192_v28 = vpop.eup %3191  ;;  %3217 = vpow2.f32 %v2401_v1  ;;  %v2296_v31 = vsub.f32 %v6568_v30, %v2225_v8  ;;  %2454 = vadd.xlane.f32.xlu0 %v2453_v43  ;;  %v2462_v41 = vadd.f32 %v3188_v21, %v2461_v12  ;;  %v1401_v35 = vsub.f32 %v6574_v54, %v6573_v29  ;;  %v6584_v29 = vld [vmem:[#allocation153_spill] sm:$0xff]  ;;  %v6585_v54 = vld [vmem:[#allocation151_spill] sm:$0xff] }
 0x3f2   :  { %v3194_v22 = vpop.eup %3193  ;;  %3219 = vpow2.f32 %v2403_v20  ;;  %v2417_v6 = vmul.f32 1.442695, %v2293_v17  ;;  %v2419_v63 = vmul.f32 1.442695, %v2294_v51  ;;  %v2421_v3 = vmul.f32 1.442695, %v2295_v11 }
 0x3f3   :  { %v3196_v10 = vpop.eup %3195  ;;  %3221 = vpow2.f32 %v2405_v34  ;;  %v2423_v44 = vmul.f32 1.442695, %v2296_v31  ;;  %v2235_v9 = vpop.permute.xlu1 %2234  ;;  %v2463_v56 = vadd.f32 %v3190_v32, %v2462_v41  ;;  %v2471_v59 = vadd.f32 %v3194_v22, %v3192_v28 }
 0x3f4   :  { %v3198_v14 = vpop.eup %3197  ;;  %v2641_v52 = vmul.f32 0.6931472, %v3196_v10  ;;  %3223 = vpow2.f32 %v2407_v55  ;;  %v2301_v26 = vsub.f32 %v6569_v4, %v2235_v9  ;;  %v2302_v23 = vsub.f32 %v6570_v62, %v2235_v9  ;;  %v6579_v62 = vld [vmem:[#allocation141_spill] sm:$0xff] }
 0x3f5   :  { %v3200_v27 = vpop.eup %3199  ;;  %3225 = vpow2.f32 %v2417_v6  ;;  %v2303_v57 = vsub.f32 %v6571_v38, %v2235_v9  ;;  %v2304_v48 = vsub.f32 %v6572_v58, %v2235_v9  ;;  %2464 = vadd.xlane.f32.xlu0 %v2463_v56  ;;  %v2472_v53 = vadd.f32 %v3198_v14, %v2471_v59  ;;  %v1384_v56 = vld [vmem:[#allocation3 + $0x78] sm:$0xff]  ;;  %v6575_v59 = vld [vmem:[#allocation135_spill] sm:$0xff]  ;;  %v6576_v14 = vld [vmem:[#allocation136_spill] sm:$0xff] }
 0x3f6   :  { %v3202_v0 = vpop.eup %3201  ;;  %v2661_v13 = vadd.f32 %v2641_v52, %v2593_v15  ;;  %3227 = vpow2.f32 %v2419_v63  ;;  %v2433_v40 = vmul.f32 1.442695, %v2301_v26  ;;  %v2435_v16 = vmul.f32 1.442695, %v2302_v23  ;;  %v6578_v26 = vld [vmem:[#allocation142_spill] sm:$0xff]  ;;  %v6581_v58 = vld [vmem:[#allocation143_spill] sm:$0xff] }
 0x3f7   :  { %v3204_v36 = vpop.eup %3203  ;;  %3229 = vpow2.f32 %v2421_v3  ;;  %v2473_v33 = vadd.f32 %v3200_v27, %v2472_v53  ;;  %v2437_v42 = vmul.f32 1.442695, %v2303_v57  ;;  %v2439_v2 = vmul.f32 1.442695, %v2304_v48  ;;  %v6580_v57 = vld [vmem:[#allocation146_spill] sm:$0xff] }
 0x3f8   :  { %v3206_v39 = vpop.eup %3205  ;;  %v2763_v24 = vsub.f32 %v2593_v15, %v2661_v13  ;;  %2848 = vst.msk [vmem:[%s5826_s8 + $0x68] sm:$0xff] %vm30_vm1, %v2661_v13  ;;  %3231 = vpow2.f32 %v2423_v44  ;;  %v2481_v45 = vadd.f32 %v3204_v36, %v3202_v0  ;;  %v1433_v46 = vmul.f32 1.442695, %v1401_v35  ;;  %v6582_v13 = vld [vmem:[#allocation150_spill] sm:$0xff] }
 0x3f9   :  { %v3208_v47 = vpop.eup %3207  ;;  %3233 = vpow2.f32 %v2433_v40  ;;  %2474 = vadd.xlane.f32.xlu0 %v2473_v33  ;;  %v6577_v52 = vsub.f32 %v6575_v59, %v6576_v14  ;;  %v1390_v23 = vsub.f32 %v6579_v62, %v6578_v26  ;;  %v1392_v48 = vsub.f32 %v6581_v58, %v6580_v57  ;;  %v6583_v40 = vld [vmem:[#allocation149_spill] sm:$0xff]  ;;  %v6595_v59 = vld [vmem:[#allocation171_spill] sm:$0xff]  ;;  %v6596_v57 = vld [vmem:[#allocation176_spill] sm:$0xff] }
 0x3fa   :  { %v3210_v50 = vpop.eup %3209  ;;  %2780 = vst.msk [vmem:[%s5827_s6 + $0x68] sm:$0xff] %vm30_vm1, %v2763_v24  ;;  %3235 = vpow2.f32 %v2435_v16  ;;  %v2482_v25 = vadd.f32 %v3206_v39, %v2481_v45  ;;  %v1394_v16 = vsub.f32 %v6583_v40, %v6582_v13  ;;  %v1396_v35 = vsub.f32 %v6585_v54, %v6584_v29  ;;  %v6586_v24 = vld [vmem:[#allocation155_spill] sm:$0xff]  ;;  %v6598_v54 = vld [vmem:[#allocation180_spill] sm:$0xff] }
 0x3fb   :  { %v3212_v19 = vpop.eup %3211  ;;  %3237 = vpow2.f32 %v2437_v42  ;;  %v1405_v4 = vmul.f32 1.442695, %v6577_v52  ;;  %v1411_v53 = vmul.f32 1.442695, %v1390_v23  ;;  %v1415_v0 = vmul.f32 1.442695, %v1392_v48 }
 0x3fc   :  { %v3214_v5 = vpop.eup %3213  ;;  %v2483_v37 = vadd.f32 %v3208_v47, %v2482_v25  ;;  %v2491_v1 = vadd.f32 %v3212_v19, %v3210_v50  ;;  %3239 = vpow2.f32 %v2439_v2  ;;  %v1419_v33 = vmul.f32 1.442695, %v1394_v16  ;;  %v6587_v42 = vld [vmem:[#allocation154_spill] sm:$0xff]  ;;  %v1370_v50 = vld [vmem:[#allocation3 + $0x8] sm:$0xff]  ;;  %v6588_v25 = vld [vmem:[#allocation159_spill] sm:$0xff] }
 0x3fd   :  { %v3216_v20 = vpop.eup %3215  ;;  %3241 = vpow2.f32 %v1433_v46  ;;  %v1423_v39 = vmul.f32 1.442695, %v1396_v35  ;;  %v1398_v45 = vsub.f32 %v6587_v42, %v6586_v24  ;;  %v1400_v19 = vsub.f32 %v6509_v60, %v6588_v25  ;;  %v6590_v60 = vld [vmem:[#allocation168_spill] sm:$0xff]  ;;  %v6597_v58 = vld [vmem:[#allocation175_spill] sm:$0xff] }
 0x3fe   :  { %v3218_v34 = vpop.eup %3217  ;;  %2484 = vadd.xlane.f32.xlu0 %v2483_v37  ;;  %v2492_v21 = vadd.f32 %v3214_v5, %v2491_v1  ;;  %3243 = vpow2.f32 %v1405_v4  ;;  %v1373_v1 = vld [vmem:[#allocation3 + $0x20] sm:$0xff]  ;;  %v2089_v48 = vsub.f32 %v6597_v58, %v6596_v57 }
 0x3ff   :  { %v3220_v55 = vpop.eup %3219  ;;  %3245 = vpow2.f32 %v1411_v53  ;;  %v1427_v2 = vmul.f32 1.442695, %v1398_v45  ;;  %v1381_v16 = vld [vmem:[#allocation3 + $0x60] sm:$0xff] }
 0x400   :  { %v3222_v8 = vpop.eup %3221  ;;  %v2493_v43 = vadd.f32 %v3216_v20, %v2492_v21  ;;  %v2501_v12 = vadd.f32 %v3220_v55, %v3218_v34  ;;  %3247 = vpow2.f32 %v1415_v0  ;;  %v6589_v34 = vld [vmem:[#allocation164_spill] sm:$0xff]  ;;  %v2111_v29 = vmul.f32 1.442695, %v2089_v48  ;;  %v6599_v35 = vld [vmem:[#allocation179_spill] sm:$0xff] }
 0x401   :  { %v3224_v32 = vpop.eup %3223  ;;  %v1402_v21 = vsub.f32 %v6544_v7, %v6589_v34  ;;  %v6600_v25 = vld [vmem:[#allocation183_spill] sm:$0xff] }
 0x402   :  { %v3226_v49 = vpop.eup %3225  ;;  %2494 = vadd.xlane.f32.xlu0 %v2493_v43  ;;  %v2502_v17 = vadd.f32 %v3222_v8, %v2501_v12  ;;  %v1431_v8 = vmul.f32 1.442695, %v1400_v19  ;;  %v6601_v19 = vld [vmem:[#allocation182_spill] sm:$0xff]  ;;  %v6606_v48 = vld [vmem:[#allocation195_spill] sm:$0xff] }
 0x403   :  { %v3228_v61 = vpop.eup %3227 }
 0x404   :  { %v3230_v51 = vpop.eup %3229  ;;  %v2503_v18 = vadd.f32 %v3224_v32, %v2502_v17  ;;  %v2511_v11 = vadd.f32 %v3228_v61, %v3226_v49  ;;  %v1375_v49 = vld [vmem:[#allocation3 + $0x30] sm:$0xff] }
 0x405   :  { %v3232_v28 = vpop.eup %3231 }
 0x406   :  { %v3234_v30 = vpop.eup %3233  ;;  %2504 = vadd.xlane.f32.xlu0 %v2503_v18  ;;  %v2512_v31 = vadd.f32 %v3230_v51, %v2511_v11  ;;  %v6591_v51 = vld [vmem:[#allocation167_spill] sm:$0xff]  ;;  %v1435_v11 = vmul.f32 1.442695, %v1402_v21 }
 0x407   :  { %v3236_v41 = vpop.eup %3235  ;;  %v2085_v18 = vsub.f32 %v6591_v51, %v6590_v60  ;;  %v1385_v21 = vld [vmem:[#allocation3 + $0x80] sm:$0xff] }
 0x408   :  { %v2513_v22 = vadd.f32 %v3232_v28, %v2512_v31  ;;  %v2521_v6 = vadd.f32 %v3236_v41, %v3234_v30  ;;  %v3238_v63 = vpop.eup %3237  ;;  %v2595_v28 = vld [vmem:[#allocation2 + $0x78] sm:$0xff]  ;;  %v6592_v41 = vld [vmem:[#allocation166_spill] sm:$0xff] }
 0x409   :  { %v3240_v10 = vpop.eup %3239 }
 0x40a   :  { %2514 = vadd.xlane.f32.xlu0 %v2513_v22  ;;  %v2522_v3 = vadd.f32 %v3238_v63, %v2521_v6  ;;  %v3242_v44 = vpop.eup %3241  ;;  %v6593_v22 = vld [vmem:[#allocation165_spill] sm:$0xff] }
 0x40b   :  { %v1452_v27 = vmul.f32 %v3242_v44, %v1384_v56  ;;  %v3244_v47 = vpop.eup %3243  ;;  %v2084_v6 = vsub.f32 %v6593_v22, %v6592_v41  ;;  %v6594_v56 = vld [vmem:[#allocation172_spill] sm:$0xff] }
 0x40c   :  { %v2523_v9 = vadd.f32 %v3240_v10, %v2522_v3  ;;  %v1438_v46 = vmul.f32 %v3244_v47, %v1370_v50  ;;  %v3246_v5 = vpop.eup %3245  ;;  %v1377_v3 = vld [vmem:[#allocation3 + $0x40] sm:$0xff]  ;;  %v2087_v14 = vsub.f32 %v6595_v59, %v6594_v56  ;;  %v1383_v47 = vld [vmem:[#allocation3 + $0x70] sm:$0xff] }
 0x40d   :  { %v3248_v55 = vpop.eup %3247  ;;  %v1441_v43 = vmul.f32 %v3246_v5, %v1373_v1  ;;  %v2101_v62 = vmul.f32 1.442695, %v2084_v6  ;;  %v2067_v6 = vld [vmem:[#allocation6] sm:$0xff] }
 0x40e   :  { %2524 = vadd.xlane.f32.xlu0 %v2523_v9  ;;  %v1443_v7 = vmul.f32 %v3248_v55, %v1375_v49  ;;  %v2103_v9 = vmul.f32 1.442695, %v2085_v18  ;;  %v6603_v49 = vld [vmem:[#allocation186_spill] sm:$0xff] }
 0x410   :  { %v1822_v15 = vpop.xlane.xlu0 %1821 }
 0x411   :  { %v1843_v38 = vadd.f32 %v1822_v15, %v1452_v27  ;;  %v1379_v27 = vld [vmem:[#allocation3 + $0x50] sm:$0xff] }
 0x413   :  { %1861 = vst.msk [vmem:[#allocation3 + $0x78] sm:$0xff] %vm30_vm1, %v1843_v38  ;;  %v2107_v38 = vmul.f32 1.442695, %v2087_v14 }
 0x41a   :  { %v2612_v36 = vld [vmem:[#allocation3 + $0x78] sm:$0xff] }
 0x41b   :  { %3249 = vlog2.f32 %v2612_v36 }
 0x41c   :  { %3251 = vpow2.f32 %v1419_v33  ;;  %v2091_v33 = vsub.f32 %v6599_v35, %v6598_v54 }
 0x41d   :  { %3253 = vpow2.f32 %v1423_v39 }
 0x41e   :  { %3255 = vpow2.f32 %v1427_v2  ;;  %v2115_v2 = vmul.f32 1.442695, %v2091_v33 }
 0x41f   :  { %3257 = vpow2.f32 %v1431_v8 }
 0x420   :  { %3259 = vpow2.f32 %v1435_v11 }
 0x424   :  { %v1752_v37 = vpop.xlane.xlu1 %1751 }
 0x425   :  { %v1829_v20 = vadd.f32 %v1752_v37, %v1438_v46  ;;  %v2093_v46 = vsub.f32 %v6601_v19, %v6600_v25 }
 0x427   :  { %1847 = vst.msk [vmem:[#allocation3 + $0x8] sm:$0xff] %vm30_vm1, %v1829_v20 }
 0x428   :  { %v3250_v12 = vpop.eup %3249  ;;  %v1767_v32 = vpop.xlane.xlu1 %1766 }
 0x429   :  { %v2645_v17 = vmul.f32 0.6931472, %v3250_v12  ;;  %v1832_v61 = vadd.f32 %v1767_v32, %v1441_v43  ;;  %v3252_v31 = vpop.eup %3251  ;;  %v2581_v43 = vld [vmem:[#allocation2 + $0x8] sm:$0xff]  ;;  %v2119_v12 = vmul.f32 1.442695, %v2093_v46 }
 0x42a   :  { %v1445_v4 = vmul.f32 %v3252_v31, %v1377_v3  ;;  %v3254_v26 = vpop.eup %3253  ;;  %v6602_v32 = vld [vmem:[#allocation187_spill] sm:$0xff] }
 0x42b   :  { %v2663_v30 = vadd.f32 %v2645_v17, %v2595_v28  ;;  %1850 = vst.msk [vmem:[#allocation3 + $0x20] sm:$0xff] %vm30_vm1, %v1832_v61  ;;  %v1447_v0 = vmul.f32 %v3254_v26, %v1379_v27  ;;  %v3256_v13 = vpop.eup %3255  ;;  %v2095_v17 = vsub.f32 %v6603_v49, %v6602_v32  ;;  %v6604_v3 = vld [vmem:[#allocation191_spill] sm:$0xff] }
 0x42c   :  { %v1777_v63 = vpop.xlane.xlu1 %1776  ;;  %v1449_v24 = vmul.f32 %v3256_v13, %v1381_v16  ;;  %v3258_v42 = vpop.eup %3257  ;;  %v2586_v13 = vld [vmem:[#allocation2 + $0x30] sm:$0xff] }
 0x42d   :  { %v2765_v10 = vsub.f32 %v2595_v28, %v2663_v30  ;;  %2850 = vst.msk [vmem:[%s5826_s8 + $0x78] sm:$0xff] %vm30_vm1, %v2663_v30  ;;  %v1834_v44 = vadd.f32 %v1777_v63, %v1443_v7  ;;  %v3260_v37 = vpop.eup %3259  ;;  %v1451_v1 = vmul.f32 %v3258_v42, %v1383_v47  ;;  %v2068_v30 = vld [vmem:[#allocation6 + $0x8] sm:$0xff]  ;;  %v2123_v63 = vmul.f32 1.442695, %v2095_v17 }
 0x42e   :  { %v2598_v52 = vld [vmem:[#allocation3 + $0x8] sm:$0xff]  ;;  %v1453_v18 = vmul.f32 %v3260_v37, %v1385_v21 }
 0x42f   :  { %2782 = vst.msk [vmem:[%s5827_s6 + $0x78] sm:$0xff] %vm30_vm1, %v2765_v10  ;;  %3261 = vlog2.f32 %v2598_v52  ;;  %1852 = vst.msk [vmem:[#allocation3 + $0x30] sm:$0xff] %vm30_vm1, %v1834_v44  ;;  %v6605_v10 = vld [vmem:[#allocation190_spill] sm:$0xff] }
 0x430   :  { %v1787_v23 = vpop.xlane.xlu1 %1786  ;;  %3263 = vpow2.f32 %v2103_v9  ;;  %v2097_v44 = vsub.f32 %v6605_v10, %v6604_v3  ;;  %v2584_v9 = vld [vmem:[#allocation2 + $0x20] sm:$0xff] }
 0x431   :  { %v1836_v15 = vadd.f32 %v1787_v23, %v1445_v4  ;;  %v2070_v23 = vld [vmem:[#allocation6 + $0x18] sm:$0xff] }
 0x432   :  { %v2601_v53 = vld [vmem:[#allocation3 + $0x20] sm:$0xff]  ;;  %v2127_v58 = vmul.f32 1.442695, %v2097_v44 }
 0x433   :  { %3265 = vlog2.f32 %v2601_v53  ;;  %1854 = vst.msk [vmem:[#allocation3 + $0x40] sm:$0xff] %vm30_vm1, %v1836_v15  ;;  %v6607_v53 = vld [vmem:[#allocation194_spill] sm:$0xff] }
 0x434   :  { %3267 = vpow2.f32 %v2101_v62  ;;  %v1797_v40 = vpop.xlane.xlu1 %1796 }
 0x435   :  { %v1838_v36 = vadd.f32 %v1797_v40, %v1447_v0  ;;  %3269 = vpow2.f32 %v2107_v38  ;;  %v2099_v0 = vsub.f32 %v6607_v53, %v6606_v48 }
 0x436   :  { %v2603_v39 = vld [vmem:[#allocation3 + $0x30] sm:$0xff] }
 0x437   :  { %3271 = vlog2.f32 %v2603_v39  ;;  %1856 = vst.msk [vmem:[#allocation3 + $0x50] sm:$0xff] %vm30_vm1, %v1838_v36  ;;  %v2072_v39 = vld [vmem:[#allocation6 + $0x28] sm:$0xff]  ;;  %v2131_v47 = vmul.f32 1.442695, %v2099_v0 }
 0x438   :  { %v1807_v45 = vpop.xlane.xlu1 %1806  ;;  %3273 = vpow2.f32 %v2111_v29 }
 0x439   :  { %v1840_v50 = vadd.f32 %v1807_v45, %v1449_v24 }
 0x43a   :  { %v2605_v5 = vld [vmem:[#allocation3 + $0x40] sm:$0xff] }
 0x43b   :  { %3275 = vlog2.f32 %v2605_v5  ;;  %1858 = vst.msk [vmem:[#allocation3 + $0x60] sm:$0xff] %vm30_vm1, %v1840_v50  ;;  %v2588_v50 = vld [vmem:[#allocation2 + $0x40] sm:$0xff] }
 0x43c   :  { %v3262_v20 = vpop.eup %3261  ;;  %v1817_v34 = vpop.xlane.xlu1 %1816  ;;  %3277 = vpow2.f32 %v2115_v2 }
 0x43d   :  { %v2617_v55 = vmul.f32 0.6931472, %v3262_v20  ;;  %v1842_v8 = vadd.f32 %v1817_v34, %v1451_v1  ;;  %v3264_v60 = vpop.eup %3263  ;;  %v2074_v1 = vld [vmem:[#allocation6 + $0x38] sm:$0xff] }
 0x43e   :  { %v2607_v61 = vld [vmem:[#allocation3 + $0x50] sm:$0xff]  ;;  %v2136_v52 = vmul.f32 %v3264_v60, %v2068_v30  ;;  %v2076_v60 = vld [vmem:[#allocation6 + $0x48] sm:$0xff] }
 0x43f   :  { %v2649_v51 = vadd.f32 %v2617_v55, %v2581_v43  ;;  %3279 = vlog2.f32 %v2607_v61  ;;  %1860 = vst.msk [vmem:[#allocation3 + $0x70] sm:$0xff] %vm30_vm1, %v1842_v8  ;;  %v2590_v55 = vld [vmem:[#allocation2 + $0x50] sm:$0xff] }
 0x440   :  { %v3266_v11 = vpop.eup %3265  ;;  %v1827_v28 = vpop.xlane.xlu1 %1826  ;;  %3281 = vpow2.f32 %v2119_v12 }
 0x441   :  { %v3268_v7 = vpop.eup %3267  ;;  %v2751_v31 = vsub.f32 %v2581_v43, %v2649_v51  ;;  %2836 = vst.msk [vmem:[%s5826_s8 + $0x8] sm:$0xff] %vm30_vm1, %v2649_v51  ;;  %v2623_v41 = vmul.f32 0.6931472, %v3266_v11  ;;  %v1844_v22 = vadd.f32 %v1827_v28, %v1453_v18  ;;  %v2592_v28 = vld [vmem:[#allocation2 + $0x60] sm:$0xff] }
 0x442   :  { %v2609_v56 = vld [vmem:[#allocation3 + $0x60] sm:$0xff]  ;;  %v3270_v59 = vpop.eup %3269  ;;  %v2135_v62 = vmul.f32 %v3268_v7, %v2067_v6 }
 0x443   :  { %2768 = vst.msk [vmem:[%s5827_s6 + $0x8] sm:$0xff] %vm30_vm1, %v2751_v31  ;;  %v2652_v14 = vadd.f32 %v2623_v41, %v2584_v9  ;;  %3283 = vlog2.f32 %v2609_v56  ;;  %1862 = vst.msk [vmem:[#allocation3 + $0x80] sm:$0xff] %vm30_vm1, %v1844_v22  ;;  %v2138_v54 = vmul.f32 %v3270_v59, %v2070_v23 }
 0x444   :  { %v3272_v4 = vpop.eup %3271  ;;  %v2450_v26 = vpop.xlane.xlu1 %2449  ;;  %3285 = vpow2.f32 %v2123_v63  ;;  %v2078_v63 = vld [vmem:[#allocation6 + $0x58] sm:$0xff] }
 0x445   :  { %v2754_v27 = vsub.f32 %v2584_v9, %v2652_v14  ;;  %2839 = vst.msk [vmem:[%s5826_s8 + $0x20] sm:$0xff] %vm30_vm1, %v2652_v14  ;;  %v2627_v15 = vmul.f32 0.6931472, %v3272_v4  ;;  %v2527_v38 = vadd.f32 %v2450_v26, %v2136_v52  ;;  %v2445_v57 = vpop.xlane.xlu0 %2444  ;;  %v3274_v36 = vpop.eup %3273  ;;  %v2594_v9 = vld [vmem:[#allocation2 + $0x70] sm:$0xff] }
 0x446   :  { %v2611_v40 = vld [vmem:[#allocation3 + $0x70] sm:$0xff]  ;;  %v2526_v16 = vadd.f32 %v2445_v57, %v2135_v62  ;;  %v2140_v46 = vmul.f32 %v3274_v36, %v2072_v39  ;;  %v2080_v62 = vld [vmem:[#allocation6 + $0x68] sm:$0xff] }
 0x447   :  { %2771 = vst.msk [vmem:[%s5827_s6 + $0x20] sm:$0xff] %vm30_vm1, %v2754_v27  ;;  %v2654_v29 = vadd.f32 %v2627_v15, %v2586_v13  ;;  %3287 = vlog2.f32 %v2611_v40  ;;  %2544 = vst.msk [vmem:[#allocation6 + $0x8] sm:$0xff] %vm30_vm1, %v2527_v38  ;;  %v2596_v38 = vld [vmem:[#allocation2 + $0x80] sm:$0xff]  ;;  %v2082_v40 = vld [vmem:[#allocation6 + $0x78] sm:$0xff] }
 0x448   :  { %v3276_v35 = vpop.eup %3275  ;;  %2543 = vst.msk [vmem:[#allocation6] sm:$0xff] %vm30_vm1, %v2526_v16  ;;  %v2460_v33 = vpop.xlane.xlu1 %2459  ;;  %3289 = vpow2.f32 %v2127_v58 }
 0x449   :  { %v2756_v24 = vsub.f32 %v2586_v13, %v2654_v29  ;;  %2841 = vst.msk [vmem:[%s5826_s8 + $0x30] sm:$0xff] %vm30_vm1, %v2654_v29  ;;  %v2631_v42 = vmul.f32 0.6931472, %v3276_v35  ;;  %v2529_v45 = vadd.f32 %v2460_v33, %v2138_v54  ;;  %v3278_v25 = vpop.eup %3277  ;;  %v2666_v35 = vld [vmem:[#allocation5 + $0x8] sm:$0xff] }
 0x44a   :  { %v2613_v2 = vld [vmem:[#allocation3 + $0x80] sm:$0xff]  ;;  %v2142_v49 = vmul.f32 %v3278_v25, %v2074_v1 }
 0x44b   :  { %2773 = vst.msk [vmem:[%s5827_s6 + $0x30] sm:$0xff] %vm30_vm1, %v2756_v24  ;;  %v2656_v19 = vadd.f32 %v2631_v42, %v2588_v50  ;;  %3291 = vlog2.f32 %v2613_v2  ;;  %2546 = vst.msk [vmem:[#allocation6 + $0x18] sm:$0xff] %vm30_vm1, %v2529_v45  ;;  %v2665_v24 = vld [vmem:[#allocation5] sm:$0xff] }
 0x44c   :  { %v3280_v5 = vpop.eup %3279  ;;  %v2470_v37 = vpop.xlane.xlu1 %2469  ;;  %3293 = vpow2.f32 %v2131_v47  ;;  %v6609_v2 = vld [vmem:[#allocation169_spill] sm:$0xff] }
 0x44d   :  { %v2758_v20 = vsub.f32 %v2588_v50, %v2656_v19  ;;  %2843 = vst.msk [vmem:[%s5826_s8 + $0x40] sm:$0xff] %vm30_vm1, %v2656_v19  ;;  %v2635_v34 = vmul.f32 0.6931472, %v3280_v5  ;;  %v2531_v21 = vadd.f32 %v2470_v37, %v2140_v46  ;;  %v3282_v43 = vpop.eup %3281  ;;  %v6608_v50 = vld [vmem:[#allocation170_spill] sm:$0xff]  ;;  %v2785_v19 = vld [vmem:[#allocation4 + $0x8] sm:$0xff]  ;;  %v2784_v37 = vld [vmem:[#allocation4] sm:$0xff] }
 0x44e   :  { %v2683_v8 = vld [vmem:[#allocation6 + $0x8] sm:$0xff]  ;;  %v2144_v41 = vmul.f32 %v3282_v43, %v2076_v60  ;;  %v2086_v25 = vsub.f32 %v6609_v2, %v6608_v50  ;;  %v2678_v2 = vld [vmem:[#allocation5 + $0x68] sm:$0xff] }
 0x44f   :  { %2775 = vst.msk [vmem:[%s5827_s6 + $0x40] sm:$0xff] %vm30_vm1, %v2758_v20  ;;  %v2658_v12 = vadd.f32 %v2635_v34, %v2590_v55  ;;  %3295 = vlog2.f32 %v2683_v8  ;;  %v2682_v32 = vld [vmem:[#allocation6] sm:$0xff]  ;;  %2548 = vst.msk [vmem:[#allocation6 + $0x28] sm:$0xff] %vm30_vm1, %v2531_v21  ;;  %v2668_v21 = vld [vmem:[#allocation5 + $0x18] sm:$0xff] }
 0x450   :  { %v3284_v17 = vpop.eup %3283  ;;  %3297 = vlog2.f32 %v2682_v32  ;;  %v2480_v61 = vpop.xlane.xlu1 %2479  ;;  %v2105_v32 = vmul.f32 1.442695, %v2086_v25  ;;  %v2069_v25 = vld [vmem:[#allocation6 + $0x10] sm:$0xff] }
 0x451   :  { %v2760_v51 = vsub.f32 %v2590_v55, %v2658_v12  ;;  %2845 = vst.msk [vmem:[%s5826_s8 + $0x50] sm:$0xff] %vm30_vm1, %v2658_v12  ;;  %v2639_v18 = vmul.f32 0.6931472, %v3284_v17  ;;  %v2533_v11 = vadd.f32 %v2480_v61, %v2142_v49  ;;  %v3286_v7 = vpop.eup %3285  ;;  %v2787_v49 = vld [vmem:[#allocation4 + $0x18] sm:$0xff]  ;;  %v6610_v17 = vld [vmem:[#allocation174_spill] sm:$0xff]  ;;  %v6611_v61 = vld [vmem:[#allocation173_spill] sm:$0xff] }
 0x452   :  { %v2685_v30 = vld [vmem:[#allocation6 + $0x18] sm:$0xff]  ;;  %v2146_v52 = vmul.f32 %v3286_v7, %v2078_v63  ;;  %v2088_v60 = vsub.f32 %v6611_v61, %v6610_v17 }
 0x453   :  { %2777 = vst.msk [vmem:[%s5827_s6 + $0x50] sm:$0xff] %vm30_vm1, %v2760_v51  ;;  %v2660_v31 = vadd.f32 %v2639_v18, %v2592_v28  ;;  %3299 = vlog2.f32 %v2685_v30  ;;  %2550 = vst.msk [vmem:[#allocation6 + $0x38] sm:$0xff] %vm30_vm1, %v2533_v11  ;;  %v2670_v11 = vld [vmem:[#allocation5 + $0x28] sm:$0xff] }
 0x454   :  { %v3288_v22 = vpop.eup %3287  ;;  %v2490_v6 = vpop.xlane.xlu1 %2489 }
 0x455   :  { %v2762_v3 = vsub.f32 %v2592_v28, %v2660_v31  ;;  %2847 = vst.msk [vmem:[%s5826_s8 + $0x60] sm:$0xff] %vm30_vm1, %v2660_v31  ;;  %v2643_v10 = vmul.f32 0.6931472, %v3288_v22  ;;  %v2535_v44 = vadd.f32 %v2490_v6, %v2144_v41  ;;  %v3290_v59 = vpop.eup %3289  ;;  %v2789_v31 = vld [vmem:[#allocation4 + $0x28] sm:$0xff]  ;;  %v2109_v41 = vmul.f32 1.442695, %v2088_v60 }
 0x456   :  { %v2687_v56 = vld [vmem:[#allocation6 + $0x28] sm:$0xff]  ;;  %v2148_v53 = vmul.f32 %v3290_v59, %v2080_v62  ;;  %v6612_v22 = vld [vmem:[#allocation178_spill] sm:$0xff]  ;;  %v6613_v6 = vld [vmem:[#allocation177_spill] sm:$0xff] }
 0x457   :  { %2779 = vst.msk [vmem:[%s5827_s6 + $0x60] sm:$0xff] %vm30_vm1, %v2762_v3  ;;  %v2662_v14 = vadd.f32 %v2643_v10, %v2594_v9  ;;  %3301 = vlog2.f32 %v2687_v56  ;;  %2552 = vst.msk [vmem:[#allocation6 + $0x48] sm:$0xff] %vm30_vm1, %v2535_v44  ;;  %v2090_v63 = vsub.f32 %v6613_v6, %v6612_v22  ;;  %v2672_v44 = vld [vmem:[#allocation5 + $0x38] sm:$0xff]  ;;  %v6614_v62 = vld [vmem:[#allocation13_spill] sm:$0xff] }
 0x458   :  { %v3292_v4 = vpop.eup %3291  ;;  %v2500_v26 = vpop.xlane.xlu1 %2499  ;;  %v2799_v60 = vld [vmem:[#allocation4 + $0x78] sm:$0xff]  ;;  %v2073_v22 = vld [vmem:[#allocation6 + $0x30] sm:$0xff] }
 0x459   :  { %v2764_v23 = vsub.f32 %v2594_v9, %v2662_v14  ;;  %2849 = vst.msk [vmem:[%s5826_s8 + $0x70] sm:$0xff] %vm30_vm1, %v2662_v14  ;;  %v2647_v27 = vmul.f32 0.6931472, %v3292_v4  ;;  %v2537_v15 = vadd.f32 %v2500_v26, %v2146_v52  ;;  %v3294_v58 = vpop.eup %3293  ;;  %v2791_v14 = vld [vmem:[#allocation4 + $0x38] sm:$0xff]  ;;  %v2113_v52 = vmul.f32 1.442695, %v2090_v63 }
 0x45a   :  { %v2689_v57 = vld [vmem:[#allocation6 + $0x38] sm:$0xff]  ;;  %v2150_v45 = vmul.f32 %v3294_v58, %v2082_v40  ;;  %v6617_v40 = vld [vmem:[#allocation184_spill] sm:$0xff] }
 0x45b   :  { %2781 = vst.msk [vmem:[%s5827_s6 + $0x70] sm:$0xff] %vm30_vm1, %v2764_v23  ;;  %v2664_v48 = vadd.f32 %v2647_v27, %v2596_v38  ;;  %3303 = vlog2.f32 %v2689_v57  ;;  %2554 = vst.msk [vmem:[#allocation6 + $0x58] sm:$0xff] %vm30_vm1, %v2537_v15  ;;  %v6615_v23 = vld [vmem:[#allocation181_spill] sm:$0xff]  ;;  %v2674_v15 = vld [vmem:[#allocation5 + $0x48] sm:$0xff] }
 0x45c   :  { %v3296_v0 = vpop.eup %3295  ;;  %v2510_v13 = vpop.xlane.xlu1 %2509  ;;  %v2092_v27 = vsub.f32 %v6615_v23, %v6614_v62  ;;  %v2793_v58 = vld [vmem:[#allocation4 + $0x48] sm:$0xff] }
 0x45d   :  { %v3298_v16 = vpop.eup %3297  ;;  %v2766_v36 = vsub.f32 %v2596_v38, %v2664_v48  ;;  %2851 = vst.msk [vmem:[%s5826_s8 + $0x80] sm:$0xff] %vm30_vm1, %v2664_v48  ;;  %v2702_v29 = vmul.f32 0.6931472, %v3296_v0  ;;  %v2539_v54 = vadd.f32 %v2510_v13, %v2148_v53  ;;  %v6616_v13 = vld [vmem:[#allocation185_spill] sm:$0xff] }
 0x45e   :  { %v2700_v33 = vmul.f32 0.6931472, %v3298_v16  ;;  %v2691_v39 = vld [vmem:[#allocation6 + $0x48] sm:$0xff]  ;;  %v2117_v0 = vmul.f32 1.442695, %v2092_v27  ;;  %v2094_v16 = vsub.f32 %v6617_v40, %v6616_v13  ;;  %v2081_v40 = vld [vmem:[#allocation6 + $0x70] sm:$0xff] }
 0x45f   :  { %2783 = vst.msk [vmem:[%s5827_s6 + $0x80] sm:$0xff] %vm30_vm1, %v2766_v36  ;;  %v2734_v42 = vadd.f32 %v2702_v29, %v2666_v35  ;;  %3305 = vlog2.f32 %v2691_v39  ;;  %2556 = vst.msk [vmem:[#allocation6 + $0x68] sm:$0xff] %vm30_vm1, %v2539_v54  ;;  %v2676_v36 = vld [vmem:[#allocation5 + $0x58] sm:$0xff]  ;;  %v2795_v35 = vld [vmem:[#allocation4 + $0x58] sm:$0xff] }
 0x460   :  { %v3300_v47 = vpop.eup %3299  ;;  %v2733_v46 = vadd.f32 %v2700_v33, %v2665_v24  ;;  %v2520_v5 = vpop.xlane.xlu1 %2519 }
 0x461   :  { %v2802_v1 = vsub.f32 %v2785_v19, %v2734_v42  ;;  %v2706_v20 = vmul.f32 0.6931472, %v3300_v47  ;;  %v2541_v34 = vadd.f32 %v2520_v5, %v2150_v45  ;;  %v2121_v42 = vmul.f32 1.442695, %v2094_v16  ;;  %v6618_v45 = vld [vmem:[#allocation189_spill] sm:$0xff]  ;;  %v6619_v47 = vld [vmem:[#allocation188_spill] sm:$0xff] }
 0x462   :  { %v2801_v55 = vsub.f32 %v2784_v37, %v2733_v46  ;;  %v2693_v8 = vld [vmem:[#allocation6 + $0x58] sm:$0xff]  ;;  %v2096_v50 = vsub.f32 %v6619_v47, %v6618_v45 }
 0x463   :  { %2819 = vst.msk [vmem:[%s5828_s7 + $0x8] sm:$0xff] %vm30_vm1, %v2802_v1  ;;  %v2736_v43 = vadd.f32 %v2706_v20, %v2668_v21  ;;  %3307 = vlog2.f32 %v2693_v8  ;;  %2558 = vst.msk [vmem:[#allocation6 + $0x78] sm:$0xff] %vm30_vm1, %v2541_v34  ;;  %v2797_v5 = vld [vmem:[#allocation4 + $0x68] sm:$0xff]  ;;  %v6621_v8 = vld [vmem:[#allocation192_spill] sm:$0xff] }
 0x464   :  { %v3302_v12 = vpop.eup %3301  ;;  %2818 = vst.msk [vmem:[%s5828_s7] sm:$0xff] %vm30_vm1, %v2801_v55  ;;  %v2125_v21 = vmul.f32 1.442695, %v2096_v50  ;;  %v6620_v55 = vld [vmem:[#allocation193_spill] sm:$0xff] }
 0x465   :  { %v2804_v51 = vsub.f32 %v2787_v49, %v2736_v43  ;;  %v2710_v18 = vmul.f32 0.6931472, %v3302_v12  ;;  %v2098_v43 = vsub.f32 %v6621_v8, %v6620_v55  ;;  %v2680_v12 = vld [vmem:[#allocation5 + $0x78] sm:$0xff]  ;;  %v2071_v49 = vld [vmem:[#allocation6 + $0x20] sm:$0xff] }
 0x466   :  { %v2695_v28 = vld [vmem:[#allocation6 + $0x68] sm:$0xff]  ;;  %v2788_v8 = vld [vmem:[#allocation4 + $0x20] sm:$0xff] }
 0x467   :  { %2821 = vst.msk [vmem:[%s5828_s7 + $0x18] sm:$0xff] %vm30_vm1, %v2804_v51  ;;  %v2738_v30 = vadd.f32 %v2710_v18, %v2670_v11  ;;  %3309 = vlog2.f32 %v2695_v28  ;;  %v2129_v28 = vmul.f32 1.442695, %v2098_v43 }
 0x468   :  { %v3304_v7 = vpop.eup %3303  ;;  %3311 = vpow2.f32 %v2105_v32 }
 0x469   :  { %v2806_v3 = vsub.f32 %v2789_v31, %v2738_v30  ;;  %v2714_v10 = vmul.f32 0.6931472, %v3304_v7  ;;  %v6622_v30 = vld [vmem:[#allocation197_spill] sm:$0xff]  ;;  %v6623_v7 = vld [vmem:[#allocation196_spill] sm:$0xff] }
 0x46a   :  { %v2697_v9 = vld [vmem:[#allocation6 + $0x78] sm:$0xff]  ;;  %v2100_v31 = vsub.f32 %v6623_v7, %v6622_v30 }
 0x46b   :  { %2823 = vst.msk [vmem:[%s5828_s7 + $0x28] sm:$0xff] %vm30_vm1, %v2806_v3  ;;  %v2740_v56 = vadd.f32 %v2714_v10, %v2672_v44  ;;  %3313 = vlog2.f32 %v2697_v9 }
 0x46c   :  { %v3306_v59 = vpop.eup %3305  ;;  %3315 = vpow2.f32 %v2109_v41  ;;  %v2133_v3 = vmul.f32 1.442695, %v2100_v31  ;;  %v2792_v31 = vld [vmem:[#allocation4 + $0x40] sm:$0xff] }
 0x46d   :  { %v2808_v4 = vsub.f32 %v2791_v14, %v2740_v56  ;;  %v2718_v26 = vmul.f32 0.6931472, %v3306_v59  ;;  %3317 = vpow2.f32 %v2113_v52  ;;  %v2075_v56 = vld [vmem:[#allocation6 + $0x40] sm:$0xff] }
 0x46e   :  { %3319 = vpow2.f32 %v2117_v0 }
 0x46f   :  { %2825 = vst.msk [vmem:[%s5828_s7 + $0x38] sm:$0xff] %vm30_vm1, %v2808_v4  ;;  %v2742_v38 = vadd.f32 %v2718_v26, %v2674_v15  ;;  %3321 = vpow2.f32 %v2121_v42  ;;  %v2077_v26 = vld [vmem:[#allocation6 + $0x50] sm:$0xff]  ;;  %v2667_v42 = vld [vmem:[#allocation5 + $0x10] sm:$0xff] }
 0x470   :  { %v3308_v57 = vpop.eup %3307  ;;  %3323 = vpow2.f32 %v2125_v21 }
 0x471   :  { %v2810_v48 = vsub.f32 %v2793_v58, %v2742_v38  ;;  %v2722_v53 = vmul.f32 0.6931472, %v3308_v57  ;;  %3325 = vpow2.f32 %v2129_v28  ;;  %v2079_v57 = vld [vmem:[#allocation6 + $0x60] sm:$0xff] }
 0x473   :  { %2827 = vst.msk [vmem:[%s5828_s7 + $0x48] sm:$0xff] %vm30_vm1, %v2810_v48  ;;  %v2744_v29 = vadd.f32 %v2722_v53, %v2676_v36 }
 0x474   :  { %v3310_v54 = vpop.eup %3309 }
 0x475   :  { %v3312_v33 = vpop.eup %3311  ;;  %v2812_v39 = vsub.f32 %v2795_v35, %v2744_v29  ;;  %v2726_v24 = vmul.f32 0.6931472, %v3310_v54 }
 0x476   :  { %v2137_v20 = vmul.f32 %v3312_v33, %v2069_v25  ;;  %v2786_v25 = vld [vmem:[#allocation4 + $0x10] sm:$0xff] }
 0x477   :  { %2829 = vst.msk [vmem:[%s5828_s7 + $0x58] sm:$0xff] %vm30_vm1, %v2812_v39  ;;  %v2746_v19 = vadd.f32 %v2726_v24, %v2678_v2  ;;  %v2083_v24 = vld [vmem:[#allocation6 + $0x80] sm:$0xff] }
 0x478   :  { %v3314_v46 = vpop.eup %3313 }
 0x479   :  { %v2814_v37 = vsub.f32 %v2797_v5, %v2746_v19  ;;  %v2730_v1 = vmul.f32 0.6931472, %v3314_v46  ;;  %v3316_v34 = vpop.eup %3315 }
 0x47a   :  { %v2455_v32 = vpop.xlane.xlu0 %2454  ;;  %v2139_v18 = vmul.f32 %v3316_v34, %v2071_v49  ;;  %v3318_v11 = vpop.eup %3317 }
 0x47b   :  { %2831 = vst.msk [vmem:[%s5828_s7 + $0x68] sm:$0xff] %vm30_vm1, %v2814_v37  ;;  %v2748_v17 = vadd.f32 %v2730_v1, %v2680_v12  ;;  %v2528_v61 = vadd.f32 %v2455_v32, %v2137_v20  ;;  %v2141_v63 = vmul.f32 %v3318_v11, %v2073_v22  ;;  %v3320_v44 = vpop.eup %3319  ;;  %v2669_v1 = vld [vmem:[#allocation5 + $0x20] sm:$0xff]  ;;  %v2671_v32 = vld [vmem:[#allocation5 + $0x30] sm:$0xff] }
 0x47c   :  { %v2143_v14 = vmul.f32 %v3320_v44, %v2075_v56  ;;  %v3322_v52 = vpop.eup %3321  ;;  %v2673_v11 = vld [vmem:[#allocation5 + $0x40] sm:$0xff] }
 0x47d   :  { %v2816_v51 = vsub.f32 %v2799_v60, %v2748_v17  ;;  %2545 = vst.msk [vmem:[#allocation6 + $0x10] sm:$0xff] %vm30_vm1, %v2528_v61  ;;  %v2145_v27 = vmul.f32 %v3322_v52, %v2077_v26  ;;  %v3324_v15 = vpop.eup %3323  ;;  %v2790_v61 = vld [vmem:[#allocation4 + $0x30] sm:$0xff]  ;;  %v2677_v56 = vld [vmem:[#allocation5 + $0x60] sm:$0xff]  ;;  %v2796_v52 = vld [vmem:[#allocation4 + $0x60] sm:$0xff] }
 0x47e   :  { %v2465_v41 = vpop.xlane.xlu0 %2464  ;;  %v2147_v53 = vmul.f32 %v3324_v15, %v2079_v57  ;;  %v3326_v0 = vpop.eup %3325  ;;  %v2798_v15 = vld [vmem:[#allocation4 + $0x70] sm:$0xff] }
 0x47f   :  { %2833 = vst.msk [vmem:[%s5828_s7 + $0x78] sm:$0xff] %vm30_vm1, %v2816_v51  ;;  %v2530_v6 = vadd.f32 %v2465_v41, %v2139_v18  ;;  %v2149_v54 = vmul.f32 %v3326_v0, %v2081_v40 }
 0x481   :  { %2547 = vst.msk [vmem:[#allocation6 + $0x20] sm:$0xff] %vm30_vm1, %v2530_v6  ;;  %v2675_v6 = vld [vmem:[#allocation5 + $0x50] sm:$0xff] }
 0x482   :  { %v2475_v10 = vpop.xlane.xlu0 %2474 }
 0x483   :  { %v2532_v9 = vadd.f32 %v2475_v10, %v2141_v63  ;;  %v2794_v10 = vld [vmem:[#allocation4 + $0x50] sm:$0xff] }
 0x484   :  { %v2684_v59 = vld [vmem:[#allocation6 + $0x10] sm:$0xff] }
 0x485   :  { %3327 = vlog2.f32 %v2684_v59  ;;  %2549 = vst.msk [vmem:[#allocation6 + $0x30] sm:$0xff] %vm30_vm1, %v2532_v9 }
 0x486   :  { %3329 = vpow2.f32 %v2133_v3 }
 0x487   :  { %v2485_v4 = vpop.xlane.xlu0 %2484 }
 0x488   :  { %v2686_v62 = vld [vmem:[#allocation6 + $0x20] sm:$0xff]  ;;  %v2534_v23 = vadd.f32 %v2485_v4, %v2143_v14 }
 0x489   :  { %3331 = vlog2.f32 %v2686_v62  ;;  %v2679_v62 = vld [vmem:[#allocation5 + $0x70] sm:$0xff] }
 0x48a   :  { %2551 = vst.msk [vmem:[#allocation6 + $0x40] sm:$0xff] %vm30_vm1, %v2534_v23 }
 0x48b   :  { %v2495_v38 = vpop.xlane.xlu0 %2494 }
 0x48c   :  { %v2688_v58 = vld [vmem:[#allocation6 + $0x30] sm:$0xff]  ;;  %v2536_v48 = vadd.f32 %v2495_v38, %v2145_v27 }
 0x48d   :  { %3333 = vlog2.f32 %v2688_v58  ;;  %v2681_v58 = vld [vmem:[#allocation5 + $0x80] sm:$0xff] }
 0x48e   :  { %2553 = vst.msk [vmem:[#allocation6 + $0x50] sm:$0xff] %vm30_vm1, %v2536_v48 }
 0x48f   :  { %v2505_v13 = vpop.xlane.xlu0 %2504 }
 0x490   :  { %v2538_v16 = vadd.f32 %v2505_v13, %v2147_v53  ;;  %v2800_v53 = vld [vmem:[#allocation4 + $0x80] sm:$0xff] }
 0x491   :  { %v2690_v36 = vld [vmem:[#allocation6 + $0x40] sm:$0xff] }
 0x492   :  { %v3328_v29 = vpop.eup %3327  ;;  %3335 = vlog2.f32 %v2690_v36  ;;  %2555 = vst.msk [vmem:[#allocation6 + $0x60] sm:$0xff] %vm30_vm1, %v2538_v16 }
 0x493   :  { %v3330_v35 = vpop.eup %3329  ;;  %v2704_v33 = vmul.f32 0.6931472, %v3328_v29  ;;  %v2515_v39 = vpop.xlane.xlu0 %2514 }
 0x494   :  { %v2540_v45 = vadd.f32 %v2515_v39, %v2149_v54  ;;  %v2151_v19 = vmul.f32 %v3330_v35, %v2083_v24 }
 0x495   :  { %v2735_v47 = vadd.f32 %v2704_v33, %v2667_v42  ;;  %v2692_v50 = vld [vmem:[#allocation6 + $0x50] sm:$0xff] }
 0x496   :  { %v3332_v2 = vpop.eup %3331  ;;  %3337 = vlog2.f32 %v2692_v50  ;;  %2557 = vst.msk [vmem:[#allocation6 + $0x70] sm:$0xff] %vm30_vm1, %v2540_v45 }
 0x497   :  { %v2803_v46 = vsub.f32 %v2786_v25, %v2735_v47  ;;  %v2708_v5 = vmul.f32 0.6931472, %v3332_v2  ;;  %v2525_v37 = vpop.xlane.xlu0 %2524 }
 0x498   :  { %v2542_v20 = vadd.f32 %v2525_v37, %v2151_v19 }
 0x499   :  { %2820 = vst.msk [vmem:[%s5828_s7 + $0x10] sm:$0xff] %vm30_vm1, %v2803_v46  ;;  %v2737_v34 = vadd.f32 %v2708_v5, %v2669_v1  ;;  %v2694_v21 = vld [vmem:[#allocation6 + $0x60] sm:$0xff] }
 0x49a   :  { %v3334_v55 = vpop.eup %3333  ;;  %3339 = vlog2.f32 %v2694_v21  ;;  %2559 = vst.msk [vmem:[#allocation6 + $0x80] sm:$0xff] %vm30_vm1, %v2542_v20 }
 0x49b   :  { %v2805_v43 = vsub.f32 %v2788_v8, %v2737_v34  ;;  %v2712_v12 = vmul.f32 0.6931472, %v3334_v55 }
 0x49d   :  { %2822 = vst.msk [vmem:[%s5828_s7 + $0x20] sm:$0xff] %vm30_vm1, %v2805_v43  ;;  %v2739_v49 = vadd.f32 %v2712_v12, %v2671_v32  ;;  %v2696_v17 = vld [vmem:[#allocation6 + $0x70] sm:$0xff] }
 0x49e   :  { %3341 = vlog2.f32 %v2696_v17 }
 0x49f   :  { %v3336_v60 = vpop.eup %3335  ;;  %v2807_v51 = vsub.f32 %v2790_v61, %v2739_v49 }
 0x4a0   :  { %v2716_v18 = vmul.f32 0.6931472, %v3336_v60 }
 0x4a1   :  { %2824 = vst.msk [vmem:[%s5828_s7 + $0x30] sm:$0xff] %vm30_vm1, %v2807_v51  ;;  %v2698_v28 = vld [vmem:[#allocation6 + $0x80] sm:$0xff] }
 0x4a2   :  { %v2741_v30 = vadd.f32 %v2716_v18, %v2673_v11  ;;  %3343 = vlog2.f32 %v2698_v28 }
 0x4a3   :  { %v3338_v7 = vpop.eup %3337 }
 0x4a4   :  { %v2809_v41 = vsub.f32 %v2792_v31, %v2741_v30  ;;  %v2720_v22 = vmul.f32 0.6931472, %v3338_v7 }
 0x4a6   :  { %2826 = vst.msk [vmem:[%s5828_s7 + $0x40] sm:$0xff] %vm30_vm1, %v2809_v41  ;;  %v2743_v63 = vadd.f32 %v2720_v22, %v2675_v6 }
 0x4a7   :  { %v3340_v3 = vpop.eup %3339 }
 0x4a8   :  { %v2811_v44 = vsub.f32 %v2794_v10, %v2743_v63  ;;  %v2724_v9 = vmul.f32 0.6931472, %v3340_v3 }
 0x4aa   :  { %2828 = vst.msk [vmem:[%s5828_s7 + $0x50] sm:$0xff] %vm30_vm1, %v2811_v44  ;;  %v2745_v59 = vadd.f32 %v2724_v9, %v2677_v56 }
 0x4ab   :  { %v3342_v14 = vpop.eup %3341 }
 0x4ac   :  { %v2813_v4 = vsub.f32 %v2796_v52, %v2745_v59  ;;  %v2728_v26 = vmul.f32 0.6931472, %v3342_v14 }
 0x4ae   :  { %2830 = vst.msk [vmem:[%s5828_s7 + $0x60] sm:$0xff] %vm30_vm1, %v2813_v4  ;;  %v2747_v23 = vadd.f32 %v2728_v26, %v2679_v62 }
 0x4af   :  { %v3344_v27 = vpop.eup %3343 }
 0x4b0   :  { %v2815_v38 = vsub.f32 %v2798_v15, %v2747_v23  ;;  %v2732_v57 = vmul.f32 0.6931472, %v3344_v27 }
 0x4b2   :  { %2832 = vst.msk [vmem:[%s5828_s7 + $0x70] sm:$0xff] %vm30_vm1, %v2815_v38  ;;  %v2749_v48 = vadd.f32 %v2732_v57, %v2681_v58 }
 0x4b4   :  { %v2817_v0 = vsub.f32 %v2800_v53, %v2749_v48 }
 0x4b6   :  { %2834 = vst.msk [vmem:[%s5828_s7 + $0x80] sm:$0xff] %vm30_vm1, %v2817_v0 }

</bundles_post_ra>
